<compile_context>
chip_gen: v7x
topology: tpu7x:2x2x1
jax: 0.10.0
libtpu: 0.0.40
codegen_flags: <defaults>
</compile_context>

<pallas_src>
import functools

import jax
import jax.numpy as jnp
from jax.experimental import pallas as pl
from jax.experimental.pallas import tpu as pltpu


def _round_up(x, m):
    return (x + m - 1) // m * m


def _sigmoid(x):
    # sigmoid via a single tanh EUP op (instead of exp + reciprocal + add).
    return 0.5 * jnp.tanh(0.5 * x) + 0.5


# ----------------------------- Pallas kernels --------------------------------
def _mlp_kernel_lane_dense(x_ref, w1_ref, w2_ref, b2_ref, o_ref):
    # fc1 on the MXU (bf16 in, f32 accumulate); b1 is folded into w1 via the
    # constant-1 input column, so there is no separate bias add.
    h = jnp.dot(x_ref[...], w1_ref[...], preferred_element_type=jnp.float32)
    h = jnp.maximum(h, 0.0)
    # fcOutput (N=1) on the otherwise idle MXU.
    logit = jnp.dot(h, w2_ref[...], preferred_element_type=jnp.float32)  # (tm, 1)
    # Relayout the (tm, 1) column into a lane-dense (tm//128, 128) tile so the
    # sigmoid and the output stores touch ~tm/1024 dense vregs instead of
    # ~tm/8 single-lane vregs (masked vst on the single vector-store slot).
    dense = logit.reshape(o_ref.shape) + b2_ref[0, 0]
    o_ref[...] = _sigmoid(dense).astype(o_ref.dtype)


def _mlp_kernel_rowcol(x_ref, w1_ref, w2_ref, b2_ref, o_ref):
    # Fallback epilogue: same math with a (tm, 1) output block; fc2 done as a
    # VPU multiply + lane reduce (every op here is known to lower).
    h = jnp.dot(x_ref[...], w1_ref[...], preferred_element_type=jnp.float32)
    h = jnp.maximum(h, 0.0)
    logit = jnp.sum(h * w2_ref[...], axis=-1, keepdims=True) + b2_ref[0, 0]
    o_ref[...] = _sigmoid(logit).astype(o_ref.dtype)


def _mlp_pallas(x, w1, w2, b2, *, block_rows, lane_dense):
    """x: (B_pad, D_pad) bf16 with a constant-1 bias column; w1: (D_pad, F) bf16
    with b1 folded into the bias row; w2: (F,) f32; b2: (1, 1) f32.
    Returns sigmoid(relu(x @ w1) @ w2 + b2) as
      (B_pad // 128, 128) f32  when lane_dense,
      (B_pad, 1) f32           otherwise.
    """
    b_pad, d_pad = x.shape
    f = w1.shape[1]
    tm = block_rows
    grid = (b_pad // tm,)

    if lane_dense:
        kernel = _mlp_kernel_lane_dense
        w2_arg = w2.reshape(f, 1)
        w2_spec = pl.BlockSpec((f, 1), lambda i: (0, 0))
        out_shape = jax.ShapeDtypeStruct((b_pad // 128, 128), jnp.float32)
        out_spec = pl.BlockSpec((tm // 128, 128), lambda i: (i, 0))
    else:
        kernel = _mlp_kernel_rowcol
        w2_arg = w2.reshape(1, f)
        w2_spec = pl.BlockSpec((1, f), lambda i: (0, 0))
        out_shape = jax.ShapeDtypeStruct((b_pad, 1), jnp.float32)
        out_spec = pl.BlockSpec((tm, 1), lambda i: (i, 0))

    flops = 2 * b_pad * d_pad * f + 2 * b_pad * f
    bytes_accessed = (x.size * x.dtype.itemsize + w1.size * w1.dtype.itemsize
                      + w2_arg.size * 4 + b2.size * 4 + b_pad * 4)

    return pl.pallas_call(
        kernel,
        out_shape=out_shape,
        grid=grid,
        in_specs=[
            # activation: tiled over batch -> double-buffered HBM->VMEM DMA
            pl.BlockSpec((tm, d_pad), lambda i: (i, 0)),
            # weights: constant index_map -> resident in VMEM across steps
            pl.BlockSpec((d_pad, f), lambda i: (0, 0)),
            w2_spec,
            # scalar output bias in SMEM
            pl.BlockSpec((1, 1), lambda i: (0, 0),
                         memory_space=pltpu.MemorySpace.SMEM),
        ],
        out_specs=out_spec,
        compiler_params=pltpu.CompilerParams(
            dimension_semantics=("parallel",),
            # 16 MB double-buffered x tile + f32 intermediates; fits v7x 64 MiB
            vmem_limit_bytes=40 * 1024 * 1024,
        ),
        cost_estimate=pl.CostEstimate(
            flops=flops, transcendentals=b_pad, bytes_accessed=bytes_accessed),
    )(x, w1, w2_arg, b2)


_LANE_DENSE_OK = None


def _lane_dense_supported():
    """One-time compile probe: the lane-dense epilogue relies on an in-kernel
    (tm, 1) -> (tm//128, 128) relayout; fall back to the (tm, 1) output path if
    Mosaic rejects it on this jax/libtpu version."""
    global _LANE_DENSE_OK
    if _LANE_DENSE_OK is None:
        try:
            tm = 1024
            out = _mlp_pallas(
                jnp.zeros((tm, 128), jnp.bfloat16),
                jnp.zeros((128, 32), jnp.bfloat16),
                jnp.zeros((32,), jnp.float32),
                jnp.zeros((1, 1), jnp.float32),
                block_rows=tm, lane_dense=True)
            jax.block_until_ready(out)
            _LANE_DENSE_OK = True
        except Exception:
            _LANE_DENSE_OK = False
    return _LANE_DENSE_OK


# ------------------------- Parameter construction ---------------------------
class Config:
    # small synthetic vocab sizes
    numUser = 37
    numCmsSeg = 5
    numCmsGroup = 7
    numFinalGenderCode = 3
    numAgeLevel = 8
    numPvalueLevel = 4
    numShoppingLevel = 4
    numOccupation = 3
    numNewUserClassLevel = 5
    numAdGroup = 41
    numCateId = 19
    numCampaignId = 23
    numCustomer = 29
    numBrand = 31
    dimEmb = 8
    dimFc1 = 32


def vocab_list(cfg):
    return [
        cfg.numUser, cfg.numCmsSeg, cfg.numCmsGroup, cfg.numFinalGenderCode,
        cfg.numAgeLevel, cfg.numPvalueLevel, cfg.numShoppingLevel,
        cfg.numOccupation, cfg.numNewUserClassLevel, cfg.numAdGroup,
        cfg.numCateId, cfg.numCampaignId, cfg.numCustomer, cfg.numBrand,
    ]


def init_params(key, cfg):
    vocab_sizes = vocab_list(cfg)
    keys = jax.random.split(key, len(vocab_sizes) + 4)
    # Embedding tables stored in bf16: halves the gather HBM bytes and lets the
    # concat/pad fusion emit bf16 without a separate convert.
    tables = [
        jax.random.normal(keys[i], (v, cfg.dimEmb),
                          dtype=jnp.float32).astype(jnp.bfloat16)
        for i, v in enumerate(vocab_sizes)
    ]
    D = cfg.dimEmb * 14 + 1
    F = cfg.dimFc1
    # fc1: PyTorch Linear(D, F) -> weight (F, D); stored transposed (D, F)
    lim1 = 1.0 / jnp.sqrt(D)
    w1 = jax.random.uniform(keys[-4], (D, F), jnp.float32, -lim1, lim1)
    b1 = jax.random.uniform(keys[-3], (1, F), jnp.float32, -lim1, lim1)
    # fcOutput: Linear(F, 1) -> weight (1, F); stored transposed (F, 1)
    lim2 = 1.0 / jnp.sqrt(F)
    w2 = jax.random.uniform(keys[-2], (F, 1), jnp.float32, -lim2, lim2)
    b2 = jax.random.uniform(keys[-1], (1, 1), jnp.float32, -lim2, lim2)
    return tables, (w1, b1, w2, b2)


# -------------------------------- Forward -----------------------------------
# PyTorch concat order: user, adGroup, cmsSeg, cmsGroup, finalGenderCode,
# ageLevel, pvalueLevel, shoppingLevel, occupation, newUserClassLevel, cate,
# campaign, customer, brand, price.  Tables/ids are ordered: user, cmsSeg,
# cmsGroup, finalGenderCode, ageLevel, pvalueLevel, shoppingLevel, occupation,
# newUserClassLevel, adGroup, cateId, campaignId, customer, brand.
_CONCAT_ORDER = (0, 9, 1, 2, 3, 4, 5, 6, 7, 8, 10, 11, 12, 13)


@functools.partial(jax.jit, static_argnames=("block_rows", "lane_dense"))
def _forward_impl(tables, mlp_params, ids, price, *, block_rows, lane_dense):
    w1, b1, w2, b2 = mlp_params  # (D,F), (1,F), (F,1), (1,1) all f32

    # Embedding lookups + concat — plain-JAX glue, fused by XLA with the pad /
    # bias-column write below so the bf16 activation crosses HBM once.
    embs = [jnp.take(tables[t], ids[t], axis=0) for t in range(14)]
    feat = jnp.concatenate(
        [embs[t] for t in _CONCAT_ORDER] + [price.astype(jnp.bfloat16)], axis=1)
    B, D = feat.shape
    F = w1.shape[1]

    # Feature axis: pad D -> D_pad (lane aligned); padded column D becomes a
    # constant 1.0 so fc1's bias folds into the matmul (w1p row D = b1).
    d_pad = _round_up(D + 1, 128)
    # Batch tile: large (HBM-bound kernel, amortize the ~0.35 us/step grid
    # overhead); multiple of 1024 so the lane-dense output block keeps an
    # (8,128)-aligned sublane dim. Padded rows are discarded after the kernel.
    tm = _round_up(min(block_rows, B), 1024)
    b_pad = _round_up(B, tm)

    x = jnp.pad(feat, ((0, b_pad - B), (0, d_pad - D)))
    x = x.at[:, D].set(jnp.asarray(1.0, x.dtype))            # bias column
    w1p = jnp.zeros((d_pad, F), jnp.float32)
    w1p = w1p.at[:D, :].set(w1).at[D, :].set(b1.reshape(F))
    w1p = w1p.astype(jnp.bfloat16)

    out = _mlp_pallas(x, w1p, w2.reshape(F), b2.reshape(1, 1),
                      block_rows=tm, lane_dense=lane_dense)
    if lane_dense:
        out = out.reshape(b_pad, 1)
    return out[:B]


def youtube_net_forward(tables, mlp_params, ids, price, *, block_rows=32768):
    """ids: list of 14 int32 (B,) arrays (same order as the tables);
    price: (B, 1) f32.  Returns (B, 1) f32 probabilities."""
    return _forward_impl(tables, mlp_params, ids, price,
                         block_rows=block_rows,
                         lane_dense=_lane_dense_supported())


# ----------------------------------- main ------------------------------------
if __name__ == "__main__":
    cfg = Config()
    key = jax.random.PRNGKey(0)
    pkey, dkey = jax.random.split(key)
    tables, mlp_params = init_params(pkey, cfg)

    B = 1500
    vocab_sizes = vocab_list(cfg)
    id_keys = jax.random.split(dkey, 15)
    ids = [
        jax.random.randint(id_keys[i], (B,), 0, v, dtype=jnp.int32)
        for i, v in enumerate(vocab_sizes)
    ]
    price = jax.random.uniform(id_keys[-1], (B, 1), jnp.float32)

    # Small block_rows so the test exercises a multi-step batch grid and the
    # ragged-tail padding path (B=1500 -> B_pad=2048, grid=(2,)); production
    # use keeps the default 32768-row tile.
    out = youtube_net_forward(tables, mlp_params, ids, price, block_rows=1024)
    out = jax.block_until_ready(out)

    # Pure-JAX f32 reference (same bf16 embedding tables, f32 math).
    embs = [jnp.take(tables[t].astype(jnp.float32), ids[t], axis=0)
            for t in range(14)]
    concat = jnp.concatenate([embs[t] for t in _CONCAT_ORDER] + [price], axis=1)
    w1, b1, w2, b2 = mlp_params
    ref = jax.nn.sigmoid(jnp.maximum(concat @ w1 + b1, 0.0) @ w2 + b2)

    assert out.shape == (B, 1), out.shape
    # bf16 activation/weight path vs f32 reference -> loosened tolerance.
    assert jnp.allclose(out, ref, atol=2e-2, rtol=2e-2), "mismatch vs reference"
    print("KERNEL_OK")
</pallas_src>

<mosaic_0001>
module attributes {stable_mosaic.version = 11 : i64} {
  func.func @_mlp_kernel_lane_dense(%arg0: i32, %arg1: memref<1024x128xbf16, #tpu.memory_space<vmem>>, %arg2: memref<128x32xbf16, #tpu.memory_space<vmem>>, %arg3: memref<32x1xf32, #tpu.memory_space<vmem>>, %arg4: memref<1x1xf32, #tpu.memory_space<smem>>, %arg5: memref<8x128xf32, #tpu.memory_space<vmem>>) attributes {dimension_semantics = [#tpu.dimension_semantics<parallel>], iteration_bounds = array<i64: 1>, scalar_prefetch = 0 : i64, scratch_operands = 0 : i64, tpu.core_type = #tpu.core_type<tc>, window_params = [{transform_indices = @transform_0, window_bounds = array<i64: 1024, 128>}, {pipeline_mode = #tpu.pipeline_mode<synchronous>, transform_indices = @transform_1, window_bounds = array<i64: 128, 32>}, {pipeline_mode = #tpu.pipeline_mode<synchronous>, transform_indices = @transform_2, window_bounds = array<i64: 32, 1>}, {transform_indices = @transform_3, window_bounds = array<i64: 1, 1>}, {transform_indices = @transform_4, window_bounds = array<i64: 8, 128>}]} {
    %c0 = arith.constant 0 : index
    %c0_0 = arith.constant 0 : index
    %0 = vector.load %arg1[%c0, %c0_0] : memref<1024x128xbf16, #tpu.memory_space<vmem>>, vector<1024x128xbf16>
    %c0_1 = arith.constant 0 : index
    %c0_2 = arith.constant 0 : index
    %1 = vector.load %arg2[%c0_1, %c0_2] : memref<128x32xbf16, #tpu.memory_space<vmem>>, vector<128x32xbf16>
    %cst = arith.constant dense<0.000000e+00> : vector<1024x32xf32>
    %2 = tpu.matmul %0, %1, %cst {dimension_numbers = #tpu.dot_dimension_numbers<[1], [0], [0], [1], [0, 0, 1, 1], [], []>} : vector<1024x128xbf16>, vector<128x32xbf16>, vector<1024x32xf32> -> vector<1024x32xf32>
    %cst_3 = arith.constant 0.000000e+00 : f32
    %3 = vector.broadcast %cst_3 : f32 to vector<1024x32xf32>
    %4 = arith.maximumf %2, %3 : vector<1024x32xf32>
    %c0_4 = arith.constant 0 : index
    %c0_5 = arith.constant 0 : index
    %5 = vector.load %arg3[%c0_4, %c0_5] : memref<32x1xf32, #tpu.memory_space<vmem>>, vector<32x1xf32>
    %cst_6 = arith.constant dense<0.000000e+00> : vector<1024x1xf32>
    %6 = tpu.matmul %4, %5, %cst_6 {dimension_numbers = #tpu.dot_dimension_numbers<[1], [0], [0], [1], [0, 0, 1, 1], [], []>} : vector<1024x32xf32>, vector<32x1xf32>, vector<1024x1xf32> -> vector<1024x1xf32>
    %7 = vector.shape_cast %6 : vector<1024x1xf32> to vector<8x128xf32>
    %c0_7 = arith.constant 0 : index
    %c0_8 = arith.constant 0 : index
    %8 = memref.load %arg4[%c0_7, %c0_8] : memref<1x1xf32, #tpu.memory_space<smem>>
    %9 = vector.broadcast %8 : f32 to vector<8x128xf32>
    %10 = arith.addf %7, %9 : vector<8x128xf32>
    %cst_9 = arith.constant 5.000000e-01 : f32
    %11 = vector.broadcast %cst_9 : f32 to vector<8x128xf32>
    %12 = arith.mulf %11, %10 : vector<8x128xf32>
    %13 = math.tanh %12 : vector<8x128xf32>
    %cst_10 = arith.constant 5.000000e-01 : f32
    %14 = vector.broadcast %cst_10 : f32 to vector<8x128xf32>
    %15 = arith.mulf %14, %13 : vector<8x128xf32>
    %cst_11 = arith.constant 5.000000e-01 : f32
    %16 = vector.broadcast %cst_11 : f32 to vector<8x128xf32>
    %17 = arith.addf %15, %16 : vector<8x128xf32>
    %c0_12 = arith.constant 0 : index
    %c0_13 = arith.constant 0 : index
    %18 = vector.load %arg5[%c0_12, %c0_13] : memref<8x128xf32, #tpu.memory_space<vmem>>, vector<8x128xf32>
    tpu.vector_store %arg5[%c0_12, %c0_13], %17 {strides = array<i32>} : memref<8x128xf32, #tpu.memory_space<vmem>>, vector<8x128xf32>,
    return
  }
  func.func @transform_0(%arg0: i32) -> (i32, i32) {
    %c0_i32 = arith.constant 0 : i32
    %c0_i32_0 = arith.constant 0 : i32
    return %arg0, %c0_i32 : i32, i32
  }
  func.func @transform_1(%arg0: i32) -> (i32, i32) {
    %c0_i32 = arith.constant 0 : i32
    %c0_i32_0 = arith.constant 0 : i32
    %c0_i32_1 = arith.constant 0 : i32
    return %c0_i32, %c0_i32_0 : i32, i32
  }
  func.func @transform_2(%arg0: i32) -> (i32, i32) {
    %c0_i32 = arith.constant 0 : i32
    %c0_i32_0 = arith.constant 0 : i32
    %c0_i32_1 = arith.constant 0 : i32
    return %c0_i32, %c0_i32_0 : i32, i32
  }
  func.func @transform_3(%arg0: i32) -> (i32, i32) {
    %c0_i32 = arith.constant 0 : i32
    %c0_i32_0 = arith.constant 0 : i32
    %c0_i32_1 = arith.constant 0 : i32
    return %c0_i32, %c0_i32_0 : i32, i32
  }
  func.func @transform_4(%arg0: i32) -> (i32, i32) {
    %c0_i32 = arith.constant 0 : i32
    %c0_i32_0 = arith.constant 0 : i32
    return %arg0, %c0_i32 : i32, i32
  }
}

module attributes {stable_mosaic.version = 11 : i64} {
  func.func @_mlp_kernel_rowcol(%arg0: i32, %arg1: memref<1024x128xbf16, #tpu.memory_space<vmem>>, %arg2: memref<128x32xbf16, #tpu.memory_space<vmem>>, %arg3: memref<1x32xf32, #tpu.memory_space<vmem>>, %arg4: memref<1x1xf32, #tpu.memory_space<smem>>, %arg5: memref<1024x1xf32, #tpu.memory_space<vmem>>) attributes {dimension_semantics = [#tpu.dimension_semantics<parallel>], iteration_bounds = array<i64: 2>, scalar_prefetch = 0 : i64, scratch_operands = 0 : i64, tpu.core_type = #tpu.core_type<tc>, window_params = [{transform_indices = @transform_0, window_bounds = array<i64: 1024, 128>}, {pipeline_mode = #tpu.pipeline_mode<synchronous>, transform_indices = @transform_1, window_bounds = array<i64: 128, 32>}, {pipeline_mode = #tpu.pipeline_mode<synchronous>, transform_indices = @transform_2, window_bounds = array<i64: 1, 32>}, {transform_indices = @transform_3, window_bounds = array<i64: 1, 1>}, {transform_indices = @transform_4, window_bounds = array<i64: 1024, 1>}]} {
    %c0 = arith.constant 0 : index
    %c0_0 = arith.constant 0 : index
    %0 = vector.load %arg1[%c0, %c0_0] : memref<1024x128xbf16, #tpu.memory_space<vmem>>, vector<1024x128xbf16>
    %c0_1 = arith.constant 0 : index
    %c0_2 = arith.constant 0 : index
    %1 = vector.load %arg2[%c0_1, %c0_2] : memref<128x32xbf16, #tpu.memory_space<vmem>>, vector<128x32xbf16>
    %cst = arith.constant dense<0.000000e+00> : vector<1024x32xf32>
    %2 = tpu.matmul %0, %1, %cst {dimension_numbers = #tpu.dot_dimension_numbers<[1], [0], [0], [1], [0, 0, 1, 1], [], []>} : vector<1024x128xbf16>, vector<128x32xbf16>, vector<1024x32xf32> -> vector<1024x32xf32>
    %cst_3 = arith.constant 0.000000e+00 : f32
    %3 = vector.broadcast %cst_3 : f32 to vector<1024x32xf32>
    %4 = arith.maximumf %2, %3 : vector<1024x32xf32>
    %c0_4 = arith.constant 0 : index
    %c0_5 = arith.constant 0 : index
    %5 = vector.load %arg3[%c0_4, %c0_5] : memref<1x32xf32, #tpu.memory_space<vmem>>, vector<1x32xf32>
    %6 = vector.broadcast %5 : vector<1x32xf32> to vector<1024x32xf32>
    %7 = arith.mulf %4, %6 : vector<1024x32xf32>
    %cst_6 = arith.constant dense<0.000000e+00> : vector<1024xf32>
    %8 = vector.multi_reduction <add>, %7, %cst_6 [1] : vector<1024x32xf32> to vector<1024xf32>
    %9 = vector.shape_cast %8 : vector<1024xf32> to vector<1024x1xf32>
    %c0_7 = arith.constant 0 : index
    %c0_8 = arith.constant 0 : index
    %10 = memref.load %arg4[%c0_7, %c0_8] : memref<1x1xf32, #tpu.memory_space<smem>>
    %11 = vector.broadcast %10 : f32 to vector<1024x1xf32>
    %12 = arith.addf %9, %11 : vector<1024x1xf32>
    %cst_9 = arith.constant 5.000000e-01 : f32
    %13 = vector.broadcast %cst_9 : f32 to vector<1024x1xf32>
    %14 = arith.mulf %13, %12 : vector<1024x1xf32>
    %15 = math.tanh %14 : vector<1024x1xf32>
    %cst_10 = arith.constant 5.000000e-01 : f32
    %16 = vector.broadcast %cst_10 : f32 to vector<1024x1xf32>
    %17 = arith.mulf %16, %15 : vector<1024x1xf32>
    %cst_11 = arith.constant 5.000000e-01 : f32
    %18 = vector.broadcast %cst_11 : f32 to vector<1024x1xf32>
    %19 = arith.addf %17, %18 : vector<1024x1xf32>
    %c0_12 = arith.constant 0 : index
    %c0_13 = arith.constant 0 : index
    %20 = vector.load %arg5[%c0_12, %c0_13] : memref<1024x1xf32, #tpu.memory_space<vmem>>, vector<1024x1xf32>
    tpu.vector_store %arg5[%c0_12, %c0_13], %19 {strides = array<i32>} : memref<1024x1xf32, #tpu.memory_space<vmem>>, vector<1024x1xf32>,
    return
  }
  func.func @transform_0(%arg0: i32) -> (i32, i32) {
    %c0_i32 = arith.constant 0 : i32
    %c0_i32_0 = arith.constant 0 : i32
    return %arg0, %c0_i32 : i32, i32
  }
  func.func @transform_1(%arg0: i32) -> (i32, i32) {
    %c0_i32 = arith.constant 0 : i32
    %c0_i32_0 = arith.constant 0 : i32
    %c0_i32_1 = arith.constant 0 : i32
    return %c0_i32, %c0_i32_0 : i32, i32
  }
  func.func @transform_2(%arg0: i32) -> (i32, i32) {
    %c0_i32 = arith.constant 0 : i32
    %c0_i32_0 = arith.constant 0 : i32
    %c0_i32_1 = arith.constant 0 : i32
    return %c0_i32, %c0_i32_0 : i32, i32
  }
  func.func @transform_3(%arg0: i32) -> (i32, i32) {
    %c0_i32 = arith.constant 0 : i32
    %c0_i32_0 = arith.constant 0 : i32
    %c0_i32_1 = arith.constant 0 : i32
    return %c0_i32, %c0_i32_0 : i32, i32
  }
  func.func @transform_4(%arg0: i32) -> (i32, i32) {
    %c0_i32 = arith.constant 0 : i32
    %c0_i32_0 = arith.constant 0 : i32
    return %arg0, %c0_i32 : i32, i32
  }
}

</mosaic_0001>

<bundles_post_ra>
// kernel: tpu_custom_call.1
= control target key start
LH: loop header
LB: loop body
LE: loop exit
PB: predicated region body
PF: predicated region fallthrough
CT: control target
= control target key end

     0   :  { %10 = vsyncpa [#allocation4], 0  ;;  %s6106_s0 = inlined_call_operand.hbm [shape: bf16[1024,128], index: 0, kind: input, shape index: {}]   ;;  %s6107_s1 = inlined_call_operand.vmem [shape: bf16[128,32], index: 1, kind: input, shape index: {}]   ;;  %s6108_s2 = inlined_call_operand.vmem [shape: f32[32,1], index: 2, kind: input, shape index: {}]   ;;  %s6109_s3 = inlined_call_operand.<no memory space> [shape: f32[1,1], index: 3, kind: input, shape index: {}]   ;;  %s6110_s4 = inlined_call_operand.hbm [shape: f32[8,128], index: 4, kind: output, shape index: {}]  }
   0x1   :  { %11 = vsyncpa [#allocation5], 0  ;;  %s5365_s15 = smov [#allocation3]   ;;  %s5317_s19 = scalar_lea.hbm %s6106_s0, 8192 }
   0x2   :  { %s17_s16 = sshll.u32 %s5365_s15, 4  ;;  %p5318_p0 = scmp.ne.s32.totalorder %s6106_s0, %s5317_s19  ;;  %s18_s16 = int_to_ptr.vmem [resolvable:$true] %s17_s16 }
   0x3   :  { %p5321_p1 = scmp.lt.u32.totalorder %s5317_s19, %s6106_s0 }
   0x5   :  { %p5323_p2 = pnand %p5321_p1, %p5318_p0 }
   0x7   :  { %5326 = shalt.err (!%p5323_p2)
}
   0x8   :  { %s5327_s24 = scalar_lea.vmem %s18_s16, 8192  ;;  %p5332_p4 = scmp.lt.s32.totalorder %s18_s16, %s18_s16 }
   0x9   :  { %p5328_p3 = scmp.ne.s32.totalorder %s18_s16, %s5327_s24  ;;  %p5333_p5 = scmp.lt.s32.totalorder %s5327_s24, %s5327_s24 }
   0xb   :  { %p5334_p6 = por %p5333_p5, %p5332_p4 }
   0xd   :  { %p5335_p7 = pnand %p5334_p6, %p5328_p3 }
   0xf   :  { %5338 = shalt.err (!%p5335_p7)
}
  0x10   :  { %s5366_s25 = smov 64   ;;  %s5367_s26 = smov 4  }
  0x11   :  { %23 = dma.hbm_to_vmem [thread:$0]  %s6106_s0, 8192, %s18_s16, [#allocation4], %s5366_s25, %s5366_s25, %s5367_s26  }
  0x12   :  { %5361 = dma.done.wait [#allocation4], 8192  }
  0x13   :  { %5362 = vsyncadd [#allocation4], 4294959104  ;;  %v4989_v0 = vld [vmem:[%s6107_s1] sm:$0xff]   ;;  %v4990_v1 = vld [vmem:[%s6107_s1 + $0x8] sm:$0xff]   ;;  %vm1287_vm0 = vcmask 261120   ;;  %vm3542_vm1 = vcmask 130112  }
  0x14   :  { %4630 = vmatprep.subr.bf16.mxu0 %v4989_v0  ;;  %v4991_v2 = vld [vmem:[%s6107_s1 + $0x10] sm:$0xff]   ;;  %v4992_v3 = vld [vmem:[%s6107_s1 + $0x18] sm:$0xff]   ;;  %v4997_v4 = vld [vmem:[#allocation3] sm:$0xff]   ;;  %vm3549_vm2 = vcmask 195712   ;;  %vm3556_vm3 = vcmask 261312   ;;  %vm3563_vm4 = vcmask 326912  }
  0x15   :  { %4631 = vmatpush3.bf16.msra.mxu0 %v4989_v0  ;;  %4646 = vmatprep.mubr.bf16.mxu0 %v4997_v4  ;;  %v4993_v5 = vld [vmem:[%s6107_s1 + $0x20] sm:$0xff]   ;;  %v4994_v6 = vld [vmem:[%s6107_s1 + $0x28] sm:$0xff]   ;;  %v4995_v7 = vld [vmem:[%s6107_s1 + $0x30] sm:$0xff]   ;;  %vm3570_vm5 = vcmask 392512   ;;  %vm3577_vm6 = vcmask 458112   ;;  %vm3584_vm7 = vcmask 523712  }
  0x16   :  { %4632 = vmatprep.subr.bf16.mxu0 %v4990_v1  ;;  %v4996_v8 = vld [vmem:[%s6107_s1 + $0x38] sm:$0xff]   ;;  %v4998_v9 = vld [vmem:[#allocation3 + $0x8] sm:$0xff]   ;;  %v4999_v10 = vld [vmem:[#allocation3 + $0x10] sm:$0xff]   ;;  %vm6111_vm8 = vcmask 589312   ;;  %vm3598_vm9 = vcmask 654912   ;;  %vm3605_vm10 = vcmask 720512  }
  0x17   :  { %v5000_v11 = vld [vmem:[#allocation3 + $0x18] sm:$0xff]   ;;  %v5001_v12 = vld [vmem:[#allocation3 + $0x20] sm:$0xff]   ;;  %v5002_v13 = vld [vmem:[#allocation3 + $0x28] sm:$0xff]   ;;  %vm3612_vm11 = vcmask 786112   ;;  %vm3619_vm12 = vcmask 851712   ;;  %vm3626_vm13 = vcmask 917312  }
  0x18   :  { %v5003_v14 = vld [vmem:[#allocation3 + $0x30] sm:$0xff]   ;;  %v5004_v15 = vld [vmem:[#allocation3 + $0x38] sm:$0xff]   ;;  %v5005_v16 = vld [vmem:[#allocation3 + $0x40] sm:$0xff]   ;;  %vm3633_vm14 = vcmask 982912   ;;  %vm3640_vm15 = vcmask 1048512  }
  0x19   :  { %4633 = vmatpush3.bf16.msra.mxu0 %v4990_v1  ;;  %v5006_v17 = vld [vmem:[#allocation3 + $0x48] sm:$0xff]   ;;  %v5007_v18 = vld [vmem:[#allocation3 + $0x50] sm:$0xff]   ;;  %v5008_v19 = vld [vmem:[#allocation3 + $0x58] sm:$0xff]  }
  0x1a   :  { %4634 = vmatprep.subr.bf16.mxu0 %v4991_v2  ;;  %v5009_v20 = vld [vmem:[#allocation3 + $0x60] sm:$0xff]   ;;  %v5010_v21 = vld [vmem:[#allocation3 + $0x68] sm:$0xff]   ;;  %v5011_v22 = vld [vmem:[#allocation3 + $0x70] sm:$0xff]  }
  0x1b   :  { %v5012_v23 = vld [vmem:[#allocation3 + $0x78] sm:$0xff]   ;;  %v5013_v24 = vld [vmem:[#allocation3 + $0x80] sm:$0xff]   ;;  %v5014_v25 = vld [vmem:[#allocation3 + $0x88] sm:$0xff]  }
  0x1c   :  { %v5015_v26 = vld [vmem:[#allocation3 + $0x90] sm:$0xff]   ;;  %v5016_v27 = vld [vmem:[#allocation3 + $0x98] sm:$0xff]   ;;  %v5017_v28 = vld [vmem:[#allocation3 + $0xa0] sm:$0xff]  }
  0x1d   :  { %4635 = vmatpush3.bf16.msra.mxu0 %v4991_v2  ;;  %v5018_v29 = vld [vmem:[#allocation3 + $0xa8] sm:$0xff]   ;;  %v5019_v30 = vld [vmem:[#allocation3 + $0xb0] sm:$0xff]   ;;  %v1283_v31 = vld [vmem:[%s6108_s2] sm:$0xff] }
  0x1e   :  { %4636 = vmatprep.subr.bf16.mxu0 %v4992_v3  ;;  %v1284_v32 = vld [vmem:[%s6108_s2 + $0x8] sm:$0xff]  ;;  %v1285_v34 = vld [vmem:[%s6108_s2 + $0x10] sm:$0xff]  ;;  %v1286_v35 = vld [vmem:[%s6108_s2 + $0x18] sm:$0xff] }
  0x1f   :  { %v4974_v33 = vpack.c.bf16 %v1284_v32, %v1283_v31  ;;  %v4978_v36 = vpack.c.bf16 %v1286_v35, %v1285_v34  ;;  %v5020_v37 = vld [vmem:[#allocation3 + $0xb8] sm:$0xff]   ;;  %v5021_v38 = vld [vmem:[#allocation3 + $0xc0] sm:$0xff]   ;;  %v5022_v39 = vld [vmem:[#allocation3 + $0xc8] sm:$0xff]  }
  0x20   :  { %v5023_v40 = vld [vmem:[#allocation3 + $0xd0] sm:$0xff]   ;;  %v5024_v41 = vld [vmem:[#allocation3 + $0xd8] sm:$0xff]   ;;  %v5025_v42 = vld [vmem:[#allocation3 + $0xe0] sm:$0xff]  }
  0x21   :  { %4637 = vmatpush3.bf16.msra.mxu0 %v4992_v3  ;;  %4975 = vmatprep.subr.bf16.mxu1 %v4974_v33  ;;  %v5026_v43 = vld [vmem:[#allocation3 + $0xe8] sm:$0xff]   ;;  %v5027_v44 = vld [vmem:[#allocation3 + $0xf0] sm:$0xff]   ;;  %v5028_v45 = vld [vmem:[#allocation3 + $0xf8] sm:$0xff]  }
  0x22   :  { %4638 = vmatprep.subr.bf16.mxu0 %v4993_v5  ;;  %4977 = vmatpush3.bf16.msra.mxu1 %v4974_v33  ;;  %v5029_v46 = vld [vmem:[#allocation3 + $0x100] sm:$0xff]   ;;  %v5030_v47 = vld [vmem:[#allocation3 + $0x108] sm:$0xff]   ;;  %v5031_v48 = vld [vmem:[#allocation3 + $0x110] sm:$0xff]  }
  0x23   :  { %4979 = vmatprep.subr.bf16.mxu1 %v4978_v36  ;;  %v5032_v49 = vld [vmem:[#allocation3 + $0x118] sm:$0xff]   ;;  %v5033_v50 = vld [vmem:[#allocation3 + $0x120] sm:$0xff]   ;;  %v5034_v51 = vld [vmem:[#allocation3 + $0x128] sm:$0xff]  }
  0x24   :  { %v5035_v52 = vld [vmem:[#allocation3 + $0x130] sm:$0xff]   ;;  %v5036_v53 = vld [vmem:[#allocation3 + $0x138] sm:$0xff]   ;;  %v5037_v54 = vld [vmem:[#allocation3 + $0x140] sm:$0xff]  }
  0x25   :  { %4639 = vmatpush3.bf16.msra.mxu0 %v4993_v5  ;;  %v5038_v55 = vld [vmem:[#allocation3 + $0x148] sm:$0xff]   ;;  %v5039_v56 = vld [vmem:[#allocation3 + $0x150] sm:$0xff]   ;;  %v5040_v57 = vld [vmem:[#allocation3 + $0x158] sm:$0xff]  }
  0x26   :  { %4640 = vmatprep.subr.bf16.mxu0 %v4994_v6  ;;  %4981 = vmatpush3.bf16.msra.mxu1 %v4978_v36  ;;  %v5041_v58 = vld [vmem:[#allocation3 + $0x160] sm:$0xff]   ;;  %v5042_v59 = vld [vmem:[#allocation3 + $0x168] sm:$0xff]   ;;  %v5043_v60 = vld [vmem:[#allocation3 + $0x170] sm:$0xff]  }
  0x27   :  { %v5044_v61 = vld [vmem:[#allocation3 + $0x178] sm:$0xff]   ;;  %v5045_v62 = vld [vmem:[#allocation3 + $0x180] sm:$0xff]   ;;  %v5046_v63 = vld [vmem:[#allocation3 + $0x188] sm:$0xff]  }
  0x28   :  { %v5047_v0 = vld [vmem:[#allocation3 + $0x190] sm:$0xff]   ;;  %v5048_v1 = vld [vmem:[#allocation3 + $0x198] sm:$0xff]   ;;  %v5049_v2 = vld [vmem:[#allocation3 + $0x1a0] sm:$0xff]  }
  0x29   :  { %4641 = vmatpush3.bf16.msra.mxu0 %v4994_v6  ;;  %v5050_v3 = vld [vmem:[#allocation3 + $0x1a8] sm:$0xff]   ;;  %v5051_v4 = vld [vmem:[#allocation3 + $0x1b0] sm:$0xff]  }
  0x2a   :  { %4642 = vmatprep.subr.bf16.mxu0 %v4995_v7 }
  0x2d   :  { %4643 = vmatpush3.bf16.msra.mxu0 %v4995_v7  ;;  %v5052_v7 = vld [vmem:[#allocation3 + $0x1b8] sm:$0xff]  }
  0x2e   :  { %4644 = vmatprep.subr.bf16.mxu0 %v4996_v8 }
  0x31   :  { %4645 = vmatpush3.bf16.msra.mxu0 %v4996_v8 }
  0x34   :  { %4647 = vmatmul.mubr.bf16.vlgmr.msra.gmra.mrb[0].mxu0 %v4998_v9 }
  0x35   :  { %4650 = vmatprep.mubr.bf16.mxu0 %v4999_v10  ;;  %v5053_v10 = vld [vmem:[#allocation3 + $0x1c0] sm:$0xff]  }
  0x3c   :  { %4651 = vmatmul.mubr.bf16.gmra.mrb[4].mxu0 %v5000_v11 }
  0x3d   :  { %4654 = vmatprep.mubr.bf16.mxu0 %v5001_v12 }
  0x44   :  { %4655 = vmatmul.mubr.bf16.gmra.mrb[8].mxu0 %v5002_v13 }
  0x45   :  { %4658 = vmatprep.mubr.bf16.mxu0 %v5003_v14 }
  0x4c   :  { %4659 = vmatmul.mubr.bf16.gmra.mrb[12].mxu0 %v5004_v15 }
  0x4d   :  { %4662 = vmatprep.mubr.bf16.mxu0 %v5005_v16 }
  0x54   :  { %4663 = vmatmul.mubr.bf16.gmra.mrb[16].mxu0 %v5006_v17  ;;  %v5054_v17 = vld [vmem:[#allocation3 + $0x1c8] sm:$0xff]  }
  0x55   :  { %4666 = vmatprep.mubr.bf16.mxu0 %v5007_v18 }
  0x5c   :  { %4667 = vmatmul.mubr.bf16.gmra.mrb[20].mxu0 %v5008_v19 }
  0x5d   :  { %4670 = vmatprep.mubr.bf16.mxu0 %v5009_v20  ;;  %v5055_v20 = vld [vmem:[#allocation3 + $0x1d0] sm:$0xff]  }
  0x64   :  { %4671 = vmatmul.mubr.bf16.gmra.mrb[24].mxu0 %v5010_v21 }
  0x65   :  { %4674 = vmatprep.mubr.bf16.mxu0 %v5011_v22 }
  0x6c   :  { %4675 = vmatmul.mubr.bf16.gmra.mrb[28].mxu0 %v5012_v23 }
  0x6d   :  { %4678 = vmatprep.mubr.bf16.mxu0 %v5013_v24 }
  0x74   :  { %4679 = vmatmul.mubr.bf16.gmra.mrb[32].mxu0 %v5014_v25 }
  0x75   :  { %4682 = vmatprep.mubr.bf16.mxu0 %v5015_v26 }
  0x7c   :  { %4683 = vmatmul.mubr.bf16.gmra.mrb[36].mxu0 %v5016_v27  ;;  %v5056_v27 = vld [vmem:[#allocation3 + $0x1d8] sm:$0xff]  }
  0x7d   :  { %4686 = vmatprep.mubr.bf16.mxu0 %v5017_v28 }
  0x84   :  { %4687 = vmatmul.mubr.bf16.gmra.mrb[40].mxu0 %v5018_v29 }
  0x85   :  { %4690 = vmatprep.mubr.bf16.mxu0 %v5019_v30  ;;  %v5057_v30 = vld [vmem:[#allocation3 + $0x1e0] sm:$0xff]  }
  0x8c   :  { %4691 = vmatmul.mubr.bf16.gmra.mrb[44].mxu0 %v5020_v37  ;;  %v5058_v37 = vld [vmem:[#allocation3 + $0x1e8] sm:$0xff]  }
  0x8d   :  { %4694 = vmatprep.mubr.bf16.mxu0 %v5021_v38 }
  0x94   :  { %4695 = vmatmul.mubr.bf16.gmra.mrb[48].mxu0 %v5022_v39 }
  0x95   :  { %4698 = vmatprep.mubr.bf16.mxu0 %v5023_v40  ;;  %v5059_v40 = vld [vmem:[#allocation3 + $0x1f0] sm:$0xff]  }
  0x9c   :  { %4699 = vmatmul.mubr.bf16.gmra.mrb[52].mxu0 %v5024_v41 }
  0x9d   :  { %4702 = vmatprep.mubr.bf16.mxu0 %v5025_v42 }
  0xa4   :  { %4703 = vmatmul.mubr.bf16.gmra.mrb[56].mxu0 %v5026_v43 }
  0xa5   :  { %4706 = vmatprep.mubr.bf16.mxu0 %v5027_v44 }
  0xac   :  { %4707 = vmatmul.mubr.bf16.gmra.mrb[60].mxu0 %v5028_v45 }
  0xad   :  { %4710 = vmatprep.mubr.bf16.mxu0 %v5029_v46 }
  0xb4   :  { %4711 = vmatmul.mubr.bf16.gmra.mrb[64].mxu0 %v5030_v47  ;;  %v5060_v47 = vld [vmem:[#allocation3 + $0x1f8] sm:$0xff]  }
  0xb5   :  { %4714 = vmatprep.mubr.bf16.mxu0 %v5031_v48 }
  0xbc   :  { %4715 = vmatmul.mubr.bf16.gmra.mrb[68].mxu0 %v5032_v49 }
  0xbd   :  { %4718 = vmatprep.mubr.bf16.mxu0 %v5033_v50 }
  0xc4   :  { %4719 = vmatmul.mubr.bf16.gmra.mrb[72].mxu0 %v5034_v51 }
  0xc5   :  { %4722 = vmatprep.mubr.bf16.mxu0 %v5035_v52 }
  0xcc   :  { %4723 = vmatmul.mubr.bf16.gmra.mrb[76].mxu0 %v5036_v53 }
  0xcd   :  { %4726 = vmatprep.mubr.bf16.mxu0 %v5037_v54 }
  0xd4   :  { %4727 = vmatmul.mubr.bf16.gmra.mrb[80].mxu0 %v5038_v55 }
  0xd5   :  { %4730 = vmatprep.mubr.bf16.mxu0 %v5039_v56 }
  0xdc   :  { %4731 = vmatmul.mubr.bf16.gmra.mrb[84].mxu0 %v5040_v57 }
  0xdd   :  { %4734 = vmatprep.mubr.bf16.mxu0 %v5041_v58 }
  0xe4   :  { %4735 = vmatmul.mubr.bf16.gmra.mrb[88].mxu0 %v5042_v59 }
  0xe5   :  { %4738 = vmatprep.mubr.bf16.mxu0 %v5043_v60 }
  0xec   :  { %4739 = vmatmul.mubr.bf16.gmra.mrb[92].mxu0 %v5044_v61 }
  0xed   :  { %4742 = vmatprep.mubr.bf16.mxu0 %v5045_v62 }
  0xf4   :  { %4743 = vmatmul.mubr.bf16.gmra.mrb[96].mxu0 %v5046_v63 }
  0xf5   :  { %4746 = vmatprep.mubr.bf16.mxu0 %v5047_v0 }
  0xfc   :  { %4747 = vmatmul.mubr.bf16.gmra.mrb[100].mxu0 %v5048_v1 }
  0xfd   :  { %4750 = vmatprep.mubr.bf16.mxu0 %v5049_v2 }
 0x104   :  { %4751 = vmatmul.mubr.bf16.gmra.mrb[104].mxu0 %v5050_v3 }
 0x105   :  { %4754 = vmatprep.mubr.bf16.mxu0 %v5051_v4 }
 0x107   :  { %v4648_v5 = vpop.f32.mrb[0].mxu0 }
 0x108   :  { %v644_v6 = vpop.f32.mrb[1].mxu0  ;;  %v1157_v13 = vmax.f32 %v4648_v5, 0.0 }
 0x109   :  { %v1155_v8 = vmax.f32 %v644_v6, 0.0  ;;  %v4649_v9 = vpop.f32.mrb[2].mxu0 }
 0x10a   :  { %v647_v11 = vpop.f32.mrb[3].mxu0  ;;  %v1158_v14 = vmax.f32 %v4649_v9, 0.0 }
 0x10b   :  { %v1156_v12 = vmax.f32 %v647_v11, 0.0  ;;  %4782 = vmatprep.mubr.msk.f32.mxu1 %vm1287_vm0, %v1155_v8 }
 0x10c   :  { %4755 = vmatmul.mubr.bf16.gmra.mrb[108].mxu0 %v5052_v7 }
 0x10d   :  { %4783 = vmatmul.mubr.msk.f32.vlgmr.msra.gmra.mrb[0].mxu1 %vm1287_vm0, %v1156_v12  ;;  %4758 = vmatprep.mubr.bf16.mxu0 %v5053_v10 }
 0x10e   :  { %4785 = vmatprep.mubr.msk.f32.mxu1 %vm1287_vm0, %v1157_v13 }
 0x10f   :  { %v4652_v15 = vpop.f32.mrb[4].mxu0 }
 0x110   :  { %v660_v16 = vpop.f32.mrb[5].mxu0  ;;  %v1161_v23 = vmax.f32 %v4652_v15, 0.0 }
 0x111   :  { %v1159_v18 = vmax.f32 %v660_v16, 0.0  ;;  %v4653_v19 = vpop.f32.mrb[6].mxu0  ;;  %4786 = vmatmul.mubr.msk.f32.gmra.mrb[2].mxu1 %vm1287_vm0, %v1158_v14 }
 0x112   :  { %v663_v21 = vpop.f32.mrb[7].mxu0  ;;  %v1162_v24 = vmax.f32 %v4653_v19, 0.0 }
 0x113   :  { %v1160_v22 = vmax.f32 %v663_v21, 0.0  ;;  %4788 = vmatprep.mubr.msk.f32.mxu1 %vm1287_vm0, %v1159_v18 }
 0x114   :  { %4759 = vmatmul.mubr.bf16.gmra.mrb[112].mxu0 %v5054_v17 }
 0x115   :  { %4789 = vmatmul.mubr.msk.f32.gmra.mrb[4].mxu1 %vm1287_vm0, %v1160_v22  ;;  %4762 = vmatprep.mubr.bf16.mxu0 %v5055_v20 }
 0x116   :  { %4791 = vmatprep.mubr.msk.f32.mxu1 %vm1287_vm0, %v1161_v23 }
 0x117   :  { %v4656_v25 = vpop.f32.mrb[8].mxu0 }
 0x118   :  { %v676_v26 = vpop.f32.mrb[9].mxu0  ;;  %v1165_v33 = vmax.f32 %v4656_v25, 0.0 }
 0x119   :  { %v1163_v28 = vmax.f32 %v676_v26, 0.0  ;;  %v4657_v29 = vpop.f32.mrb[10].mxu0  ;;  %4792 = vmatmul.mubr.msk.f32.gmra.mrb[6].mxu1 %vm1287_vm0, %v1162_v24 }
 0x11a   :  { %v679_v31 = vpop.f32.mrb[11].mxu0  ;;  %v1166_v34 = vmax.f32 %v4657_v29, 0.0 }
 0x11b   :  { %v1164_v32 = vmax.f32 %v679_v31, 0.0  ;;  %4794 = vmatprep.mubr.msk.f32.mxu1 %vm1287_vm0, %v1163_v28 }
 0x11c   :  { %4763 = vmatmul.mubr.bf16.gmra.mrb[116].mxu0 %v5056_v27 }
 0x11d   :  { %4795 = vmatmul.mubr.msk.f32.gmra.mrb[8].mxu1 %vm1287_vm0, %v1164_v32  ;;  %4766 = vmatprep.mubr.bf16.mxu0 %v5057_v30 }
 0x11e   :  { %4797 = vmatprep.mubr.msk.f32.mxu1 %vm1287_vm0, %v1165_v33 }
 0x11f   :  { %v4660_v35 = vpop.f32.mrb[12].mxu0 }
 0x120   :  { %v692_v36 = vpop.f32.mrb[13].mxu0  ;;  %v1169_v43 = vmax.f32 %v4660_v35, 0.0 }
 0x121   :  { %v1167_v38 = vmax.f32 %v692_v36, 0.0  ;;  %v4661_v39 = vpop.f32.mrb[14].mxu0  ;;  %4798 = vmatmul.mubr.msk.f32.gmra.mrb[10].mxu1 %vm1287_vm0, %v1166_v34 }
 0x122   :  { %v695_v41 = vpop.f32.mrb[15].mxu0  ;;  %v1170_v44 = vmax.f32 %v4661_v39, 0.0 }
 0x123   :  { %v1168_v42 = vmax.f32 %v695_v41, 0.0  ;;  %4800 = vmatprep.mubr.msk.f32.mxu1 %vm1287_vm0, %v1167_v38 }
 0x124   :  { %4767 = vmatmul.mubr.bf16.gmra.mrb[120].mxu0 %v5058_v37 }
 0x125   :  { %4801 = vmatmul.mubr.msk.f32.gmra.mrb[12].mxu1 %vm1287_vm0, %v1168_v42  ;;  %4770 = vmatprep.mubr.bf16.mxu0 %v5059_v40 }
 0x126   :  { %4803 = vmatprep.mubr.msk.f32.mxu1 %vm1287_vm0, %v1169_v43 }
 0x127   :  { %v4664_v45 = vpop.f32.mrb[16].mxu0 }
 0x128   :  { %v708_v46 = vpop.f32.mrb[17].mxu0  ;;  %v1173_v52 = vmax.f32 %v4664_v45, 0.0 }
 0x129   :  { %v1171_v48 = vmax.f32 %v708_v46, 0.0  ;;  %v4665_v49 = vpop.f32.mrb[18].mxu0  ;;  %4804 = vmatmul.mubr.msk.f32.gmra.mrb[14].mxu1 %vm1287_vm0, %v1170_v44 }
 0x12a   :  { %v711_v50 = vpop.f32.mrb[19].mxu0  ;;  %v1174_v53 = vmax.f32 %v4665_v49, 0.0 }
 0x12b   :  { %v1172_v51 = vmax.f32 %v711_v50, 0.0  ;;  %4806 = vmatprep.mubr.msk.f32.mxu1 %vm1287_vm0, %v1171_v48 }
 0x12c   :  { %4771 = vmatmul.mubr.bf16.gmra.mrb[124].mxu0 %v5060_v47 }
 0x12d   :  { %4807 = vmatmul.mubr.msk.f32.gmra.mrb[16].mxu1 %vm1287_vm0, %v1172_v51 }
 0x12e   :  { %4809 = vmatprep.mubr.msk.f32.mxu1 %vm1287_vm0, %v1173_v52 }
 0x12f   :  { %v4668_v54 = vpop.f32.mrb[20].mxu0 }
 0x130   :  { %v724_v55 = vpop.f32.mrb[21].mxu0  ;;  %v1177_v60 = vmax.f32 %v4668_v54, 0.0 }
 0x131   :  { %v1175_v56 = vmax.f32 %v724_v55, 0.0  ;;  %v4669_v57 = vpop.f32.mrb[22].mxu0  ;;  %4810 = vmatmul.mubr.msk.f32.gmra.mrb[18].mxu1 %vm1287_vm0, %v1174_v53 }
 0x132   :  { %v727_v58 = vpop.f32.mrb[23].mxu0  ;;  %v1178_v61 = vmax.f32 %v4669_v57, 0.0 }
 0x133   :  { %v1176_v59 = vmax.f32 %v727_v58, 0.0  ;;  %4812 = vmatprep.mubr.msk.f32.mxu1 %vm1287_vm0, %v1175_v56 }
 0x135   :  { %4813 = vmatmul.mubr.msk.f32.gmra.mrb[20].mxu1 %vm1287_vm0, %v1176_v59 }
 0x136   :  { %4815 = vmatprep.mubr.msk.f32.mxu1 %vm1287_vm0, %v1177_v60  ;;  %v5368_v60 = vmov 0  }
 0x137   :  { %v4672_v62 = vpop.f32.mrb[24].mxu0  ;;  %4987 = vset.pattern.permute.xlu0 %v5368_v60  ;;  %4988 = vset.pattern.permute.xlu1 %v5368_v60 }
 0x138   :  { %v740_v63 = vpop.f32.mrb[25].mxu0  ;;  %v1181_v4 = vmax.f32 %v4672_v62, 0.0 }
 0x139   :  { %v1179_v0 = vmax.f32 %v740_v63, 0.0  ;;  %v4673_v1 = vpop.f32.mrb[26].mxu0  ;;  %4816 = vmatmul.mubr.msk.f32.gmra.mrb[22].mxu1 %vm1287_vm0, %v1178_v61 }
 0x13a   :  { %v743_v2 = vpop.f32.mrb[27].mxu0  ;;  %v1182_v5 = vmax.f32 %v4673_v1, 0.0 }
 0x13b   :  { %v1180_v3 = vmax.f32 %v743_v2, 0.0  ;;  %4818 = vmatprep.mubr.msk.f32.mxu1 %vm1287_vm0, %v1179_v0 }
 0x13d   :  { %4819 = vmatmul.mubr.msk.f32.gmra.mrb[24].mxu1 %vm1287_vm0, %v1180_v3 }
 0x13e   :  { %4821 = vmatprep.mubr.msk.f32.mxu1 %vm1287_vm0, %v1181_v4 }
 0x13f   :  { %v4676_v6 = vpop.f32.mrb[28].mxu0 }
 0x140   :  { %v756_v7 = vpop.f32.mrb[29].mxu0  ;;  %v1185_v12 = vmax.f32 %v4676_v6, 0.0 }
 0x141   :  { %v1183_v8 = vmax.f32 %v756_v7, 0.0  ;;  %v4677_v9 = vpop.f32.mrb[30].mxu0  ;;  %4822 = vmatmul.mubr.msk.f32.gmra.mrb[26].mxu1 %vm1287_vm0, %v1182_v5 }
 0x142   :  { %v759_v10 = vpop.f32.mrb[31].mxu0  ;;  %v1186_v13 = vmax.f32 %v4677_v9, 0.0 }
 0x143   :  { %v1184_v11 = vmax.f32 %v759_v10, 0.0  ;;  %4824 = vmatprep.mubr.msk.f32.mxu1 %vm1287_vm0, %v1183_v8 }
 0x145   :  { %4825 = vmatmul.mubr.msk.f32.gmra.mrb[28].mxu1 %vm1287_vm0, %v1184_v11 }
 0x146   :  { %4827 = vmatprep.mubr.msk.f32.mxu1 %vm1287_vm0, %v1185_v12 }
 0x147   :  { %v4680_v14 = vpop.f32.mrb[32].mxu0 }
 0x148   :  { %v772_v15 = vpop.f32.mrb[33].mxu0  ;;  %v1189_v20 = vmax.f32 %v4680_v14, 0.0 }
 0x149   :  { %v1187_v16 = vmax.f32 %v772_v15, 0.0  ;;  %v4681_v17 = vpop.f32.mrb[34].mxu0  ;;  %4828 = vmatmul.mubr.msk.f32.gmra.mrb[30].mxu1 %vm1287_vm0, %v1186_v13 }
 0x14a   :  { %v775_v18 = vpop.f32.mrb[35].mxu0  ;;  %v1190_v21 = vmax.f32 %v4681_v17, 0.0 }
 0x14b   :  { %v1188_v19 = vmax.f32 %v775_v18, 0.0  ;;  %4830 = vmatprep.mubr.msk.f32.mxu1 %vm1287_vm0, %v1187_v16 }
 0x14d   :  { %4831 = vmatmul.mubr.msk.f32.gmra.mrb[32].mxu1 %vm1287_vm0, %v1188_v19 }
 0x14e   :  { %4833 = vmatprep.mubr.msk.f32.mxu1 %vm1287_vm0, %v1189_v20 }
 0x14f   :  { %v4684_v22 = vpop.f32.mrb[36].mxu0 }
 0x150   :  { %v788_v23 = vpop.f32.mrb[37].mxu0  ;;  %v1193_v28 = vmax.f32 %v4684_v22, 0.0 }
 0x151   :  { %v1191_v24 = vmax.f32 %v788_v23, 0.0  ;;  %v4685_v25 = vpop.f32.mrb[38].mxu0  ;;  %4834 = vmatmul.mubr.msk.f32.gmra.mrb[34].mxu1 %vm1287_vm0, %v1190_v21 }
 0x152   :  { %v791_v26 = vpop.f32.mrb[39].mxu0  ;;  %v1194_v29 = vmax.f32 %v4685_v25, 0.0 }
 0x153   :  { %v1192_v27 = vmax.f32 %v791_v26, 0.0  ;;  %4836 = vmatprep.mubr.msk.f32.mxu1 %vm1287_vm0, %v1191_v24 }
 0x155   :  { %4837 = vmatmul.mubr.msk.f32.gmra.mrb[36].mxu1 %vm1287_vm0, %v1192_v27 }
 0x156   :  { %4839 = vmatprep.mubr.msk.f32.mxu1 %vm1287_vm0, %v1193_v28 }
 0x157   :  { %v4688_v30 = vpop.f32.mrb[40].mxu0 }
 0x158   :  { %v804_v31 = vpop.f32.mrb[41].mxu0  ;;  %v1197_v36 = vmax.f32 %v4688_v30, 0.0 }
 0x159   :  { %v1195_v32 = vmax.f32 %v804_v31, 0.0  ;;  %v4689_v33 = vpop.f32.mrb[42].mxu0  ;;  %4840 = vmatmul.mubr.msk.f32.gmra.mrb[38].mxu1 %vm1287_vm0, %v1194_v29 }
 0x15a   :  { %v807_v34 = vpop.f32.mrb[43].mxu0  ;;  %v1198_v37 = vmax.f32 %v4689_v33, 0.0 }
 0x15b   :  { %v1196_v35 = vmax.f32 %v807_v34, 0.0  ;;  %4842 = vmatprep.mubr.msk.f32.mxu1 %vm1287_vm0, %v1195_v32 }
 0x15d   :  { %4843 = vmatmul.mubr.msk.f32.gmra.mrb[40].mxu1 %vm1287_vm0, %v1196_v35 }
 0x15e   :  { %4845 = vmatprep.mubr.msk.f32.mxu1 %vm1287_vm0, %v1197_v36 }
 0x15f   :  { %v4692_v38 = vpop.f32.mrb[44].mxu0 }
 0x160   :  { %v820_v39 = vpop.f32.mrb[45].mxu0  ;;  %v1201_v44 = vmax.f32 %v4692_v38, 0.0 }
 0x161   :  { %v1199_v40 = vmax.f32 %v820_v39, 0.0  ;;  %v4693_v41 = vpop.f32.mrb[46].mxu0  ;;  %4846 = vmatmul.mubr.msk.f32.gmra.mrb[42].mxu1 %vm1287_vm0, %v1198_v37 }
 0x162   :  { %v823_v42 = vpop.f32.mrb[47].mxu0  ;;  %v1202_v45 = vmax.f32 %v4693_v41, 0.0 }
 0x163   :  { %v1200_v43 = vmax.f32 %v823_v42, 0.0  ;;  %4848 = vmatprep.mubr.msk.f32.mxu1 %vm1287_vm0, %v1199_v40 }
 0x165   :  { %4849 = vmatmul.mubr.msk.f32.gmra.mrb[44].mxu1 %vm1287_vm0, %v1200_v43 }
 0x166   :  { %4851 = vmatprep.mubr.msk.f32.mxu1 %vm1287_vm0, %v1201_v44 }
 0x167   :  { %v4696_v46 = vpop.f32.mrb[48].mxu0 }
 0x168   :  { %v836_v47 = vpop.f32.mrb[49].mxu0  ;;  %v1205_v52 = vmax.f32 %v4696_v46, 0.0 }
 0x169   :  { %v1203_v48 = vmax.f32 %v836_v47, 0.0  ;;  %v4697_v49 = vpop.f32.mrb[50].mxu0  ;;  %4852 = vmatmul.mubr.msk.f32.gmra.mrb[46].mxu1 %vm1287_vm0, %v1202_v45 }
 0x16a   :  { %v839_v50 = vpop.f32.mrb[51].mxu0  ;;  %v1206_v53 = vmax.f32 %v4697_v49, 0.0 }
 0x16b   :  { %v1204_v51 = vmax.f32 %v839_v50, 0.0  ;;  %4854 = vmatprep.mubr.msk.f32.mxu1 %vm1287_vm0, %v1203_v48 }
 0x16d   :  { %4855 = vmatmul.mubr.msk.f32.gmra.mrb[48].mxu1 %vm1287_vm0, %v1204_v51 }
 0x16e   :  { %4857 = vmatprep.mubr.msk.f32.mxu1 %vm1287_vm0, %v1205_v52 }
 0x16f   :  { %v4700_v54 = vpop.f32.mrb[52].mxu0 }
 0x170   :  { %v852_v55 = vpop.f32.mrb[53].mxu0  ;;  %v1209_v61 = vmax.f32 %v4700_v54, 0.0 }
 0x171   :  { %v1207_v56 = vmax.f32 %v852_v55, 0.0  ;;  %v4701_v57 = vpop.f32.mrb[54].mxu0  ;;  %4858 = vmatmul.mubr.msk.f32.gmra.mrb[50].mxu1 %vm1287_vm0, %v1206_v53 }
 0x172   :  { %v855_v58 = vpop.f32.mrb[55].mxu0  ;;  %v1210_v62 = vmax.f32 %v4701_v57, 0.0 }
 0x173   :  { %v1208_v59 = vmax.f32 %v855_v58, 0.0  ;;  %4860 = vmatprep.mubr.msk.f32.mxu1 %vm1287_vm0, %v1207_v56 }
 0x175   :  { %4861 = vmatmul.mubr.msk.f32.gmra.mrb[52].mxu1 %vm1287_vm0, %v1208_v59 }
 0x176   :  { %4863 = vmatprep.mubr.msk.f32.mxu1 %vm1287_vm0, %v1209_v61 }
 0x177   :  { %v4704_v63 = vpop.f32.mrb[56].mxu0 }
 0x178   :  { %v868_v0 = vpop.f32.mrb[57].mxu0  ;;  %v1213_v5 = vmax.f32 %v4704_v63, 0.0 }
 0x179   :  { %v1211_v1 = vmax.f32 %v868_v0, 0.0  ;;  %v4705_v2 = vpop.f32.mrb[58].mxu0  ;;  %4864 = vmatmul.mubr.msk.f32.gmra.mrb[54].mxu1 %vm1287_vm0, %v1210_v62 }
 0x17a   :  { %v871_v3 = vpop.f32.mrb[59].mxu0  ;;  %v1214_v6 = vmax.f32 %v4705_v2, 0.0 }
 0x17b   :  { %v1212_v4 = vmax.f32 %v871_v3, 0.0  ;;  %4866 = vmatprep.mubr.msk.f32.mxu1 %vm1287_vm0, %v1211_v1 }
 0x17d   :  { %4867 = vmatmul.mubr.msk.f32.gmra.mrb[56].mxu1 %vm1287_vm0, %v1212_v4 }
 0x17e   :  { %4869 = vmatprep.mubr.msk.f32.mxu1 %vm1287_vm0, %v1213_v5 }
 0x17f   :  { %v4708_v7 = vpop.f32.mrb[60].mxu0 }
 0x180   :  { %v884_v8 = vpop.f32.mrb[61].mxu0  ;;  %v1217_v13 = vmax.f32 %v4708_v7, 0.0 }
 0x181   :  { %v1215_v9 = vmax.f32 %v884_v8, 0.0  ;;  %v4709_v10 = vpop.f32.mrb[62].mxu0  ;;  %4870 = vmatmul.mubr.msk.f32.gmra.mrb[58].mxu1 %vm1287_vm0, %v1214_v6 }
 0x182   :  { %v887_v11 = vpop.f32.mrb[63].mxu0  ;;  %v1218_v14 = vmax.f32 %v4709_v10, 0.0 }
 0x183   :  { %v1216_v12 = vmax.f32 %v887_v11, 0.0  ;;  %4872 = vmatprep.mubr.msk.f32.mxu1 %vm1287_vm0, %v1215_v9 }
 0x185   :  { %4873 = vmatmul.mubr.msk.f32.gmra.mrb[60].mxu1 %vm1287_vm0, %v1216_v12 }
 0x186   :  { %4875 = vmatprep.mubr.msk.f32.mxu1 %vm1287_vm0, %v1217_v13 }
 0x187   :  { %v4712_v15 = vpop.f32.mrb[64].mxu0 }
 0x188   :  { %v900_v16 = vpop.f32.mrb[65].mxu0  ;;  %v1221_v21 = vmax.f32 %v4712_v15, 0.0 }
 0x189   :  { %v1219_v17 = vmax.f32 %v900_v16, 0.0  ;;  %v4713_v18 = vpop.f32.mrb[66].mxu0  ;;  %4876 = vmatmul.mubr.msk.f32.gmra.mrb[62].mxu1 %vm1287_vm0, %v1218_v14 }
 0x18a   :  { %v903_v19 = vpop.f32.mrb[67].mxu0  ;;  %v1222_v22 = vmax.f32 %v4713_v18, 0.0 }
 0x18b   :  { %v1220_v20 = vmax.f32 %v903_v19, 0.0  ;;  %4878 = vmatprep.mubr.msk.f32.mxu1 %vm1287_vm0, %v1219_v17 }
 0x18d   :  { %4879 = vmatmul.mubr.msk.f32.gmra.mrb[64].mxu1 %vm1287_vm0, %v1220_v20 }
 0x18e   :  { %4881 = vmatprep.mubr.msk.f32.mxu1 %vm1287_vm0, %v1221_v21 }
 0x18f   :  { %v4716_v23 = vpop.f32.mrb[68].mxu0 }
 0x190   :  { %v916_v24 = vpop.f32.mrb[69].mxu0  ;;  %v1225_v29 = vmax.f32 %v4716_v23, 0.0 }
 0x191   :  { %v1223_v25 = vmax.f32 %v916_v24, 0.0  ;;  %v4717_v26 = vpop.f32.mrb[70].mxu0  ;;  %4882 = vmatmul.mubr.msk.f32.gmra.mrb[66].mxu1 %vm1287_vm0, %v1222_v22 }
 0x192   :  { %v919_v27 = vpop.f32.mrb[71].mxu0  ;;  %v1226_v30 = vmax.f32 %v4717_v26, 0.0 }
 0x193   :  { %v1224_v28 = vmax.f32 %v919_v27, 0.0  ;;  %4884 = vmatprep.mubr.msk.f32.mxu1 %vm1287_vm0, %v1223_v25 }
 0x195   :  { %4885 = vmatmul.mubr.msk.f32.gmra.mrb[68].mxu1 %vm1287_vm0, %v1224_v28 }
 0x196   :  { %4887 = vmatprep.mubr.msk.f32.mxu1 %vm1287_vm0, %v1225_v29 }
 0x197   :  { %v4720_v31 = vpop.f32.mrb[72].mxu0 }
 0x198   :  { %v932_v32 = vpop.f32.mrb[73].mxu0  ;;  %v1229_v37 = vmax.f32 %v4720_v31, 0.0 }
 0x199   :  { %v1227_v33 = vmax.f32 %v932_v32, 0.0  ;;  %v4721_v34 = vpop.f32.mrb[74].mxu0  ;;  %4888 = vmatmul.mubr.msk.f32.gmra.mrb[70].mxu1 %vm1287_vm0, %v1226_v30 }
 0x19a   :  { %v935_v35 = vpop.f32.mrb[75].mxu0  ;;  %v1230_v38 = vmax.f32 %v4721_v34, 0.0 }
 0x19b   :  { %v1228_v36 = vmax.f32 %v935_v35, 0.0  ;;  %4890 = vmatprep.mubr.msk.f32.mxu1 %vm1287_vm0, %v1227_v33 }
 0x19d   :  { %4891 = vmatmul.mubr.msk.f32.gmra.mrb[72].mxu1 %vm1287_vm0, %v1228_v36 }
 0x19e   :  { %4893 = vmatprep.mubr.msk.f32.mxu1 %vm1287_vm0, %v1229_v37 }
 0x19f   :  { %v4724_v39 = vpop.f32.mrb[76].mxu0 }
 0x1a0   :  { %v948_v40 = vpop.f32.mrb[77].mxu0  ;;  %v1233_v45 = vmax.f32 %v4724_v39, 0.0 }
 0x1a1   :  { %v1231_v41 = vmax.f32 %v948_v40, 0.0  ;;  %v4725_v42 = vpop.f32.mrb[78].mxu0  ;;  %4894 = vmatmul.mubr.msk.f32.gmra.mrb[74].mxu1 %vm1287_vm0, %v1230_v38  ;;  %v5553_v38 = vstv %s6109_s3  ;;  %s5369_s3 = smov [#allocation6]  }
 0x1a2   :  { %v951_v43 = vpop.f32.mrb[79].mxu0  ;;  %v1234_v46 = vmax.f32 %v4725_v42, 0.0  ;;  %s4217_s26 = sshll.u32 %s5369_s3, 4  ;;  %s4218_s26 = int_to_ptr.vmem [resolvable:$true] %s4217_s26 }
 0x1a3   :  { %v1232_v44 = vmax.f32 %v951_v43, 0.0  ;;  %4896 = vmatprep.mubr.msk.f32.mxu1 %vm1287_vm0, %v1231_v41  ;;  %s5339_s27 = scalar_lea.vmem %s4218_s26, 128  ;;  %p5344_p9 = scmp.lt.s32.totalorder %s4218_s26, %s4218_s26 }
 0x1a4   :  { %p5340_p8 = scmp.ne.s32.totalorder %s4218_s26, %s5339_s27  ;;  %p5345_p10 = scmp.lt.s32.totalorder %s5339_s27, %s5339_s27 }
 0x1a5   :  { %4897 = vmatmul.mubr.msk.f32.gmra.mrb[76].mxu1 %vm1287_vm0, %v1232_v44 }
 0x1a6   :  { %4899 = vmatprep.mubr.msk.f32.mxu1 %vm1287_vm0, %v1233_v45  ;;  %p5346_p11 = por %p5345_p10, %p5344_p9 }
 0x1a7   :  { %v4728_v47 = vpop.f32.mrb[80].mxu0 }
 0x1a8   :  { %v964_v48 = vpop.f32.mrb[81].mxu0  ;;  %v1237_v53 = vmax.f32 %v4728_v47, 0.0  ;;  %p5347_p12 = pnand %p5346_p11, %p5340_p8 }
 0x1a9   :  { %v1235_v49 = vmax.f32 %v964_v48, 0.0  ;;  %v4729_v50 = vpop.f32.mrb[82].mxu0  ;;  %4900 = vmatmul.mubr.msk.f32.gmra.mrb[78].mxu1 %vm1287_vm0, %v1234_v46 }
 0x1aa   :  { %v967_v51 = vpop.f32.mrb[83].mxu0  ;;  %v1238_v54 = vmax.f32 %v4729_v50, 0.0 }
 0x1ab   :  { %v1236_v52 = vmax.f32 %v967_v51, 0.0  ;;  %4902 = vmatprep.mubr.msk.f32.mxu1 %vm1287_vm0, %v1235_v49 }
 0x1ad   :  { %4903 = vmatmul.mubr.msk.f32.gmra.mrb[80].mxu1 %vm1287_vm0, %v1236_v52 }
 0x1ae   :  { %4905 = vmatprep.mubr.msk.f32.mxu1 %vm1287_vm0, %v1237_v53 }
 0x1af   :  { %v4732_v55 = vpop.f32.mrb[84].mxu0 }
 0x1b0   :  { %v980_v56 = vpop.f32.mrb[85].mxu0  ;;  %v1241_v61 = vmax.f32 %v4732_v55, 0.0 }
 0x1b1   :  { %v1239_v57 = vmax.f32 %v980_v56, 0.0  ;;  %v4733_v58 = vpop.f32.mrb[86].mxu0  ;;  %4906 = vmatmul.mubr.msk.f32.gmra.mrb[82].mxu1 %vm1287_vm0, %v1238_v54 }
 0x1b2   :  { %v983_v59 = vpop.f32.mrb[87].mxu0  ;;  %v1242_v62 = vmax.f32 %v4733_v58, 0.0 }
 0x1b3   :  { %v1240_v60 = vmax.f32 %v983_v59, 0.0  ;;  %4908 = vmatprep.mubr.msk.f32.mxu1 %vm1287_vm0, %v1239_v57 }
 0x1b5   :  { %4909 = vmatmul.mubr.msk.f32.gmra.mrb[84].mxu1 %vm1287_vm0, %v1240_v60 }
 0x1b6   :  { %4911 = vmatprep.mubr.msk.f32.mxu1 %vm1287_vm0, %v1241_v61 }
 0x1b7   :  { %v4736_v63 = vpop.f32.mrb[88].mxu0 }
 0x1b8   :  { %v996_v0 = vpop.f32.mrb[89].mxu0  ;;  %v1245_v5 = vmax.f32 %v4736_v63, 0.0 }
 0x1b9   :  { %v1243_v1 = vmax.f32 %v996_v0, 0.0  ;;  %v4737_v2 = vpop.f32.mrb[90].mxu0  ;;  %4912 = vmatmul.mubr.msk.f32.gmra.mrb[86].mxu1 %vm1287_vm0, %v1242_v62 }
 0x1ba   :  { %v999_v3 = vpop.f32.mrb[91].mxu0  ;;  %v1246_v6 = vmax.f32 %v4737_v2, 0.0 }
 0x1bb   :  { %v1244_v4 = vmax.f32 %v999_v3, 0.0  ;;  %4914 = vmatprep.mubr.msk.f32.mxu1 %vm1287_vm0, %v1243_v1 }
 0x1bd   :  { %4915 = vmatmul.mubr.msk.f32.gmra.mrb[88].mxu1 %vm1287_vm0, %v1244_v4 }
 0x1be   :  { %4917 = vmatprep.mubr.msk.f32.mxu1 %vm1287_vm0, %v1245_v5 }
 0x1bf   :  { %v4740_v7 = vpop.f32.mrb[92].mxu0 }
 0x1c0   :  { %v1012_v8 = vpop.f32.mrb[93].mxu0  ;;  %v1249_v13 = vmax.f32 %v4740_v7, 0.0 }
 0x1c1   :  { %v1247_v9 = vmax.f32 %v1012_v8, 0.0  ;;  %v4741_v10 = vpop.f32.mrb[94].mxu0  ;;  %4918 = vmatmul.mubr.msk.f32.gmra.mrb[90].mxu1 %vm1287_vm0, %v1246_v6 }
 0x1c2   :  { %v1015_v11 = vpop.f32.mrb[95].mxu0  ;;  %v1250_v14 = vmax.f32 %v4741_v10, 0.0 }
 0x1c3   :  { %v1248_v12 = vmax.f32 %v1015_v11, 0.0  ;;  %4920 = vmatprep.mubr.msk.f32.mxu1 %vm1287_vm0, %v1247_v9 }
 0x1c5   :  { %4921 = vmatmul.mubr.msk.f32.gmra.mrb[92].mxu1 %vm1287_vm0, %v1248_v12 }
 0x1c6   :  { %4923 = vmatprep.mubr.msk.f32.mxu1 %vm1287_vm0, %v1249_v13 }
 0x1c7   :  { %v4744_v15 = vpop.f32.mrb[96].mxu0 }
 0x1c8   :  { %v1028_v16 = vpop.f32.mrb[97].mxu0  ;;  %v1253_v21 = vmax.f32 %v4744_v15, 0.0 }
 0x1c9   :  { %v1251_v17 = vmax.f32 %v1028_v16, 0.0  ;;  %v4745_v18 = vpop.f32.mrb[98].mxu0  ;;  %4924 = vmatmul.mubr.msk.f32.gmra.mrb[94].mxu1 %vm1287_vm0, %v1250_v14 }
 0x1ca   :  { %v1031_v19 = vpop.f32.mrb[99].mxu0  ;;  %v1254_v22 = vmax.f32 %v4745_v18, 0.0 }
 0x1cb   :  { %v1252_v20 = vmax.f32 %v1031_v19, 0.0  ;;  %4926 = vmatprep.mubr.msk.f32.mxu1 %vm1287_vm0, %v1251_v17 }
 0x1cd   :  { %4927 = vmatmul.mubr.msk.f32.gmra.mrb[96].mxu1 %vm1287_vm0, %v1252_v20 }
 0x1ce   :  { %4929 = vmatprep.mubr.msk.f32.mxu1 %vm1287_vm0, %v1253_v21 }
 0x1cf   :  { %v4748_v23 = vpop.f32.mrb[100].mxu0 }
 0x1d0   :  { %v1044_v24 = vpop.f32.mrb[101].mxu0  ;;  %v1257_v29 = vmax.f32 %v4748_v23, 0.0 }
 0x1d1   :  { %v1255_v25 = vmax.f32 %v1044_v24, 0.0  ;;  %v4749_v26 = vpop.f32.mrb[102].mxu0  ;;  %4930 = vmatmul.mubr.msk.f32.gmra.mrb[98].mxu1 %vm1287_vm0, %v1254_v22 }
 0x1d2   :  { %v1047_v27 = vpop.f32.mrb[103].mxu0  ;;  %v1258_v30 = vmax.f32 %v4749_v26, 0.0 }
 0x1d3   :  { %v1256_v28 = vmax.f32 %v1047_v27, 0.0  ;;  %4932 = vmatprep.mubr.msk.f32.mxu1 %vm1287_vm0, %v1255_v25 }
 0x1d5   :  { %4933 = vmatmul.mubr.msk.f32.gmra.mrb[100].mxu1 %vm1287_vm0, %v1256_v28 }
 0x1d6   :  { %4935 = vmatprep.mubr.msk.f32.mxu1 %vm1287_vm0, %v1257_v29 }
 0x1d7   :  { %v4752_v31 = vpop.f32.mrb[104].mxu0 }
 0x1d8   :  { %v1060_v32 = vpop.f32.mrb[105].mxu0  ;;  %v1261_v37 = vmax.f32 %v4752_v31, 0.0 }
 0x1d9   :  { %v1259_v33 = vmax.f32 %v1060_v32, 0.0  ;;  %v4753_v34 = vpop.f32.mrb[106].mxu0  ;;  %4936 = vmatmul.mubr.msk.f32.gmra.mrb[102].mxu1 %vm1287_vm0, %v1258_v30 }
 0x1da   :  { %v1063_v35 = vpop.f32.mrb[107].mxu0  ;;  %v1262_v39 = vmax.f32 %v4753_v34, 0.0 }
 0x1db   :  { %v1260_v36 = vmax.f32 %v1063_v35, 0.0  ;;  %4938 = vmatprep.mubr.msk.f32.mxu1 %vm1287_vm0, %v1259_v33 }
 0x1dd   :  { %4939 = vmatmul.mubr.msk.f32.gmra.mrb[104].mxu1 %vm1287_vm0, %v1260_v36 }
 0x1de   :  { %4941 = vmatprep.mubr.msk.f32.mxu1 %vm1287_vm0, %v1261_v37 }
 0x1df   :  { %v4756_v40 = vpop.f32.mrb[108].mxu0 }
 0x1e0   :  { %v1076_v41 = vpop.f32.mrb[109].mxu0  ;;  %v4784_v42 = vpop.f32.mrb[0].mxu1  ;;  %v1265_v51 = vmax.f32 %v4756_v40, 0.0 }
 0x1e1   :  { %v1263_v43 = vmax.f32 %v1076_v41, 0.0  ;;  %v2380_v44 = vadd.f32 %v4784_v42, %v5553_v38  ;;  %v4757_v45 = vpop.f32.mrb[110].mxu0  ;;  %v1738_v46 = vpop.f32.mrb[1].mxu1  ;;  %4942 = vmatmul.mubr.msk.f32.gmra.mrb[106].mxu1 %vm1287_vm0, %v1262_v39 }
 0x1e2   :  { %v2379_v47 = vadd.f32 %v5553_v38, %v1738_v46  ;;  %v1079_v48 = vpop.f32.mrb[111].mxu0  ;;  %v1266_v57 = vmax.f32 %v4757_v45, 0.0 }
 0x1e3   :  { %v2508_v49 = vmul.f32 0.5, %v2380_v44  ;;  %v1264_v50 = vmax.f32 %v1079_v48, 0.0  ;;  %4944 = vmatprep.mubr.msk.f32.mxu1 %vm1287_vm0, %v1263_v43 }
 0x1e4   :  { %v2507_v52 = vmul.f32 0.5, %v2379_v47  ;;  %v4787_v53 = vpop.f32.mrb[2].mxu1 }
 0x1e5   :  { %5061 = vtanh.f32 %v2508_v49  ;;  %v2382_v54 = vadd.f32 %v4787_v53, %v5553_v38  ;;  %v1748_v55 = vpop.f32.mrb[3].mxu1  ;;  %4945 = vmatmul.mubr.msk.f32.gmra.mrb[108].mxu1 %vm1287_vm0, %v1264_v50 }
 0x1e6   :  { %5063 = vtanh.f32 %v2507_v52  ;;  %v2381_v56 = vadd.f32 %v5553_v38, %v1748_v55  ;;  %4947 = vmatprep.mubr.msk.f32.mxu1 %vm1287_vm0, %v1265_v51 }
 0x1e7   :  { %v2510_v58 = vmul.f32 0.5, %v2382_v54  ;;  %v4760_v59 = vpop.f32.mrb[112].mxu0 }
 0x1e8   :  { %v2509_v60 = vmul.f32 0.5, %v2381_v56  ;;  %v1092_v61 = vpop.f32.mrb[113].mxu0  ;;  %v4790_v62 = vpop.f32.mrb[4].mxu1  ;;  %v1269_v7 = vmax.f32 %v4760_v59, 0.0 }
 0x1e9   :  { %5065 = vtanh.f32 %v2510_v58  ;;  %v1267_v63 = vmax.f32 %v1092_v61, 0.0  ;;  %v2384_v0 = vadd.f32 %v4790_v62, %v5553_v38  ;;  %v4761_v1 = vpop.f32.mrb[114].mxu0  ;;  %v1758_v2 = vpop.f32.mrb[5].mxu1  ;;  %4948 = vmatmul.mubr.msk.f32.gmra.mrb[110].mxu1 %vm1287_vm0, %v1266_v57 }
 0x1ea   :  { %5067 = vtanh.f32 %v2509_v60  ;;  %v2383_v3 = vadd.f32 %v5553_v38, %v1758_v2  ;;  %v1095_v4 = vpop.f32.mrb[115].mxu0  ;;  %v1270_v14 = vmax.f32 %v4761_v1, 0.0 }
 0x1eb   :  { %v2512_v5 = vmul.f32 0.5, %v2384_v0  ;;  %v1268_v6 = vmax.f32 %v1095_v4, 0.0  ;;  %4950 = vmatprep.mubr.msk.f32.mxu1 %vm1287_vm0, %v1267_v63 }
 0x1ec   :  { %v2511_v8 = vmul.f32 0.5, %v2383_v3  ;;  %v4793_v9 = vpop.f32.mrb[6].mxu1 }
 0x1ed   :  { %5069 = vtanh.f32 %v2512_v5  ;;  %v2386_v10 = vadd.f32 %v4793_v9, %v5553_v38  ;;  %v1768_v11 = vpop.f32.mrb[7].mxu1  ;;  %4951 = vmatmul.mubr.msk.f32.gmra.mrb[112].mxu1 %vm1287_vm0, %v1268_v6 }
 0x1ee   :  { %5071 = vtanh.f32 %v2511_v8  ;;  %v2385_v12 = vadd.f32 %v5553_v38, %v1768_v11  ;;  %4953 = vmatprep.mubr.msk.f32.mxu1 %vm1287_vm0, %v1269_v7 }
 0x1ef   :  { %v5062_v13 = vpop.eup %5061  ;;  %v2514_v15 = vmul.f32 0.5, %v2386_v10  ;;  %v4764_v16 = vpop.f32.mrb[116].mxu0 }
 0x1f0   :  { %v5064_v17 = vpop.eup %5063  ;;  %v2513_v18 = vmul.f32 0.5, %v2385_v12  ;;  %v1108_v19 = vpop.f32.mrb[117].mxu0  ;;  %v2764_v21 = vmul.f32 0.5, %v5062_v13  ;;  %v1273_v34 = vmax.f32 %v4764_v16, 0.0 }
 0x1f1   :  { %v4796_v20 = vpop.f32.mrb[8].mxu1  ;;  %v2763_v22 = vmul.f32 0.5, %v5064_v17  ;;  %5073 = vtanh.f32 %v2514_v15  ;;  %v1271_v23 = vmax.f32 %v1108_v19, 0.0  ;;  %v4765_v25 = vpop.f32.mrb[118].mxu0  ;;  %4954 = vmatmul.mubr.msk.f32.gmra.mrb[114].mxu1 %vm1287_vm0, %v1270_v14 }
 0x1f2   :  { %v2388_v24 = vadd.f32 %v4796_v20, %v5553_v38  ;;  %v1778_v26 = vpop.f32.mrb[9].mxu1  ;;  %5075 = vtanh.f32 %v2513_v18  ;;  %v1111_v28 = vpop.f32.mrb[119].mxu0  ;;  %v2892_v29 = vadd.f32 0.5, %v2764_v21  ;;  %v1274_v46 = vmax.f32 %v4765_v25, 0.0 }
 0x1f3   :  { %v2387_v27 = vadd.f32 %v5553_v38, %v1778_v26  ;;  %v5066_v30 = vpop.eup %5065  ;;  %v1272_v32 = vmax.f32 %v1111_v28, 0.0  ;;  %4956 = vmatprep.mubr.msk.f32.mxu1 %vm1287_vm0, %v1271_v23  ;;  %v2891_v41 = vadd.f32 0.5, %v2763_v22 }
 0x1f4   :  { %v2516_v31 = vmul.f32 0.5, %v2388_v24  ;;  %v5068_v33 = vpop.eup %5067  ;;  %3151 = vperm.xlu0 %4987, %v2892_v29   ;;  %v4799_v36 = vpop.f32.mrb[10].mxu1  ;;  %v2766_v37 = vmul.f32 0.5, %v5066_v30 }
 0x1f5   :  { %v2515_v35 = vmul.f32 0.5, %v2387_v27  ;;  %v2390_v39 = vadd.f32 %v4799_v36, %v5553_v38  ;;  %v1788_v40 = vpop.f32.mrb[11].mxu1  ;;  %4957 = vmatmul.mubr.msk.f32.gmra.mrb[116].mxu1 %vm1287_vm0, %v1272_v32  ;;  %v2765_v42 = vmul.f32 0.5, %v5068_v33 }
 0x1f6   :  { %5077 = vtanh.f32 %v2516_v31  ;;  %v2389_v43 = vadd.f32 %v5553_v38, %v1788_v40  ;;  %4959 = vmatprep.mubr.msk.f32.mxu1 %vm1287_vm0, %v1273_v34  ;;  %v2894_v44 = vadd.f32 0.5, %v2766_v37 }
 0x1f7   :  { %5079 = vtanh.f32 %v2515_v35  ;;  %v5070_v45 = vpop.eup %5069  ;;  %v2518_v47 = vmul.f32 0.5, %v2390_v39  ;;  %v4768_v48 = vpop.f32.mrb[120].mxu0  ;;  %v2893_v61 = vadd.f32 0.5, %v2765_v42 }
 0x1f8   :  { %v5072_v49 = vpop.eup %5071  ;;  %v2517_v50 = vmul.f32 0.5, %v2389_v43  ;;  %3148 = vperm.xlu0 %4987, %v2891_v41   ;;  %3157 = vperm.xlu1 %4988, %v2894_v44   ;;  %v1124_v51 = vpop.f32.mrb[121].mxu0  ;;  %v2768_v58 = vmul.f32 0.5, %v5070_v45  ;;  %v1277_v4 = vmax.f32 %v4768_v48, 0.0 }
 0x1f9   :  { %v4802_v52 = vpop.f32.mrb[12].mxu1  ;;  %v2767_v53 = vmul.f32 0.5, %v5072_v49  ;;  %5081 = vtanh.f32 %v2518_v47  ;;  %v1275_v54 = vmax.f32 %v1124_v51, 0.0  ;;  %v4769_v56 = vpop.f32.mrb[122].mxu0  ;;  %4960 = vmatmul.mubr.msk.f32.gmra.mrb[118].mxu1 %vm1287_vm0, %v1274_v46 }
 0x1fa   :  { %v2392_v55 = vadd.f32 %v4802_v52, %v5553_v38  ;;  %v1798_v57 = vpop.f32.mrb[13].mxu1  ;;  %5083 = vtanh.f32 %v2517_v50  ;;  %v1127_v60 = vpop.f32.mrb[123].mxu0  ;;  %v2896_v11 = vadd.f32 0.5, %v2768_v58  ;;  %v1278_v13 = vmax.f32 %v4769_v56, 0.0 }
 0x1fb   :  { %v2391_v59 = vadd.f32 %v5553_v38, %v1798_v57  ;;  %v5074_v62 = vpop.eup %5073  ;;  %v1276_v0 = vmax.f32 %v1127_v60, 0.0  ;;  %4962 = vmatprep.mubr.msk.f32.mxu1 %vm1287_vm0, %v1275_v54  ;;  %v2895_v1 = vadd.f32 0.5, %v2767_v53 }
 0x1fc   :  { %v2520_v63 = vmul.f32 0.5, %v2392_v55  ;;  %v5076_v2 = vpop.eup %5075  ;;  %v2770_v3 = vmul.f32 0.5, %v5074_v62  ;;  %3154 = vperm.xlu1 %4988, %v2893_v61   ;;  %v4805_v6 = vpop.f32.mrb[14].mxu1 }
 0x1fd   :  { %v2519_v5 = vmul.f32 0.5, %v2391_v59  ;;  %v2769_v7 = vmul.f32 0.5, %v5076_v2  ;;  %v2394_v8 = vadd.f32 %v4805_v6, %v5553_v38  ;;  %3160 = vperm.xlu0 %4987, %v2895_v1   ;;  %v1808_v9 = vpop.f32.mrb[15].mxu1  ;;  %4963 = vmatmul.mubr.msk.f32.gmra.mrb[120].mxu1 %vm1287_vm0, %v1276_v0 }
 0x1fe   :  { %5085 = vtanh.f32 %v2520_v63  ;;  %v2393_v10 = vadd.f32 %v5553_v38, %v1808_v9  ;;  %4965 = vmatprep.mubr.msk.f32.mxu1 %vm1287_vm0, %v1277_v4  ;;  %v2898_v21 = vadd.f32 0.5, %v2770_v3 }
 0x1ff   :  { %5087 = vtanh.f32 %v2519_v5  ;;  %v2522_v14 = vmul.f32 0.5, %v2394_v8  ;;  %v4772_v15 = vpop.f32.mrb[124].mxu0  ;;  %v2897_v16 = vadd.f32 0.5, %v2769_v7 }
 0x200   :  { %v5078_v12 = vpop.eup %5077  ;;  %v2521_v18 = vmul.f32 0.5, %v2393_v10  ;;  %3163 = vperm.xlu1 %4988, %v2896_v11   ;;  %v1140_v19 = vpop.f32.mrb[125].mxu0  ;;  %v1281_v28 = vmax.f32 %v4772_v15, 0.0 }
 0x201   :  { %v5080_v17 = vpop.eup %5079  ;;  %v4808_v20 = vpop.f32.mrb[16].mxu1  ;;  %5089 = vtanh.f32 %v2522_v14  ;;  %v1279_v23 = vmax.f32 %v1140_v19, 0.0  ;;  %3166 = vperm.xlu0 %4987, %v2897_v16   ;;  %4966 = vmatmul.mubr.msk.f32.gmra.mrb[122].mxu1 %vm1287_vm0, %v1278_v13  ;;  %v2772_v27 = vmul.f32 0.5, %v5078_v12 }
 0x202   :  { %v2771_v22 = vmul.f32 0.5, %v5080_v17  ;;  %v2396_v24 = vadd.f32 %v4808_v20, %v5553_v38  ;;  %v4773_v25 = vpop.f32.mrb[126].mxu0  ;;  %v1818_v26 = vpop.f32.mrb[17].mxu1  ;;  %5091 = vtanh.f32 %v2521_v18 }
 0x203   :  { %v2395_v29 = vadd.f32 %v5553_v38, %v1818_v26  ;;  %v1143_v30 = vpop.f32.mrb[127].mxu0  ;;  %v5082_v31 = vpop.eup %5081  ;;  %4968 = vmatprep.mubr.msk.f32.mxu1 %vm1287_vm0, %v1279_v23  ;;  %v2900_v44 = vadd.f32 0.5, %v2772_v27  ;;  %v1282_v46 = vmax.f32 %v4773_v25, 0.0 }
 0x204   :  { %v2524_v32 = vmul.f32 0.5, %v2396_v24  ;;  %v1280_v33 = vmax.f32 %v1143_v30, 0.0  ;;  %v2899_v34 = vadd.f32 0.5, %v2771_v22  ;;  %v5084_v35 = vpop.eup %5083  ;;  %3169 = vperm.xlu1 %4988, %v2898_v21   ;;  %v4811_v37 = vpop.f32.mrb[18].mxu1  ;;  %v2774_v42 = vmul.f32 0.5, %v5082_v31 }
 0x205   :  { %v2523_v36 = vmul.f32 0.5, %v2395_v29  ;;  %v2773_v39 = vmul.f32 0.5, %v5084_v35  ;;  %v2398_v40 = vadd.f32 %v4811_v37, %v5553_v38  ;;  %v1828_v41 = vpop.f32.mrb[19].mxu1 }
 0x206   :  { %5093 = vtanh.f32 %v2524_v32  ;;  %3172 = vperm.xlu0 %4987, %v2899_v34   ;;  %4969 = vmatmul.mubr.msk.f32.gmra.mrb[124].mxu1 %vm1287_vm0, %v1280_v33  ;;  %v2397_v43 = vadd.f32 %v5553_v38, %v1828_v41  ;;  %v2902_v57 = vadd.f32 0.5, %v2774_v42 }
 0x207   :  { %5095 = vtanh.f32 %v2523_v36  ;;  %4971 = vmatprep.mubr.msk.f32.mxu1 %vm1287_vm0, %v1281_v28  ;;  %v2526_v47 = vmul.f32 0.5, %v2398_v40  ;;  %v2901_v48 = vadd.f32 0.5, %v2773_v39 }
 0x208   :  { %v5086_v45 = vpop.eup %5085  ;;  %v2525_v50 = vmul.f32 0.5, %v2397_v43  ;;  %3175 = vperm.xlu1 %4988, %v2900_v44   ;;  %v4814_v51 = vpop.f32.mrb[20].mxu1 }
 0x209   :  { %v5088_v49 = vpop.eup %5087  ;;  %5097 = vtanh.f32 %v2526_v47  ;;  %v2400_v53 = vadd.f32 %v4814_v51, %v5553_v38  ;;  %v1838_v54 = vpop.f32.mrb[21].mxu1  ;;  %v2776_v55 = vmul.f32 0.5, %v5086_v45 }
 0x20a   :  { %v2775_v52 = vmul.f32 0.5, %v5088_v49  ;;  %3178 = vperm.xlu0 %4987, %v2901_v48   ;;  %4972 = vmatmul.mubr.msk.f32.gmra.mrb[126].mxu1 %vm1287_vm0, %v1282_v46  ;;  %5099 = vtanh.f32 %v2525_v50  ;;  %v2399_v56 = vadd.f32 %v5553_v38, %v1838_v54  ;;  %vm4195_vm0 = vcmask 1041409  }
 0x20b   :  { %v5090_v58 = vpop.eup %5089  ;;  %v2528_v59 = vmul.f32 0.5, %v2400_v53  ;;  %v2904_v5 = vadd.f32 0.5, %v2776_v55 }
 0x20c   :  { %v2903_v60 = vadd.f32 0.5, %v2775_v52  ;;  %v5092_v61 = vpop.eup %5091  ;;  %v2527_v62 = vmul.f32 0.5, %v2399_v56  ;;  %3181 = vperm.xlu1 %4988, %v2902_v57   ;;  %v4817_v63 = vpop.f32.mrb[22].mxu1  ;;  %v2778_v3 = vmul.f32 0.5, %v5090_v58 }
 0x20d   :  { %v2777_v0 = vmul.f32 0.5, %v5092_v61  ;;  %5101 = vtanh.f32 %v2528_v59  ;;  %v2402_v1 = vadd.f32 %v4817_v63, %v5553_v38  ;;  %v1848_v2 = vpop.f32.mrb[23].mxu1 }
 0x20e   :  { %3184 = vperm.xlu0 %4987, %v2903_v60   ;;  %5103 = vtanh.f32 %v2527_v62  ;;  %v2401_v4 = vadd.f32 %v5553_v38, %v1848_v2  ;;  %v2906_v17 = vadd.f32 0.5, %v2778_v3 }
 0x20f   :  { %v2530_v7 = vmul.f32 0.5, %v2402_v1  ;;  %v2905_v8 = vadd.f32 0.5, %v2777_v0 }
 0x210   :  { %v5094_v6 = vpop.eup %5093  ;;  %v2529_v10 = vmul.f32 0.5, %v2401_v4  ;;  %3187 = vperm.xlu1 %4988, %v2904_v5   ;;  %v4820_v11 = vpop.f32.mrb[24].mxu1 }
 0x211   :  { %v5096_v9 = vpop.eup %5095  ;;  %5105 = vtanh.f32 %v2530_v7  ;;  %v2404_v13 = vadd.f32 %v4820_v11, %v5553_v38  ;;  %v1858_v14 = vpop.f32.mrb[25].mxu1  ;;  %v2780_v15 = vmul.f32 0.5, %v5094_v6 }
 0x212   :  { %v2779_v12 = vmul.f32 0.5, %v5096_v9  ;;  %3190 = vperm.xlu0 %4987, %v2905_v8   ;;  %5107 = vtanh.f32 %v2529_v10  ;;  %v2403_v16 = vadd.f32 %v5553_v38, %v1858_v14 }
 0x213   :  { %v5098_v18 = vpop.eup %5097  ;;  %v2532_v19 = vmul.f32 0.5, %v2404_v13  ;;  %v2908_v29 = vadd.f32 0.5, %v2780_v15 }
 0x214   :  { %v2907_v20 = vadd.f32 0.5, %v2779_v12  ;;  %v5100_v21 = vpop.eup %5099  ;;  %v2531_v22 = vmul.f32 0.5, %v2403_v16  ;;  %3193 = vperm.xlu1 %4988, %v2906_v17   ;;  %v4823_v23 = vpop.f32.mrb[26].mxu1  ;;  %v2782_v27 = vmul.f32 0.5, %v5098_v18 }
 0x215   :  { %v2781_v24 = vmul.f32 0.5, %v5100_v21  ;;  %5109 = vtanh.f32 %v2532_v19  ;;  %v2406_v25 = vadd.f32 %v4823_v23, %v5553_v38  ;;  %v1868_v26 = vpop.f32.mrb[27].mxu1 }
 0x216   :  { %3196 = vperm.xlu0 %4987, %v2907_v20   ;;  %5111 = vtanh.f32 %v2531_v22  ;;  %v2405_v28 = vadd.f32 %v5553_v38, %v1868_v26  ;;  %v2910_v42 = vadd.f32 0.5, %v2782_v27 }
 0x217   :  { %v5102_v30 = vpop.eup %5101  ;;  %v2534_v31 = vmul.f32 0.5, %v2406_v25  ;;  %v2909_v32 = vadd.f32 0.5, %v2781_v24 }
 0x218   :  { %v5104_v33 = vpop.eup %5103  ;;  %v2533_v34 = vmul.f32 0.5, %v2405_v28  ;;  %3199 = vperm.xlu1 %4988, %v2908_v29   ;;  %v4826_v35 = vpop.f32.mrb[28].mxu1  ;;  %v2784_v40 = vmul.f32 0.5, %v5102_v30 }
 0x219   :  { %v2783_v36 = vmul.f32 0.5, %v5104_v33  ;;  %5113 = vtanh.f32 %v2534_v31  ;;  %v2408_v37 = vadd.f32 %v4826_v35, %v5553_v38  ;;  %v1878_v39 = vpop.f32.mrb[29].mxu1 }
 0x21a   :  { %3202 = vperm.xlu0 %4987, %v2909_v32   ;;  %5115 = vtanh.f32 %v2533_v34  ;;  %v2407_v41 = vadd.f32 %v5553_v38, %v1878_v39  ;;  %v2912_v54 = vadd.f32 0.5, %v2784_v40 }
 0x21b   :  { %v5106_v43 = vpop.eup %5105  ;;  %v2536_v44 = vmul.f32 0.5, %v2408_v37  ;;  %v2911_v45 = vadd.f32 0.5, %v2783_v36 }
 0x21c   :  { %v5108_v46 = vpop.eup %5107  ;;  %v2535_v47 = vmul.f32 0.5, %v2407_v41  ;;  %3205 = vperm.xlu1 %4988, %v2910_v42   ;;  %v4829_v48 = vpop.f32.mrb[30].mxu1  ;;  %v2786_v52 = vmul.f32 0.5, %v5106_v43 }
 0x21d   :  { %v2785_v49 = vmul.f32 0.5, %v5108_v46  ;;  %5117 = vtanh.f32 %v2536_v44  ;;  %v2410_v50 = vadd.f32 %v4829_v48, %v5553_v38  ;;  %v1888_v51 = vpop.f32.mrb[31].mxu1 }
 0x21e   :  { %3208 = vperm.xlu0 %4987, %v2911_v45   ;;  %5119 = vtanh.f32 %v2535_v47  ;;  %v2409_v53 = vadd.f32 %v5553_v38, %v1888_v51  ;;  %v2914_v2 = vadd.f32 0.5, %v2786_v52 }
 0x21f   :  { %v5110_v55 = vpop.eup %5109  ;;  %v2538_v56 = vmul.f32 0.5, %v2410_v50  ;;  %v2913_v57 = vadd.f32 0.5, %v2785_v49 }
 0x220   :  { %v5112_v58 = vpop.eup %5111  ;;  %v2537_v59 = vmul.f32 0.5, %v2409_v53  ;;  %3211 = vperm.xlu1 %4988, %v2912_v54   ;;  %v4832_v60 = vpop.f32.mrb[32].mxu1  ;;  %v2788_v0 = vmul.f32 0.5, %v5110_v55 }
 0x221   :  { %v2787_v61 = vmul.f32 0.5, %v5112_v58  ;;  %5121 = vtanh.f32 %v2538_v56  ;;  %v2412_v62 = vadd.f32 %v4832_v60, %v5553_v38  ;;  %v1898_v63 = vpop.f32.mrb[33].mxu1 }
 0x222   :  { %3214 = vperm.xlu0 %4987, %v2913_v57   ;;  %5123 = vtanh.f32 %v2537_v59  ;;  %v2411_v1 = vadd.f32 %v5553_v38, %v1898_v63  ;;  %v2916_v14 = vadd.f32 0.5, %v2788_v0 }
 0x223   :  { %v5114_v3 = vpop.eup %5113  ;;  %v2540_v4 = vmul.f32 0.5, %v2412_v62  ;;  %v2915_v5 = vadd.f32 0.5, %v2787_v61 }
 0x224   :  { %v5116_v6 = vpop.eup %5115  ;;  %v2539_v7 = vmul.f32 0.5, %v2411_v1  ;;  %3217 = vperm.xlu1 %4988, %v2914_v2   ;;  %v4835_v8 = vpop.f32.mrb[34].mxu1  ;;  %v2790_v12 = vmul.f32 0.5, %v5114_v3 }
 0x225   :  { %v2789_v9 = vmul.f32 0.5, %v5116_v6  ;;  %5125 = vtanh.f32 %v2540_v4  ;;  %v2414_v10 = vadd.f32 %v4835_v8, %v5553_v38  ;;  %v1908_v11 = vpop.f32.mrb[35].mxu1 }
 0x226   :  { %3220 = vperm.xlu0 %4987, %v2915_v5   ;;  %5127 = vtanh.f32 %v2539_v7  ;;  %v2413_v13 = vadd.f32 %v5553_v38, %v1908_v11  ;;  %v2918_v26 = vadd.f32 0.5, %v2790_v12 }
 0x227   :  { %v5118_v15 = vpop.eup %5117  ;;  %v2542_v16 = vmul.f32 0.5, %v2414_v10  ;;  %v2917_v17 = vadd.f32 0.5, %v2789_v9 }
 0x228   :  { %v5120_v18 = vpop.eup %5119  ;;  %v2541_v19 = vmul.f32 0.5, %v2413_v13  ;;  %3223 = vperm.xlu1 %4988, %v2916_v14   ;;  %v4838_v20 = vpop.f32.mrb[36].mxu1  ;;  %v2792_v24 = vmul.f32 0.5, %v5118_v15 }
 0x229   :  { %v2791_v21 = vmul.f32 0.5, %v5120_v18  ;;  %5129 = vtanh.f32 %v2542_v16  ;;  %v2416_v22 = vadd.f32 %v4838_v20, %v5553_v38  ;;  %v1918_v23 = vpop.f32.mrb[37].mxu1 }
 0x22a   :  { %3226 = vperm.xlu0 %4987, %v2917_v17   ;;  %5131 = vtanh.f32 %v2541_v19  ;;  %v2415_v25 = vadd.f32 %v5553_v38, %v1918_v23  ;;  %v2920_v39 = vadd.f32 0.5, %v2792_v24 }
 0x22b   :  { %v5122_v27 = vpop.eup %5121  ;;  %v2544_v28 = vmul.f32 0.5, %v2416_v22  ;;  %v2919_v29 = vadd.f32 0.5, %v2791_v21 }
 0x22c   :  { %v5124_v30 = vpop.eup %5123  ;;  %v2543_v31 = vmul.f32 0.5, %v2415_v25  ;;  %3229 = vperm.xlu1 %4988, %v2918_v26   ;;  %v4841_v32 = vpop.f32.mrb[38].mxu1  ;;  %v2794_v36 = vmul.f32 0.5, %v5122_v27 }
 0x22d   :  { %v2793_v33 = vmul.f32 0.5, %v5124_v30  ;;  %5133 = vtanh.f32 %v2544_v28  ;;  %v2418_v34 = vadd.f32 %v4841_v32, %v5553_v38  ;;  %v1928_v35 = vpop.f32.mrb[39].mxu1 }
 0x22e   :  { %3232 = vperm.xlu0 %4987, %v2919_v29   ;;  %5135 = vtanh.f32 %v2543_v31  ;;  %v2417_v37 = vadd.f32 %v5553_v38, %v1928_v35  ;;  %v2922_v51 = vadd.f32 0.5, %v2794_v36 }
 0x22f   :  { %v5126_v40 = vpop.eup %5125  ;;  %v2546_v41 = vmul.f32 0.5, %v2418_v34  ;;  %v2921_v42 = vadd.f32 0.5, %v2793_v33 }
 0x230   :  { %v5128_v43 = vpop.eup %5127  ;;  %v2545_v44 = vmul.f32 0.5, %v2417_v37  ;;  %3235 = vperm.xlu1 %4988, %v2920_v39   ;;  %v4844_v45 = vpop.f32.mrb[40].mxu1  ;;  %v2796_v49 = vmul.f32 0.5, %v5126_v40 }
 0x231   :  { %v2795_v46 = vmul.f32 0.5, %v5128_v43  ;;  %5137 = vtanh.f32 %v2546_v41  ;;  %v2420_v47 = vadd.f32 %v4844_v45, %v5553_v38  ;;  %v1938_v48 = vpop.f32.mrb[41].mxu1 }
 0x232   :  { %3238 = vperm.xlu0 %4987, %v2921_v42   ;;  %5139 = vtanh.f32 %v2545_v44  ;;  %v2419_v50 = vadd.f32 %v5553_v38, %v1938_v48  ;;  %v2924_v63 = vadd.f32 0.5, %v2796_v49 }
 0x233   :  { %v5130_v52 = vpop.eup %5129  ;;  %v2548_v53 = vmul.f32 0.5, %v2420_v47  ;;  %v2923_v54 = vadd.f32 0.5, %v2795_v46 }
 0x234   :  { %v5132_v55 = vpop.eup %5131  ;;  %v2547_v56 = vmul.f32 0.5, %v2419_v50  ;;  %3241 = vperm.xlu1 %4988, %v2922_v51   ;;  %v4847_v57 = vpop.f32.mrb[42].mxu1  ;;  %v2798_v61 = vmul.f32 0.5, %v5130_v52 }
 0x235   :  { %v2797_v58 = vmul.f32 0.5, %v5132_v55  ;;  %5141 = vtanh.f32 %v2548_v53  ;;  %v2422_v59 = vadd.f32 %v4847_v57, %v5553_v38  ;;  %v1948_v60 = vpop.f32.mrb[43].mxu1 }
 0x236   :  { %3244 = vperm.xlu0 %4987, %v2923_v54   ;;  %5143 = vtanh.f32 %v2547_v56  ;;  %v2421_v62 = vadd.f32 %v5553_v38, %v1948_v60  ;;  %v2926_v11 = vadd.f32 0.5, %v2798_v61 }
 0x237   :  { %v5134_v0 = vpop.eup %5133  ;;  %v2550_v1 = vmul.f32 0.5, %v2422_v59  ;;  %v2925_v2 = vadd.f32 0.5, %v2797_v58 }
 0x238   :  { %v5136_v3 = vpop.eup %5135  ;;  %v2549_v4 = vmul.f32 0.5, %v2421_v62  ;;  %3247 = vperm.xlu1 %4988, %v2924_v63   ;;  %v4850_v5 = vpop.f32.mrb[44].mxu1  ;;  %v2800_v9 = vmul.f32 0.5, %v5134_v0 }
 0x239   :  { %v2799_v6 = vmul.f32 0.5, %v5136_v3  ;;  %5145 = vtanh.f32 %v2550_v1  ;;  %v2424_v7 = vadd.f32 %v4850_v5, %v5553_v38  ;;  %v1958_v8 = vpop.f32.mrb[45].mxu1 }
 0x23a   :  { %3250 = vperm.xlu0 %4987, %v2925_v2   ;;  %5147 = vtanh.f32 %v2549_v4  ;;  %v2423_v10 = vadd.f32 %v5553_v38, %v1958_v8  ;;  %v2928_v23 = vadd.f32 0.5, %v2800_v9 }
 0x23b   :  { %v5138_v12 = vpop.eup %5137  ;;  %v2552_v13 = vmul.f32 0.5, %v2424_v7  ;;  %v2927_v14 = vadd.f32 0.5, %v2799_v6 }
 0x23c   :  { %v5140_v15 = vpop.eup %5139  ;;  %v2551_v16 = vmul.f32 0.5, %v2423_v10  ;;  %3253 = vperm.xlu1 %4988, %v2926_v11   ;;  %v4853_v17 = vpop.f32.mrb[46].mxu1  ;;  %v2802_v21 = vmul.f32 0.5, %v5138_v12 }
 0x23d   :  { %v2801_v18 = vmul.f32 0.5, %v5140_v15  ;;  %5149 = vtanh.f32 %v2552_v13  ;;  %v2426_v19 = vadd.f32 %v4853_v17, %v5553_v38  ;;  %v1968_v20 = vpop.f32.mrb[47].mxu1 }
 0x23e   :  { %3256 = vperm.xlu0 %4987, %v2927_v14   ;;  %5151 = vtanh.f32 %v2551_v16  ;;  %v2425_v22 = vadd.f32 %v5553_v38, %v1968_v20  ;;  %v2930_v35 = vadd.f32 0.5, %v2802_v21 }
 0x23f   :  { %v5142_v24 = vpop.eup %5141  ;;  %v2554_v25 = vmul.f32 0.5, %v2426_v19  ;;  %v2929_v26 = vadd.f32 0.5, %v2801_v18 }
 0x240   :  { %v5144_v27 = vpop.eup %5143  ;;  %v2553_v28 = vmul.f32 0.5, %v2425_v22  ;;  %3259 = vperm.xlu1 %4988, %v2928_v23   ;;  %v4856_v29 = vpop.f32.mrb[48].mxu1  ;;  %v2804_v33 = vmul.f32 0.5, %v5142_v24 }
 0x241   :  { %v2803_v30 = vmul.f32 0.5, %v5144_v27  ;;  %5153 = vtanh.f32 %v2554_v25  ;;  %v2428_v31 = vadd.f32 %v4856_v29, %v5553_v38  ;;  %v1978_v32 = vpop.f32.mrb[49].mxu1 }
 0x242   :  { %3262 = vperm.xlu0 %4987, %v2929_v26   ;;  %5155 = vtanh.f32 %v2553_v28  ;;  %v2427_v34 = vadd.f32 %v5553_v38, %v1978_v32  ;;  %v2932_v48 = vadd.f32 0.5, %v2804_v33 }
 0x243   :  { %v5146_v36 = vpop.eup %5145  ;;  %v2556_v37 = vmul.f32 0.5, %v2428_v31  ;;  %v2931_v39 = vadd.f32 0.5, %v2803_v30 }
 0x244   :  { %v5148_v40 = vpop.eup %5147  ;;  %v2555_v41 = vmul.f32 0.5, %v2427_v34  ;;  %3265 = vperm.xlu1 %4988, %v2930_v35   ;;  %v4859_v42 = vpop.f32.mrb[50].mxu1  ;;  %v2806_v46 = vmul.f32 0.5, %v5146_v36 }
 0x245   :  { %v2805_v43 = vmul.f32 0.5, %v5148_v40  ;;  %5157 = vtanh.f32 %v2556_v37  ;;  %v2430_v44 = vadd.f32 %v4859_v42, %v5553_v38  ;;  %v1988_v45 = vpop.f32.mrb[51].mxu1 }
 0x246   :  { %3268 = vperm.xlu0 %4987, %v2931_v39   ;;  %5159 = vtanh.f32 %v2555_v41  ;;  %v2429_v47 = vadd.f32 %v5553_v38, %v1988_v45  ;;  %v2934_v60 = vadd.f32 0.5, %v2806_v46 }
 0x247   :  { %v5150_v49 = vpop.eup %5149  ;;  %v2558_v50 = vmul.f32 0.5, %v2430_v44  ;;  %v2933_v51 = vadd.f32 0.5, %v2805_v43 }
 0x248   :  { %v5152_v52 = vpop.eup %5151  ;;  %v2557_v53 = vmul.f32 0.5, %v2429_v47  ;;  %3271 = vperm.xlu1 %4988, %v2932_v48   ;;  %v4862_v54 = vpop.f32.mrb[52].mxu1  ;;  %v2808_v58 = vmul.f32 0.5, %v5150_v49 }
 0x249   :  { %v2807_v55 = vmul.f32 0.5, %v5152_v52  ;;  %5161 = vtanh.f32 %v2558_v50  ;;  %v2432_v56 = vadd.f32 %v4862_v54, %v5553_v38  ;;  %v1998_v57 = vpop.f32.mrb[53].mxu1 }
 0x24a   :  { %3274 = vperm.xlu0 %4987, %v2933_v51   ;;  %5163 = vtanh.f32 %v2557_v53  ;;  %v2431_v59 = vadd.f32 %v5553_v38, %v1998_v57  ;;  %v2936_v8 = vadd.f32 0.5, %v2808_v58 }
 0x24b   :  { %v5154_v61 = vpop.eup %5153  ;;  %v2560_v62 = vmul.f32 0.5, %v2432_v56  ;;  %v2935_v63 = vadd.f32 0.5, %v2807_v55 }
 0x24c   :  { %v5156_v0 = vpop.eup %5155  ;;  %v2559_v1 = vmul.f32 0.5, %v2431_v59  ;;  %3277 = vperm.xlu1 %4988, %v2934_v60   ;;  %v4865_v2 = vpop.f32.mrb[54].mxu1  ;;  %v2810_v6 = vmul.f32 0.5, %v5154_v61 }
 0x24d   :  { %v2809_v3 = vmul.f32 0.5, %v5156_v0  ;;  %5165 = vtanh.f32 %v2560_v62  ;;  %v2434_v4 = vadd.f32 %v4865_v2, %v5553_v38  ;;  %v2008_v5 = vpop.f32.mrb[55].mxu1 }
 0x24e   :  { %3280 = vperm.xlu0 %4987, %v2935_v63   ;;  %5167 = vtanh.f32 %v2559_v1  ;;  %v2433_v7 = vadd.f32 %v5553_v38, %v2008_v5  ;;  %v2938_v20 = vadd.f32 0.5, %v2810_v6 }
 0x24f   :  { %v5158_v9 = vpop.eup %5157  ;;  %v2562_v10 = vmul.f32 0.5, %v2434_v4  ;;  %v2937_v11 = vadd.f32 0.5, %v2809_v3 }
 0x250   :  { %v5160_v12 = vpop.eup %5159  ;;  %v2561_v13 = vmul.f32 0.5, %v2433_v7  ;;  %3283 = vperm.xlu1 %4988, %v2936_v8   ;;  %v4868_v14 = vpop.f32.mrb[56].mxu1  ;;  %v2812_v18 = vmul.f32 0.5, %v5158_v9 }
 0x251   :  { %v2811_v15 = vmul.f32 0.5, %v5160_v12  ;;  %5169 = vtanh.f32 %v2562_v10  ;;  %v2436_v16 = vadd.f32 %v4868_v14, %v5553_v38  ;;  %v2018_v17 = vpop.f32.mrb[57].mxu1 }
 0x252   :  { %3286 = vperm.xlu0 %4987, %v2937_v11   ;;  %5171 = vtanh.f32 %v2561_v13  ;;  %v2435_v19 = vadd.f32 %v5553_v38, %v2018_v17  ;;  %v2940_v32 = vadd.f32 0.5, %v2812_v18 }
 0x253   :  { %v5162_v21 = vpop.eup %5161  ;;  %v2564_v22 = vmul.f32 0.5, %v2436_v16  ;;  %v2939_v23 = vadd.f32 0.5, %v2811_v15 }
 0x254   :  { %v5164_v24 = vpop.eup %5163  ;;  %v2563_v25 = vmul.f32 0.5, %v2435_v19  ;;  %3289 = vperm.xlu1 %4988, %v2938_v20   ;;  %v4871_v26 = vpop.f32.mrb[58].mxu1  ;;  %v2814_v30 = vmul.f32 0.5, %v5162_v21 }
 0x255   :  { %v2813_v27 = vmul.f32 0.5, %v5164_v24  ;;  %5173 = vtanh.f32 %v2564_v22  ;;  %v2438_v28 = vadd.f32 %v4871_v26, %v5553_v38  ;;  %v2028_v29 = vpop.f32.mrb[59].mxu1 }
 0x256   :  { %3292 = vperm.xlu0 %4987, %v2939_v23   ;;  %5175 = vtanh.f32 %v2563_v25  ;;  %v2437_v31 = vadd.f32 %v5553_v38, %v2028_v29  ;;  %v2942_v45 = vadd.f32 0.5, %v2814_v30 }
 0x257   :  { %v5166_v33 = vpop.eup %5165  ;;  %v2566_v34 = vmul.f32 0.5, %v2438_v28  ;;  %v2941_v35 = vadd.f32 0.5, %v2813_v27 }
 0x258   :  { %v5168_v36 = vpop.eup %5167  ;;  %v2565_v37 = vmul.f32 0.5, %v2437_v31  ;;  %3295 = vperm.xlu1 %4988, %v2940_v32   ;;  %v4874_v39 = vpop.f32.mrb[60].mxu1  ;;  %v2816_v43 = vmul.f32 0.5, %v5166_v33 }
 0x259   :  { %v2815_v40 = vmul.f32 0.5, %v5168_v36  ;;  %5177 = vtanh.f32 %v2566_v34  ;;  %v2440_v41 = vadd.f32 %v4874_v39, %v5553_v38  ;;  %v2038_v42 = vpop.f32.mrb[61].mxu1 }
 0x25a   :  { %3298 = vperm.xlu0 %4987, %v2941_v35   ;;  %5179 = vtanh.f32 %v2565_v37  ;;  %v2439_v44 = vadd.f32 %v5553_v38, %v2038_v42  ;;  %v2944_v57 = vadd.f32 0.5, %v2816_v43 }
 0x25b   :  { %v5170_v46 = vpop.eup %5169  ;;  %v2568_v47 = vmul.f32 0.5, %v2440_v41  ;;  %v2943_v48 = vadd.f32 0.5, %v2815_v40 }
 0x25c   :  { %v5172_v49 = vpop.eup %5171  ;;  %v2567_v50 = vmul.f32 0.5, %v2439_v44  ;;  %3301 = vperm.xlu1 %4988, %v2942_v45   ;;  %v4877_v51 = vpop.f32.mrb[62].mxu1  ;;  %v2818_v55 = vmul.f32 0.5, %v5170_v46 }
 0x25d   :  { %v2817_v52 = vmul.f32 0.5, %v5172_v49  ;;  %5181 = vtanh.f32 %v2568_v47  ;;  %v2442_v53 = vadd.f32 %v4877_v51, %v5553_v38  ;;  %v2048_v54 = vpop.f32.mrb[63].mxu1 }
 0x25e   :  { %3304 = vperm.xlu0 %4987, %v2943_v48   ;;  %5183 = vtanh.f32 %v2567_v50  ;;  %v2441_v56 = vadd.f32 %v5553_v38, %v2048_v54  ;;  %v2946_v5 = vadd.f32 0.5, %v2818_v55 }
 0x25f   :  { %v5174_v58 = vpop.eup %5173  ;;  %v2570_v59 = vmul.f32 0.5, %v2442_v53  ;;  %v2945_v60 = vadd.f32 0.5, %v2817_v52 }
 0x260   :  { %v5176_v61 = vpop.eup %5175  ;;  %v2569_v62 = vmul.f32 0.5, %v2441_v56  ;;  %3307 = vperm.xlu1 %4988, %v2944_v57   ;;  %v4880_v63 = vpop.f32.mrb[64].mxu1  ;;  %v2820_v3 = vmul.f32 0.5, %v5174_v58 }
 0x261   :  { %v2819_v0 = vmul.f32 0.5, %v5176_v61  ;;  %5185 = vtanh.f32 %v2570_v59  ;;  %v2444_v1 = vadd.f32 %v4880_v63, %v5553_v38  ;;  %v2058_v2 = vpop.f32.mrb[65].mxu1 }
 0x262   :  { %3310 = vperm.xlu0 %4987, %v2945_v60   ;;  %5187 = vtanh.f32 %v2569_v62  ;;  %v2443_v4 = vadd.f32 %v5553_v38, %v2058_v2  ;;  %v2948_v17 = vadd.f32 0.5, %v2820_v3 }
 0x263   :  { %v5178_v6 = vpop.eup %5177  ;;  %v2572_v7 = vmul.f32 0.5, %v2444_v1  ;;  %v2947_v8 = vadd.f32 0.5, %v2819_v0 }
 0x264   :  { %v5180_v9 = vpop.eup %5179  ;;  %v2571_v10 = vmul.f32 0.5, %v2443_v4  ;;  %3313 = vperm.xlu1 %4988, %v2946_v5   ;;  %v4883_v11 = vpop.f32.mrb[66].mxu1  ;;  %v2822_v15 = vmul.f32 0.5, %v5178_v6 }
 0x265   :  { %v2821_v12 = vmul.f32 0.5, %v5180_v9  ;;  %5189 = vtanh.f32 %v2572_v7  ;;  %v2446_v13 = vadd.f32 %v4883_v11, %v5553_v38  ;;  %v2068_v14 = vpop.f32.mrb[67].mxu1 }
 0x266   :  { %3316 = vperm.xlu0 %4987, %v2947_v8   ;;  %5191 = vtanh.f32 %v2571_v10  ;;  %v2445_v16 = vadd.f32 %v5553_v38, %v2068_v14  ;;  %v2950_v29 = vadd.f32 0.5, %v2822_v15  ;;  %v3531_v10 = vlaneseq }
 0x267   :  { %v5182_v18 = vpop.eup %5181  ;;  %v2574_v19 = vmul.f32 0.5, %v2446_v13  ;;  %v2949_v20 = vadd.f32 0.5, %v2821_v12 }
 0x268   :  { %v5184_v21 = vpop.eup %5183  ;;  %v2573_v22 = vmul.f32 0.5, %v2445_v16  ;;  %3319 = vperm.xlu1 %4988, %v2948_v17   ;;  %v4886_v23 = vpop.f32.mrb[68].mxu1  ;;  %v2824_v27 = vmul.f32 0.5, %v5182_v18 }
 0x269   :  { %v2823_v24 = vmul.f32 0.5, %v5184_v21  ;;  %5193 = vtanh.f32 %v2574_v19  ;;  %v2448_v25 = vadd.f32 %v4886_v23, %v5553_v38  ;;  %v2078_v26 = vpop.f32.mrb[69].mxu1 }
 0x26a   :  { %3322 = vperm.xlu0 %4987, %v2949_v20   ;;  %5195 = vtanh.f32 %v2573_v22  ;;  %v2447_v28 = vadd.f32 %v5553_v38, %v2078_v26  ;;  %v2952_v42 = vadd.f32 0.5, %v2824_v27 }
 0x26b   :  { %v5186_v30 = vpop.eup %5185  ;;  %v2576_v31 = vmul.f32 0.5, %v2448_v25  ;;  %v2951_v32 = vadd.f32 0.5, %v2823_v24  ;;  %v5662_v24 = vand.u32 127, %v3531_v10 }
 0x26c   :  { %v5188_v33 = vpop.eup %5187  ;;  %v2575_v34 = vmul.f32 0.5, %v2447_v28  ;;  %3325 = vperm.xlu1 %4988, %v2950_v29   ;;  %v4889_v35 = vpop.f32.mrb[70].mxu1  ;;  %v2826_v40 = vmul.f32 0.5, %v5186_v30 }
 0x26d   :  { %v2825_v36 = vmul.f32 0.5, %v5188_v33  ;;  %5197 = vtanh.f32 %v2576_v31  ;;  %v2450_v37 = vadd.f32 %v4889_v35, %v5553_v38  ;;  %v2088_v39 = vpop.f32.mrb[71].mxu1 }
 0x26e   :  { %3328 = vperm.xlu0 %4987, %v2951_v32   ;;  %5199 = vtanh.f32 %v2575_v34  ;;  %v2449_v41 = vadd.f32 %v5553_v38, %v2088_v39  ;;  %v2954_v54 = vadd.f32 0.5, %v2826_v40  ;;  %v5670_v40 = vshrl.u32 %v3531_v10, 7 }
 0x26f   :  { %v5190_v43 = vpop.eup %5189  ;;  %v2578_v44 = vmul.f32 0.5, %v2450_v37  ;;  %v2953_v45 = vadd.f32 0.5, %v2825_v36  ;;  %v3558_v10 = vadd.s32 4294967264, %v5662_v24 }
 0x270   :  { %v5192_v46 = vpop.eup %5191  ;;  %v2577_v47 = vmul.f32 0.5, %v2449_v41  ;;  %3331 = vperm.xlu1 %4988, %v2952_v42   ;;  %v4892_v48 = vpop.f32.mrb[72].mxu1  ;;  %v2828_v52 = vmul.f32 0.5, %v5190_v43  ;;  %v3537_v41 = vadd.s32 4294967288, %v5662_v24 }
 0x271   :  { %v2827_v49 = vmul.f32 0.5, %v5192_v46  ;;  %5201 = vtanh.f32 %v2578_v44  ;;  %v2452_v50 = vadd.f32 %v4892_v48, %v5553_v38  ;;  %v2098_v51 = vpop.f32.mrb[73].mxu1 }
 0x272   :  { %3334 = vperm.xlu0 %4987, %v2953_v45   ;;  %5203 = vtanh.f32 %v2577_v47  ;;  %v2451_v53 = vadd.f32 %v5553_v38, %v2098_v51  ;;  %v2956_v3 = vadd.f32 0.5, %v2828_v52  ;;  %v3551_v52 = vadd.s32 4294967272, %v5662_v24 }
 0x273   :  { %v5194_v55 = vpop.eup %5193  ;;  %v2580_v56 = vmul.f32 0.5, %v2452_v50  ;;  %v5650_v57 = vpop.permute.xlu0 %3151  ;;  %v2955_v58 = vadd.f32 0.5, %v2827_v49 }
 0x274   :  { %v5196_v59 = vpop.eup %5195  ;;  %v2579_v60 = vmul.f32 0.5, %v2451_v53  ;;  %3337 = vperm.xlu1 %4988, %v2954_v54   ;;  %v4895_v61 = vpop.f32.mrb[74].mxu1  ;;  %v2830_v1 = vmul.f32 0.5, %v5194_v55 }
 0x275   :  { %v2829_v62 = vmul.f32 0.5, %v5196_v59  ;;  %5205 = vtanh.f32 %v2580_v56  ;;  %v2454_v63 = vadd.f32 %v4895_v61, %v5553_v38  ;;  %v2108_v0 = vpop.f32.mrb[75].mxu1  ;;  %v3544_v59 = vadd.s32 4294967280, %v5662_v24 }
 0x276   :  { %3340 = vperm.xlu0 %4987, %v2955_v58   ;;  %5207 = vtanh.f32 %v2579_v60  ;;  %v2453_v2 = vadd.f32 %v5553_v38, %v2108_v0  ;;  %v2958_v18 = vadd.f32 0.5, %v2830_v1  ;;  %v5681_v58 = vsub.s32 %v3537_v41, %v5670_v40 }
 0x277   :  { %v5198_v4 = vpop.eup %5197  ;;  %v2582_v5 = vmul.f32 0.5, %v2454_v63  ;;  %v5654_v6 = vpop.permute.xlu0 %3148  ;;  %v2957_v8 = vadd.f32 0.5, %v2829_v62  ;;  %v5688_v0 = vsub.s32 %v5662_v24, %v5670_v40 }
 0x278   :  { %v5656_v7 = vpop.permute.xlu1 %3157  ;;  %v5200_v9 = vpop.eup %5199  ;;  %v2581_v11 = vmul.f32 0.5, %v2453_v2  ;;  %3343 = vperm.xlu1 %4988, %v2956_v3   ;;  %v2832_v16 = vmul.f32 0.5, %v5198_v4 }
 0x279   :  { %v4898_v12 = vpop.f32.mrb[76].mxu1  ;;  %v2831_v13 = vmul.f32 0.5, %v5200_v9  ;;  %5209 = vtanh.f32 %v2582_v5  ;;  %v5693_v9 = vsub.s32 %v3551_v52, %v5670_v40 }
 0x27a   :  { %v2456_v14 = vadd.f32 %v4898_v12, %v5553_v38  ;;  %3346 = vperm.xlu0 %4987, %v2957_v8   ;;  %v2118_v15 = vpop.f32.mrb[77].mxu1  ;;  %5211 = vtanh.f32 %v2581_v11  ;;  %v2960_v33 = vadd.f32 0.5, %v2832_v16  ;;  %v3565_v16 = vadd.s32 4294967256, %v5662_v24 }
 0x27b   :  { %v2455_v17 = vadd.f32 %v5553_v38, %v2118_v15  ;;  %v5202_v19 = vpop.eup %5201  ;;  %v2959_v22 = vadd.f32 0.5, %v2831_v13  ;;  %v5699_v15 = vsub.s32 %v3544_v59, %v5670_v40 }
 0x27c   :  { %v2584_v20 = vmul.f32 0.5, %v2456_v14  ;;  %v5660_v21 = vpop.permute.xlu1 %3154  ;;  %v5204_v23 = vpop.eup %5203  ;;  %3349 = vperm.xlu1 %4988, %v2958_v18   ;;  %v2834_v31 = vmul.f32 0.5, %v5202_v19  ;;  %v5715_v41 = vsub.s32 %v3565_v16, %v5670_v40 }
 0x27d   :  { %v2583_v25 = vmul.f32 0.5, %v2455_v17  ;;  %v5664_v26 = vpop.permute.xlu0 %3160  ;;  %v4901_v27 = vpop.f32.mrb[78].mxu1  ;;  %v2833_v28 = vmul.f32 0.5, %v5204_v23  ;;  %v3572_v17 = vadd.s32 4294967248, %v5662_v24  ;;  %v3579_v23 = vadd.s32 4294967240, %v5662_v24 }
 0x27e   :  { %5213 = vtanh.f32 %v2584_v20  ;;  %v2458_v29 = vadd.f32 %v4901_v27, %v5553_v38  ;;  %3352 = vperm.xlu0 %4987, %v2959_v22   ;;  %v2128_v30 = vpop.f32.mrb[79].mxu1  ;;  %v2962_v50 = vadd.f32 0.5, %v2834_v31 }
 0x27f   :  { %5215 = vtanh.f32 %v2583_v25  ;;  %v2457_v32 = vadd.f32 %v5553_v38, %v2128_v30  ;;  %v5206_v34 = vpop.eup %5205  ;;  %v2961_v37 = vadd.f32 0.5, %v2833_v28 }
 0x280   :  { %v2586_v35 = vmul.f32 0.5, %v2458_v29  ;;  %v5668_v36 = vpop.permute.xlu1 %3163  ;;  %v5208_v39 = vpop.eup %5207  ;;  %3355 = vperm.xlu1 %4988, %v2960_v33   ;;  %v2836_v48 = vmul.f32 0.5, %v5206_v34  ;;  %v3586_v33 = vadd.s32 4294967232, %v5662_v24 }
 0x281   :  { %v2585_v42 = vmul.f32 0.5, %v2457_v32  ;;  %v5673_v43 = vpop.permute.xlu0 %3166  ;;  %v4904_v44 = vpop.f32.mrb[80].mxu1  ;;  %v2835_v45 = vmul.f32 0.5, %v5208_v39  ;;  %v5709_v32 = vsub.s32 %v3558_v10, %v5670_v40 }
 0x282   :  { %5217 = vtanh.f32 %v2586_v35  ;;  %v2460_v46 = vadd.f32 %v4904_v44, %v5553_v38  ;;  %3358 = vperm.xlu0 %4987, %v2961_v37   ;;  %v2138_v47 = vpop.f32.mrb[81].mxu1  ;;  %v2964_v5 = vadd.f32 0.5, %v2836_v48  ;;  %v3593_v44 = vadd.s32 4294967224, %v5662_v24 }
 0x283   :  { %5219 = vtanh.f32 %v2585_v42  ;;  %v2459_v49 = vadd.f32 %v5553_v38, %v2138_v47  ;;  %v5210_v51 = vpop.eup %5209  ;;  %v2963_v55 = vadd.f32 0.5, %v2835_v45  ;;  %v5718_v42 = vsub.s32 %v3572_v17, %v5670_v40 }
 0x284   :  { %v2588_v53 = vmul.f32 0.5, %v2460_v46  ;;  %v5678_v54 = vpop.permute.xlu1 %3169  ;;  %v5212_v56 = vpop.eup %5211  ;;  %3361 = vperm.xlu1 %4988, %v2962_v50   ;;  %v2838_v3 = vmul.f32 0.5, %v5210_v51  ;;  %v5729_v59 = vsub.s32 %v3586_v33, %v5670_v40 }
 0x285   :  { %v2587_v60 = vmul.f32 0.5, %v2459_v49  ;;  %v5684_v61 = vpop.permute.xlu0 %3172  ;;  %v4907_v62 = vpop.f32.mrb[82].mxu1  ;;  %v2837_v63 = vmul.f32 0.5, %v5212_v56  ;;  %v5724_v49 = vsub.s32 %v3579_v23, %v5670_v40 }
 0x286   :  { %5221 = vtanh.f32 %v2588_v53  ;;  %v2462_v1 = vadd.f32 %v4907_v62, %v5553_v38  ;;  %3364 = vperm.xlu0 %4987, %v2963_v55   ;;  %v2148_v2 = vpop.f32.mrb[83].mxu1  ;;  %v2966_v30 = vadd.f32 0.5, %v2838_v3  ;;  %v5735_v3 = vsub.s32 %v3593_v44, %v5670_v40 }
 0x287   :  { %5223 = vtanh.f32 %v2587_v60  ;;  %v2461_v4 = vadd.f32 %v5553_v38, %v2148_v2  ;;  %v2965_v13 = vadd.f32 0.5, %v2837_v63  ;;  %v3600_v60 = vadd.s32 4294967216, %v5662_v24 }
 0x288   :  { %v5214_v8 = vpop.eup %5213  ;;  %v2590_v11 = vmul.f32 0.5, %v2462_v1  ;;  %v5696_v12 = vpop.permute.xlu1 %3175  ;;  %3367 = vperm.xlu1 %4988, %v2964_v5   ;;  %v3614_v5 = vadd.s32 4294967200, %v5662_v24 }
 0x289   :  { %v5216_v14 = vpop.eup %5215  ;;  %v2589_v18 = vmul.f32 0.5, %v2461_v4  ;;  %v5703_v19 = vpop.permute.xlu0 %3178  ;;  %v2840_v28 = vmul.f32 0.5, %v5214_v8  ;;  %v3607_v4 = vadd.s32 4294967208, %v5662_v24 }
 0x28a   :  { %v4910_v20 = vpop.f32.mrb[84].mxu1  ;;  %v2839_v22 = vmul.f32 0.5, %v5216_v14  ;;  %5225 = vtanh.f32 %v2590_v11  ;;  %3370 = vperm.xlu0 %4987, %v2965_v13   ;;  %v3621_v14 = vadd.s32 4294967192, %v5662_v24 }
 0x28b   :  { %v2464_v25 = vadd.f32 %v4910_v20, %v5553_v38  ;;  %v2158_v27 = vpop.f32.mrb[85].mxu1  ;;  %5227 = vtanh.f32 %v2589_v18  ;;  %v2968_v55 = vadd.f32 0.5, %v2840_v28  ;;  %v3635_v28 = vadd.s32 4294967176, %v5662_v24 }
 0x28c   :  { %v2463_v29 = vadd.f32 %v5553_v38, %v2158_v27  ;;  %v5218_v31 = vpop.eup %5217  ;;  %v5712_v35 = vpop.permute.xlu1 %3181  ;;  %v2967_v37 = vadd.f32 0.5, %v2839_v22  ;;  %3373 = vperm.xlu1 %4988, %v2966_v30  }
 0x28d   :  { %v2592_v34 = vmul.f32 0.5, %v2464_v25  ;;  %v5220_v39 = vpop.eup %5219  ;;  %v5721_v46 = vpop.permute.xlu0 %3184  ;;  %v2842_v52 = vmul.f32 0.5, %v5218_v31  ;;  %v3628_v25 = vadd.s32 4294967184, %v5662_v24 }
 0x28e   :  { %v2591_v45 = vmul.f32 0.5, %v2463_v29  ;;  %v4913_v47 = vpop.f32.mrb[86].mxu1  ;;  %v2841_v48 = vmul.f32 0.5, %v5220_v39  ;;  %3376 = vperm.xlu0 %4987, %v2967_v37   ;;  %v5752_v37 = vsub.s32 %v3607_v4, %v5670_v40 }
 0x28f   :  { %5229 = vtanh.f32 %v2592_v34  ;;  %v2466_v50 = vadd.f32 %v4913_v47, %v5553_v38  ;;  %v2168_v51 = vpop.f32.mrb[87].mxu1  ;;  %v2970_v22 = vadd.f32 0.5, %v2842_v52  ;;  %v5749_v34 = vsub.s32 %v3600_v60, %v5670_v40 }
 0x290   :  { %5231 = vtanh.f32 %v2591_v45  ;;  %v2465_v53 = vadd.f32 %v5553_v38, %v2168_v51  ;;  %v5222_v56 = vpop.eup %5221  ;;  %v5732_v63 = vpop.permute.xlu1 %3187  ;;  %v2969_v1 = vadd.f32 0.5, %v2841_v48  ;;  %3379 = vperm.xlu1 %4988, %v2968_v55   ;;  %v5755_v48 = vsub.s32 %v3614_v5, %v5670_v40 }
 0x291   :  { %v2594_v62 = vmul.f32 0.5, %v2466_v50  ;;  %v5224_v2 = vpop.eup %5223  ;;  %v5739_v10 = vpop.permute.xlu0 %3190  ;;  %v2844_v18 = vmul.f32 0.5, %v5222_v56  ;;  %v5759_v51 = vsub.s32 %v3621_v14, %v5670_v40  ;;  %v5763_v56 = vsub.s32 %v3628_v25, %v5670_v40 }
 0x292   :  { %v2593_v8 = vmul.f32 0.5, %v2465_v53  ;;  %v4916_v11 = vpop.f32.mrb[88].mxu1  ;;  %v2843_v13 = vmul.f32 0.5, %v5224_v2  ;;  %3382 = vperm.xlu0 %4987, %v2969_v1   ;;  %v5766_v60 = vsub.s32 %v3635_v28, %v5670_v40  ;;  %v3541_v28 = vrot.slane %v5650_v57, %v5681_v58 }
 0x293   :  { %5233 = vtanh.f32 %v2594_v62  ;;  %v2468_v16 = vadd.f32 %v4916_v11, %v5553_v38  ;;  %v2178_v17 = vpop.f32.mrb[89].mxu1  ;;  %v2972_v53 = vadd.f32 0.5, %v2844_v18 }
 0x294   :  { %5235 = vtanh.f32 %v2593_v8  ;;  %v2467_v20 = vadd.f32 %v5553_v38, %v2178_v17  ;;  %v5226_v23 = vpop.eup %5225  ;;  %v5746_v29 = vpop.permute.xlu1 %3193  ;;  %v2971_v30 = vadd.f32 0.5, %v2843_v13  ;;  %3385 = vperm.xlu1 %4988, %v2970_v22  }
 0x295   :  { %v2596_v27 = vmul.f32 0.5, %v2468_v16  ;;  %v5228_v31 = vpop.eup %5227  ;;  %v2846_v33 = vmul.f32 0.5, %v5226_v23  ;;  %v3197_v44 = vpop.permute.xlu0 %3196 }
 0x296   :  { %v2595_v39 = vmul.f32 0.5, %v2467_v20  ;;  %v4919_v45 = vpop.f32.mrb[90].mxu1  ;;  %v2845_v47 = vmul.f32 0.5, %v5228_v31  ;;  %3388 = vperm.xlu0 %4987, %v2971_v30   ;;  %v3645_v5 = vrot.slane %v3197_v44, %v5688_v0  ;;  %v3536_v30 = vrot.slane %v5654_v6, %v5688_v0 }
 0x297   :  { %5237 = vtanh.f32 %v2596_v27  ;;  %v2470_v24 = vadd.f32 %v4919_v45, %v5553_v38  ;;  %v2188_v50 = vpop.f32.mrb[91].mxu1  ;;  %v2974_v16 = vadd.f32 0.5, %v2846_v33 }
 0x298   :  { %5239 = vtanh.f32 %v2595_v39  ;;  %v2469_v52 = vadd.f32 %v5553_v38, %v2188_v50  ;;  %v3200_v1 = vpop.permute.xlu1 %3199  ;;  %v2973_v2 = vadd.f32 0.5, %v2845_v47  ;;  %3391 = vperm.xlu1 %4988, %v2972_v53   ;;  %v4922_v14 = vpop.f32.mrb[92].mxu1 }
 0x299   :  { %v5230_v55 = vpop.eup %5229  ;;  %v2598_v62 = vmul.f32 0.5, %v2470_v24  ;;  %v3649_v11 = vrot.slane %v3200_v1, %v5681_v58  ;;  %v3203_v13 = vpop.permute.xlu0 %3202  ;;  %v2472_v40 = vadd.f32 %v4922_v14, %v5553_v38 }
 0x29a   :  { %v5232_v4 = vpop.eup %5231  ;;  %v2597_v8 = vmul.f32 0.5, %v2469_v52  ;;  %v3654_v18 = vrot.slane %v3203_v13, %v5699_v15  ;;  %3394 = vperm.xlu0 %4987, %v2973_v2   ;;  %v2198_v20 = vpop.f32.mrb[93].mxu1  ;;  %v2848_v22 = vmul.f32 0.5, %v5230_v55 }
 0x29b   :  { %v2847_v17 = vmul.f32 0.5, %v5232_v4  ;;  %5241 = vtanh.f32 %v2598_v62  ;;  %v3650_v23 = vsel %vm3542_vm1, %v3649_v11, %v3645_v5  ;;  %v2471_v25 = vadd.f32 %v5553_v38, %v2198_v20 }
 0x29c   :  { %5243 = vtanh.f32 %v2597_v8  ;;  %v2600_v31 = vmul.f32 0.5, %v2472_v40  ;;  %v3206_v33 = vpop.permute.xlu1 %3205  ;;  %v3655_v47 = vsel %vm3549_vm2, %v3654_v18, %v3650_v23  ;;  %3397 = vperm.xlu1 %4988, %v2974_v16   ;;  %v4925_v53 = vpop.f32.mrb[94].mxu1  ;;  %v2976_v4 = vadd.f32 0.5, %v2848_v22 }
 0x29d   :  { %v5234_v27 = vpop.eup %5233  ;;  %v2975_v39 = vadd.f32 0.5, %v2847_v17  ;;  %v2599_v24 = vmul.f32 0.5, %v2471_v25  ;;  %v3659_v50 = vrot.slane %v3206_v33, %v5693_v9  ;;  %v3209_v52 = vpop.permute.xlu0 %3208  ;;  %v2474_v6 = vadd.f32 %v4925_v53, %v5553_v38 }
 0x29e   :  { %v5236_v44 = vpop.eup %5235  ;;  %v2850_v45 = vmul.f32 0.5, %v5234_v27  ;;  %5245 = vtanh.f32 %v2600_v31  ;;  %v3664_v57 = vrot.slane %v3209_v52, %v5709_v32  ;;  %v2208_v62 = vpop.f32.mrb[95].mxu1  ;;  %v3543_v8 = vsel %vm3542_vm1, %v3541_v28, %v3536_v30 }
 0x29f   :  { %v2849_v55 = vmul.f32 0.5, %v5236_v44  ;;  %3400 = vperm.xlu0 %4987, %v2975_v39   ;;  %5247 = vtanh.f32 %v2599_v24  ;;  %v3660_v1 = vsel %vm3556_vm3, %v3659_v50, %v3655_v47  ;;  %v2473_v2 = vadd.f32 %v5553_v38, %v2208_v62 }
 0x2a0   :  { %v3548_v11 = vrot.slane %v5660_v21, %v5699_v15  ;;  %v2602_v13 = vmul.f32 0.5, %v2474_v6  ;;  %v3212_v14 = vpop.permute.xlu1 %3211  ;;  %v3665_v18 = vsel %vm3563_vm4, %v3664_v57, %v3660_v1  ;;  %3403 = vperm.xlu1 %4988, %v2976_v4   ;;  %v4928_v25 = vpop.f32.mrb[96].mxu1  ;;  %v2978_v22 = vadd.f32 0.5, %v2850_v45 }
 0x2a1   :  { %v5238_v5 = vpop.eup %5237  ;;  %v2977_v16 = vadd.f32 0.5, %v2849_v55  ;;  %v2601_v40 = vmul.f32 0.5, %v2473_v2  ;;  %v3669_v20 = vrot.slane %v3212_v14, %v5715_v41  ;;  %v3215_v23 = vpop.permute.xlu0 %3214  ;;  %v2476_v21 = vadd.f32 %v4928_v25, %v5553_v38 }
 0x2a2   :  { %v5240_v17 = vpop.eup %5239  ;;  %5249 = vtanh.f32 %v2602_v13  ;;  %v3674_v28 = vrot.slane %v3215_v23, %v5718_v42  ;;  %v2218_v30 = vpop.f32.mrb[97].mxu1  ;;  %v2852_v31 = vmul.f32 0.5, %v5238_v5  ;;  %v3555_v47 = vrot.slane %v5656_v7, %v5693_v9 }
 0x2a3   :  { %v2851_v27 = vmul.f32 0.5, %v5240_v17  ;;  %3406 = vperm.xlu0 %4987, %v2977_v16   ;;  %5251 = vtanh.f32 %v2601_v40  ;;  %v3670_v33 = vsel %vm3570_vm5, %v3669_v20, %v3665_v18  ;;  %v2475_v39 = vadd.f32 %v5553_v38, %v2218_v30 }
 0x2a4   :  { %v3550_v45 = vsel %vm3549_vm2, %v3548_v11, %v3543_v8  ;;  %v2604_v24 = vmul.f32 0.5, %v2476_v21  ;;  %v3218_v50 = vpop.permute.xlu1 %3217  ;;  %v3675_v57 = vsel %vm3577_vm6, %v3674_v28, %v3670_v33  ;;  %3409 = vperm.xlu1 %4988, %v2978_v22   ;;  %v4931_v2 = vpop.f32.mrb[98].mxu1  ;;  %v2980_v14 = vadd.f32 0.5, %v2852_v31 }
 0x2a5   :  { %v5242_v44 = vpop.eup %5241  ;;  %v2979_v52 = vadd.f32 0.5, %v2851_v27  ;;  %v2603_v6 = vmul.f32 0.5, %v2475_v39  ;;  %v3679_v62 = vrot.slane %v3218_v50, %v5724_v49  ;;  %v3221_v1 = vpop.permute.xlu0 %3220  ;;  %v2478_v5 = vadd.f32 %v4931_v2, %v5553_v38 }
 0x2a6   :  { %v5244_v53 = vpop.eup %5243  ;;  %v2854_v55 = vmul.f32 0.5, %v5242_v44  ;;  %5253 = vtanh.f32 %v2604_v24  ;;  %v3684_v7 = vrot.slane %v3221_v1, %v5729_v59  ;;  %v2228_v8 = vpop.f32.mrb[99].mxu1  ;;  %v3557_v17 = vsel %vm3556_vm3, %v3555_v47, %v3550_v45 }
 0x2a7   :  { %v2853_v4 = vmul.f32 0.5, %v5244_v53  ;;  %3412 = vperm.xlu0 %4987, %v2979_v52   ;;  %5255 = vtanh.f32 %v2603_v6  ;;  %v3680_v11 = vsel %vm3584_vm7, %v3679_v62, %v3675_v57  ;;  %v2477_v13 = vadd.f32 %v5553_v38, %v2228_v8 }
 0x2a8   :  { %v5246_v16 = vpop.eup %5245  ;;  %v3562_v18 = vrot.slane %v5664_v26, %v5709_v32  ;;  %v2606_v40 = vmul.f32 0.5, %v2478_v5  ;;  %v3224_v20 = vpop.permute.xlu1 %3223  ;;  %v3685_v22 = vsel %vm6111_vm8, %v3684_v7, %v3680_v11  ;;  %3415 = vperm.xlu1 %4988, %v2980_v14   ;;  %v2982_v31 = vadd.f32 0.5, %v2854_v55 }
 0x2a9   :  { %v2981_v23 = vadd.f32 0.5, %v2853_v4  ;;  %v5248_v25 = vpop.eup %5247  ;;  %v2605_v27 = vmul.f32 0.5, %v2477_v13  ;;  %v3689_v28 = vrot.slane %v3224_v20, %v5735_v3  ;;  %v3227_v21 = vpop.permute.xlu0 %3226  ;;  %v2856_v47 = vmul.f32 0.5, %v5246_v16 }
 0x2aa   :  { %v4934_v30 = vpop.f32.mrb[100].mxu1  ;;  %v2855_v33 = vmul.f32 0.5, %v5248_v25  ;;  %5257 = vtanh.f32 %v2606_v40  ;;  %v3694_v39 = vrot.slane %v3227_v21, %v5749_v34  ;;  %v3564_v52 = vsel %vm3563_vm4, %v3562_v18, %v3557_v17 }
 0x2ab   :  { %v2480_v26 = vadd.f32 %v4934_v30, %v5553_v38  ;;  %3418 = vperm.xlu0 %4987, %v2981_v23   ;;  %v2238_v44 = vpop.f32.mrb[101].mxu1  ;;  %5259 = vtanh.f32 %v2605_v27  ;;  %v3690_v45 = vsel %vm3598_vm9, %v3689_v28, %v3685_v22  ;;  %v3569_v53 = vrot.slane %v5668_v36, %v5715_v41 }
 0x2ac   :  { %v2479_v24 = vadd.f32 %v5553_v38, %v2238_v44  ;;  %v5250_v50 = vpop.eup %5249  ;;  %v3230_v57 = vpop.permute.xlu1 %3229  ;;  %v2983_v6 = vadd.f32 0.5, %v2855_v33  ;;  %v3695_v2 = vsel %vm3605_vm10, %v3694_v39, %v3690_v45  ;;  %3421 = vperm.xlu1 %4988, %v2982_v31   ;;  %v2984_v18 = vadd.f32 0.5, %v2856_v47 }
 0x2ad   :  { %v2608_v55 = vmul.f32 0.5, %v2480_v26  ;;  %v5252_v62 = vpop.eup %5251  ;;  %v2858_v1 = vmul.f32 0.5, %v5250_v50  ;;  %v3699_v7 = vrot.slane %v3230_v57, %v5752_v37  ;;  %v3233_v5 = vpop.permute.xlu0 %3232  ;;  %v3571_v20 = vsel %vm3570_vm5, %v3569_v53, %v3564_v52 }
 0x2ae   :  { %v2607_v4 = vmul.f32 0.5, %v2479_v24  ;;  %v4937_v8 = vpop.f32.mrb[102].mxu1  ;;  %v2857_v11 = vmul.f32 0.5, %v5252_v62  ;;  %v3704_v13 = vrot.slane %v3233_v5, %v5755_v48  ;;  %v3576_v23 = vrot.slane %v5673_v43, %v5718_v42 }
 0x2af   :  { %5261 = vtanh.f32 %v2608_v55  ;;  %v2482_v36 = vadd.f32 %v4937_v8, %v5553_v38  ;;  %3424 = vperm.xlu0 %4987, %v2983_v6   ;;  %v2248_v14 = vpop.f32.mrb[103].mxu1  ;;  %v3700_v16 = vsel %vm3612_vm11, %v3699_v7, %v3695_v2  ;;  %v2986_v26 = vadd.f32 0.5, %v2858_v1 }
 0x2b0   :  { %5263 = vtanh.f32 %v2607_v4  ;;  %v2481_v17 = vadd.f32 %v5553_v38, %v2248_v14  ;;  %v5254_v40 = vpop.eup %5253  ;;  %v3236_v22 = vpop.permute.xlu1 %3235  ;;  %v2985_v27 = vadd.f32 0.5, %v2857_v11  ;;  %v3705_v21 = vsel %vm3619_vm12, %v3704_v13, %v3700_v16  ;;  %3427 = vperm.xlu1 %4988, %v2984_v18  }
 0x2b1   :  { %v2610_v25 = vmul.f32 0.5, %v2482_v36  ;;  %v5256_v28 = vpop.eup %5255  ;;  %v3709_v31 = vrot.slane %v3236_v22, %v5759_v51  ;;  %v3239_v33 = vpop.permute.xlu0 %3238  ;;  %v2860_v24 = vmul.f32 0.5, %v5254_v40  ;;  %v3578_v55 = vsel %vm3577_vm6, %v3576_v23, %v3571_v20 }
 0x2b2   :  { %v2609_v30 = vmul.f32 0.5, %v2481_v17  ;;  %v4940_v39 = vpop.f32.mrb[104].mxu1  ;;  %v2859_v44 = vmul.f32 0.5, %v5256_v28  ;;  %v3714_v47 = vrot.slane %v3239_v33, %v5763_v56  ;;  %v3583_v57 = vrot.slane %v5678_v54, %v5724_v49 }
 0x2b3   :  { %5265 = vtanh.f32 %v2610_v25  ;;  %v2484_v45 = vadd.f32 %v4940_v39, %v5553_v38  ;;  %3430 = vperm.xlu0 %4987, %v2985_v27   ;;  %v2258_v43 = vpop.f32.mrb[105].mxu1  ;;  %v3710_v50 = vsel %vm3626_vm13, %v3709_v31, %v3705_v21  ;;  %v3590_v4 = vrot.slane %v5684_v61, %v5729_v59 }
 0x2b4   :  { %5267 = vtanh.f32 %v2609_v30  ;;  %v2483_v52 = vadd.f32 %v5553_v38, %v2258_v43  ;;  %v5258_v53 = vpop.eup %5257  ;;  %v3242_v62 = vpop.permute.xlu1 %3241  ;;  %v2987_v1 = vadd.f32 0.5, %v2859_v44  ;;  %3433 = vperm.xlu1 %4988, %v2986_v26   ;;  %v3715_v14 = vsel %vm3633_vm14, %v3714_v47, %v3710_v50 }
 0x2b5   :  { %v2612_v6 = vmul.f32 0.5, %v2484_v45  ;;  %v5260_v2 = vpop.eup %5259  ;;  %v2862_v7 = vmul.f32 0.5, %v5258_v53  ;;  %v3719_v8 = vrot.slane %v3242_v62, %v5766_v60  ;;  %v3245_v11 = vpop.permute.xlu0 %3244  ;;  %v2988_v18 = vadd.f32 0.5, %v2860_v24 }
 0x2b6   :  { %v2611_v5 = vmul.f32 0.5, %v2483_v52  ;;  %v4943_v13 = vpop.f32.mrb[106].mxu1  ;;  %v2861_v36 = vmul.f32 0.5, %v5260_v2  ;;  %v3585_v20 = vsel %vm3584_vm7, %v3583_v57, %v3578_v55  ;;  %v3597_v23 = vrot.slane %v5696_v12, %v5735_v3 }
 0x2b7   :  { %5269 = vtanh.f32 %v2612_v6  ;;  %v2486_v54 = vadd.f32 %v4943_v13, %v5553_v38  ;;  %3436 = vperm.xlu0 %4987, %v2987_v1   ;;  %v2268_v16 = vpop.f32.mrb[107].mxu1  ;;  %v5838_v17 = vsel %vm3640_vm15, %v3719_v8, %v3715_v14  ;;  %v2990_v21 = vadd.f32 0.5, %v2862_v7 }
 0x2b8   :  { %5271 = vtanh.f32 %v2611_v5  ;;  %v2485_v61 = vadd.f32 %v5553_v38, %v2268_v16  ;;  %v2989_v25 = vadd.f32 0.5, %v2861_v36  ;;  %v3248_v27 = vpop.permute.xlu1 %3247  ;;  %v3724_v30 = vrot.slane %v3245_v11, %v5688_v0  ;;  %3439 = vperm.xlu1 %4988, %v2988_v18   ;;  %v4946_v26 = vpop.f32.mrb[108].mxu1 }
 0x2b9   :  { %v5262_v40 = vpop.eup %5261  ;;  %v2614_v22 = vmul.f32 0.5, %v2486_v54  ;;  %v3728_v33 = vrot.slane %v3248_v27, %v5681_v58  ;;  %v3251_v39 = vpop.permute.xlu0 %3250  ;;  %v2488_v45 = vadd.f32 %v4946_v26, %v5553_v38  ;;  %v3592_v1 = vsel %vm6111_vm8, %v3590_v4, %v3585_v20 }
 0x2ba   :  { %v5264_v28 = vpop.eup %5263  ;;  %v2613_v31 = vmul.f32 0.5, %v2485_v61  ;;  %v3733_v47 = vrot.slane %v3251_v39, %v5699_v15  ;;  %v2278_v12 = vpop.f32.mrb[109].mxu1  ;;  %v2864_v43 = vmul.f32 0.5, %v5262_v40  ;;  %v3604_v2 = vrot.slane %v5703_v19, %v5749_v34 }
 0x2bb   :  { %v2863_v44 = vmul.f32 0.5, %v5264_v28  ;;  %5273 = vtanh.f32 %v2614_v22  ;;  %3442 = vperm.xlu0 %4987, %v2989_v25   ;;  %v3729_v24 = vsel %vm3542_vm1, %v3728_v33, %v3724_v30  ;;  %v2487_v50 = vadd.f32 %v5553_v38, %v2278_v12 }
 0x2bc   :  { %5275 = vtanh.f32 %v2613_v31  ;;  %v3734_v55 = vsel %vm3549_vm2, %v3733_v47, %v3729_v24  ;;  %v2616_v57 = vmul.f32 0.5, %v2488_v45  ;;  %v3254_v6 = vpop.permute.xlu1 %3253  ;;  %3445 = vperm.xlu1 %4988, %v2990_v21   ;;  %v5855_v11 = vpop.f32.mrb[110].mxu1  ;;  %v3599_v13 = vsel %vm3598_vm9, %v3597_v23, %v3592_v1 }
 0x2bd   :  { %v5266_v52 = vpop.eup %5265  ;;  %v2991_v53 = vadd.f32 0.5, %v2863_v44  ;;  %v2615_v7 = vmul.f32 0.5, %v2487_v50  ;;  %v3738_v5 = vrot.slane %v3254_v6, %v5693_v9  ;;  %v3257_v8 = vpop.permute.xlu0 %3256  ;;  %v2992_v16 = vadd.f32 0.5, %v2864_v43 }
 0x2be   :  { %v5268_v62 = vpop.eup %5267  ;;  %5277 = vtanh.f32 %v2616_v57  ;;  %v3743_v14 = vrot.slane %v3257_v8, %v5709_v32  ;;  %v2288_v54 = vpop.f32.mrb[111].mxu1  ;;  %v2866_v4 = vmul.f32 0.5, %v5266_v52  ;;  %v3611_v40 = vrot.slane %v5712_v35, %v5752_v37 }
 0x2bf   :  { %v2865_v36 = vmul.f32 0.5, %v5268_v62  ;;  %3448 = vperm.xlu0 %4987, %v2991_v53   ;;  %v3739_v61 = vsel %vm3556_vm3, %v3738_v5, %v3734_v55  ;;  %v2489_v19 = vadd.f32 %v5553_v38, %v2288_v54  ;;  %5279 = vtanh.f32 %v2615_v7 }
 0x2c0   :  { %v3744_v25 = vsel %vm3563_vm4, %v3743_v14, %v3739_v61  ;;  %v3260_v23 = vpop.permute.xlu1 %3259  ;;  %3451 = vperm.xlu1 %4988, %v2992_v16   ;;  %v4952_v31 = vpop.f32.mrb[112].mxu1  ;;  %v3606_v33 = vsel %vm3605_vm10, %v3604_v2, %v3599_v13  ;;  %v3618_v47 = vrot.slane %v5721_v46, %v5755_v48  ;;  %v2994_v45 = vadd.f32 0.5, %v2866_v4 }
 0x2c1   :  { %v5270_v18 = vpop.eup %5269  ;;  %v2993_v20 = vadd.f32 0.5, %v2865_v36  ;;  %v2617_v28 = vmul.f32 0.5, %v2489_v19  ;;  %v3748_v21 = vrot.slane %v3260_v23, %v5715_v41  ;;  %v3263_v30 = vpop.permute.xlu0 %3262  ;;  %v2492_v35 = vadd.f32 %v4952_v31, %v5553_v38 }
 0x2c2   :  { %v5272_v22 = vpop.eup %5271  ;;  %v2868_v27 = vmul.f32 0.5, %v5270_v18  ;;  %v3753_v26 = vrot.slane %v3263_v30, %v5718_v42  ;;  %v2298_v44 = vpop.f32.mrb[113].mxu1  ;;  %v3613_v50 = vsel %vm3612_vm11, %v3611_v40, %v3606_v33  ;;  %v3625_v61 = vrot.slane %v5732_v63, %v5759_v51 }
 0x2c3   :  { %v2867_v39 = vmul.f32 0.5, %v5272_v22  ;;  %3454 = vperm.xlu0 %4987, %v2993_v20   ;;  %v3749_v12 = vsel %vm3570_vm5, %v3748_v21, %v3744_v25  ;;  %v2491_v43 = vadd.f32 %v5553_v38, %v2298_v44  ;;  %v2620_v55 = vmul.f32 0.5, %v2492_v35 }
 0x2c4   :  { %v3754_v53 = vsel %vm3577_vm6, %v3753_v26, %v3749_v12  ;;  %v3266_v57 = vpop.permute.xlu1 %3265  ;;  %v2996_v62 = vadd.f32 0.5, %v2868_v27  ;;  %5281 = vtanh.f32 %v2617_v28  ;;  %3457 = vperm.xlu1 %4988, %v2994_v45   ;;  %v4955_v7 = vpop.f32.mrb[114].mxu1  ;;  %v3620_v25 = vsel %vm3619_vm12, %v3618_v47, %v3613_v50 }
 0x2c5   :  { %v5274_v24 = vpop.eup %5273  ;;  %v2995_v52 = vadd.f32 0.5, %v2867_v39  ;;  %v2619_v1 = vmul.f32 0.5, %v2491_v43  ;;  %v3758_v2 = vrot.slane %v3266_v57, %v5724_v49  ;;  %v3269_v46 = vpop.permute.xlu0 %3268  ;;  %5283 = vtanh.f32 %v2620_v55 }
 0x2c6   :  { %v5276_v6 = vpop.eup %5275  ;;  %v3763_v8 = vrot.slane %v3269_v46, %v5729_v59  ;;  %v2494_v13 = vadd.f32 %v4955_v7, %v5553_v38  ;;  %v2308_v36 = vpop.f32.mrb[115].mxu1  ;;  %v2870_v14 = vmul.f32 0.5, %v5274_v24  ;;  %v3632_v21 = vrot.slane %v5739_v10, %v5763_v56 }
 0x2c7   :  { %v2869_v5 = vmul.f32 0.5, %v5276_v6  ;;  %3460 = vperm.xlu0 %4987, %v2995_v52   ;;  %5285 = vtanh.f32 %v2619_v1  ;;  %v3759_v54 = vsel %vm3584_vm7, %v3758_v2, %v3754_v53  ;;  %v2493_v16 = vadd.f32 %v5553_v38, %v2308_v36 }
 0x2c8   :  { %v5278_v4 = vpop.eup %5277  ;;  %v3764_v18 = vsel %vm6111_vm8, %v3763_v8, %v3759_v54  ;;  %v2622_v40 = vmul.f32 0.5, %v2494_v13  ;;  %v3272_v20 = vpop.permute.xlu1 %3271  ;;  %3463 = vperm.xlu1 %4988, %v2996_v62   ;;  %v2998_v39 = vadd.f32 0.5, %v2870_v14  ;;  %v3627_v47 = vsel %vm3626_vm13, %v3625_v61, %v3620_v25 }
 0x2c9   :  { %v2997_v19 = vadd.f32 0.5, %v2869_v5  ;;  %v2621_v23 = vmul.f32 0.5, %v2493_v16  ;;  %v3768_v22 = vrot.slane %v3272_v20, %v5735_v3  ;;  %v3275_v27 = vpop.permute.xlu0 %3274  ;;  %v4958_v28 = vpop.f32.mrb[116].mxu1  ;;  %v2872_v26 = vmul.f32 0.5, %v5278_v4 }
 0x2ca   :  { %5287 = vtanh.f32 %v2622_v40  ;;  %v3773_v30 = vrot.slane %v3275_v27, %v5749_v34  ;;  %v2496_v63 = vadd.f32 %v4958_v28, %v5553_v38  ;;  %v2318_v31 = vpop.f32.mrb[117].mxu1  ;;  %v5280_v33 = vpop.eup %5279  ;;  %vm4197_vm8 = vcmask 1042434  }
 0x2cb   :  { %3466 = vperm.xlu0 %4987, %v2997_v19   ;;  %v3769_v35 = vsel %vm3598_vm9, %v3768_v22, %v3764_v18  ;;  %v2495_v44 = vadd.f32 %v5553_v38, %v2318_v31  ;;  %5289 = vtanh.f32 %v2621_v23  ;;  %v2871_v53 = vmul.f32 0.5, %v5280_v33 }
 0x2cc   :  { %v3774_v45 = vsel %vm3605_vm10, %v3773_v30, %v3769_v35  ;;  %v2624_v10 = vmul.f32 0.5, %v2496_v63  ;;  %v3278_v12 = vpop.permute.xlu1 %3277  ;;  %3469 = vperm.xlu1 %4988, %v2998_v39   ;;  %v4961_v52 = vpop.f32.mrb[118].mxu1  ;;  %v3634_v1 = vsel %vm3633_vm14, %v3632_v21, %v3627_v47  ;;  %v3000_v2 = vadd.f32 0.5, %v2872_v26 }
 0x2cd   :  { %v2623_v43 = vmul.f32 0.5, %v2495_v44  ;;  %v3778_v24 = vrot.slane %v3278_v12, %v5752_v37  ;;  %v3281_v50 = vpop.permute.xlu0 %3280  ;;  %v2498_v57 = vadd.f32 %v4961_v52, %v5553_v38  ;;  %v2328_v6 = vpop.f32.mrb[119].mxu1  ;;  %v3639_v8 = vrot.slane %v5746_v29, %v5766_v60 }
 0x2ce   :  { %5291 = vtanh.f32 %v2624_v10  ;;  %v3783_v55 = vrot.slane %v3281_v50, %v5755_v48  ;;  %v5282_v62 = vpop.eup %5281  ;;  %v2497_v7 = vadd.f32 %v5553_v38, %v2328_v6  ;;  %v2490_v13 = vadd.f32 %v5855_v11, %v5553_v38 }
 0x2cf   :  { %v3779_v46 = vsel %vm3612_vm11, %v3778_v24, %v3774_v45  ;;  %v5284_v5 = vpop.eup %5283  ;;  %v2626_v14 = vmul.f32 0.5, %v2498_v57  ;;  %5293 = vtanh.f32 %v2623_v43  ;;  %v2999_v20 = vadd.f32 0.5, %v2871_v53 }
 0x2d0   :  { %v3784_v36 = vsel %vm3619_vm12, %v3783_v55, %v3779_v46  ;;  %v3284_v54 = vpop.permute.xlu1 %3283  ;;  %v2876_v4 = vmul.f32 0.5, %v5284_v5  ;;  %v2625_v61 = vmul.f32 0.5, %v2497_v7  ;;  %3475 = vperm.xlu1 %4988, %v3000_v2   ;;  %v4964_v40 = vpop.f32.mrb[120].mxu1  ;;  %v2873_v23 = vmul.f32 0.5, %v5282_v62 }
 0x2d1   :  { %v5286_v16 = vpop.eup %5285  ;;  %v3788_v19 = vrot.slane %v3284_v54, %v5759_v51  ;;  %v3287_v18 = vpop.permute.xlu0 %3286  ;;  %5295 = vtanh.f32 %v2626_v14  ;;  %v2500_v25 = vadd.f32 %v4964_v40, %v5553_v38  ;;  %v3641_v30 = vsel %vm3640_vm15, %v3639_v8, %v3634_v1 }
 0x2d2   :  { %v3793_v29 = vrot.slane %v3287_v18, %v5763_v56  ;;  %v2338_v11 = vpop.f32.mrb[121].mxu1  ;;  %v3004_v22 = vadd.f32 0.5, %v2876_v4  ;;  %v2875_v63 = vmul.f32 0.5, %v5286_v16  ;;  %5297 = vtanh.f32 %v2625_v61 }
 0x2d3   :  { %v3789_v27 = vsel %vm3626_vm13, %v3788_v19, %v3784_v36  ;;  %v2499_v28 = vadd.f32 %v5553_v38, %v2338_v11  ;;  %v2628_v33 = vmul.f32 0.5, %v2500_v25  ;;  %v4196_v10 = vsel %vm4195_vm0, %v5838_v17, %v3641_v30 }
 0x2d4   :  { %v5288_v21 = vpop.eup %5287  ;;  %v3794_v31 = vsel %vm3633_vm14, %v3793_v29, %v3789_v27  ;;  %v3290_v39 = vpop.permute.xlu1 %3289  ;;  %3472 = vperm.xlu1 %4988, %v2999_v20   ;;  %3487 = vperm.xlu0 %4987, %v3004_v22   ;;  %v2618_v12 = vmul.f32 0.5, %v2490_v13  ;;  %v3001_v52 = vadd.f32 0.5, %v2873_v23  ;;  %v3003_v62 = vadd.f32 0.5, %v2875_v63 }
 0x2d5   :  { %v2878_v26 = vmul.f32 0.5, %v5288_v21  ;;  %v2627_v35 = vmul.f32 0.5, %v2499_v28  ;;  %v3798_v44 = vrot.slane %v3290_v39, %v5766_v60  ;;  %v3293_v47 = vpop.permute.xlu0 %3292  ;;  %v4967_v45 = vpop.f32.mrb[122].mxu1  ;;  %5299 = vtanh.f32 %v2628_v33 }
 0x2d6   :  { %v2502_v43 = vadd.f32 %v4967_v45, %v5553_v38  ;;  %v2348_v24 = vpop.f32.mrb[123].mxu1  ;;  %v5290_v50 = vpop.eup %5289  ;;  %v3803_v2 = vrot.slane %v3293_v47, %v5688_v0  ;;  %vm4199_vm0 = vcmask 1043459  }
 0x2d7   :  { %v3006_v53 = vadd.f32 0.5, %v2878_v26  ;;  %v3799_v55 = vsel %vm3640_vm15, %v3798_v44, %v3794_v31  ;;  %v2501_v57 = vadd.f32 %v5553_v38, %v2348_v24  ;;  %5301 = vtanh.f32 %v2627_v35 }
 0x2d8   :  { %v5292_v6 = vpop.eup %5291  ;;  %v5917_v1 = vsel %vm4197_vm8, %v3799_v55, %v4196_v10  ;;  %v2630_v17 = vmul.f32 0.5, %v2502_v43  ;;  %v3296_v46 = vpop.permute.xlu1 %3295  ;;  %3478 = vperm.xlu1 %4988, %v3001_v52   ;;  %v2877_v14 = vmul.f32 0.5, %v5290_v50  ;;  %vm6112_vm8 = vcmask 589312  }
 0x2d9   :  { %v2880_v7 = vmul.f32 0.5, %v5292_v6  ;;  %v2629_v5 = vmul.f32 0.5, %v2501_v57  ;;  %v3807_v8 = vrot.slane %v3296_v46, %v5681_v58  ;;  %v3299_v13 = vpop.permute.xlu0 %3298  ;;  %3493 = vperm.xlu0 %4987, %v3006_v53   ;;  %v4970_v36 = vpop.f32.mrb[124].mxu1 }
 0x2da   :  { %5303 = vtanh.f32 %v2630_v17  ;;  %v3812_v54 = vrot.slane %v3299_v13, %v5699_v15  ;;  %v2504_v16 = vadd.f32 %v4970_v36, %v5553_v38  ;;  %v2358_v4 = vpop.f32.mrb[125].mxu1  ;;  %v5294_v61 = vpop.eup %5293  ;;  %v3005_v30 = vadd.f32 0.5, %v2877_v14 }
 0x2db   :  { %v3008_v19 = vadd.f32 0.5, %v2880_v7  ;;  %5305 = vtanh.f32 %v2629_v5  ;;  %v3808_v18 = vsel %vm3542_vm1, %v3807_v8, %v3803_v2  ;;  %v2503_v40 = vadd.f32 %v5553_v38, %v2358_v4  ;;  %v5296_v20 = vpop.eup %5295 }
 0x2dc   :  { %v3813_v29 = vsel %vm3549_vm2, %v3812_v54, %v3808_v18  ;;  %v2632_v25 = vmul.f32 0.5, %v2504_v16  ;;  %v3302_v11 = vpop.permute.xlu1 %3301  ;;  %5307 = vtanh.f32 %v2618_v12  ;;  %v2882_v23 = vmul.f32 0.5, %v5296_v20  ;;  %3484 = vperm.xlu1 %4988, %v3003_v62   ;;  %v5298_v39 = vpop.eup %5297 }
 0x2dd   :  { %v2631_v22 = vmul.f32 0.5, %v2503_v40  ;;  %v3817_v27 = vrot.slane %v3302_v11, %v5693_v9  ;;  %v3305_v28 = vpop.permute.xlu0 %3304  ;;  %3499 = vperm.xlu0 %4987, %v3008_v19   ;;  %v4973_v21 = vpop.f32.mrb[126].mxu1  ;;  %v2879_v26 = vmul.f32 0.5, %v5294_v61  ;;  %v2881_v53 = vmul.f32 0.5, %v5298_v39 }
 0x2de   :  { %5309 = vtanh.f32 %v2632_v25  ;;  %v3822_v63 = vrot.slane %v3305_v28, %v5709_v32  ;;  %v2506_v31 = vadd.f32 %v4973_v21, %v5553_v38  ;;  %v2368_v33 = vpop.f32.mrb[127].mxu1  ;;  %v3010_v35 = vadd.f32 0.5, %v2882_v23 }
 0x2df   :  { %v3818_v44 = vsel %vm3556_vm3, %v3817_v27, %v3813_v29  ;;  %v2505_v47 = vadd.f32 %v5553_v38, %v2368_v33  ;;  %v5300_v45 = vpop.eup %5299  ;;  %5311 = vtanh.f32 %v2631_v22  ;;  %v3007_v62 = vadd.f32 0.5, %v2879_v26 }
 0x2e0   :  { %v3823_v10 = vsel %vm3563_vm4, %v3822_v63, %v3818_v44  ;;  %v2634_v12 = vmul.f32 0.5, %v2506_v31  ;;  %v3308_v43 = vpop.permute.xlu1 %3307  ;;  %v2884_v24 = vmul.f32 0.5, %v5300_v45  ;;  %3490 = vperm.xlu1 %4988, %v3005_v30   ;;  %v3009_v14 = vadd.f32 0.5, %v2881_v53 }
 0x2e1   :  { %v3827_v50 = vrot.slane %v3308_v43, %v5715_v41  ;;  %v3311_v52 = vpop.permute.xlu0 %3310  ;;  %3505 = vperm.xlu0 %4987, %v3010_v35   ;;  %v2633_v55 = vmul.f32 0.5, %v2505_v47  ;;  %v5302_v6 = vpop.eup %5301 }
 0x2e2   :  { %5313 = vtanh.f32 %v2634_v12  ;;  %v3832_v57 = vrot.slane %v3311_v52, %v5718_v42  ;;  %v3012_v38 = vadd.f32 0.5, %v2884_v24  ;;  %v2883_v4 = vmul.f32 0.5, %v5302_v6 }
 0x2e3   :  { %v3828_v2 = vsel %vm3570_vm5, %v3827_v50, %v3823_v10  ;;  %5315 = vtanh.f32 %v2633_v55 }
 0x2e4   :  { %v5304_v17 = vpop.eup %5303  ;;  %v3833_v46 = vsel %vm3577_vm6, %v3832_v57, %v3828_v2  ;;  %v3314_v7 = vpop.permute.xlu1 %3313  ;;  %3496 = vperm.xlu1 %4988, %v3007_v62   ;;  %v3011_v28 = vadd.f32 0.5, %v2883_v4 }
 0x2e5   :  { %v5306_v5 = vpop.eup %5305  ;;  %v2886_v8 = vmul.f32 0.5, %v5304_v17  ;;  %v3837_v13 = vrot.slane %v3314_v7, %v5724_v49  ;;  %v3317_v36 = vpop.permute.xlu0 %3316  ;;  %3511 = vperm.xlu0 %4987, %v3012_v38  }
 0x2e6   :  { %v3842_v54 = vrot.slane %v3317_v36, %v5729_v59  ;;  %v5308_v16 = vpop.eup %5307  ;;  %v2885_v19 = vmul.f32 0.5, %v5306_v5 }
 0x2e7   :  { %v3014_v61 = vadd.f32 0.5, %v2886_v8  ;;  %v3838_v18 = vsel %vm3584_vm7, %v3837_v13, %v3833_v46  ;;  %v2874_v23 = vmul.f32 0.5, %v5308_v16 }
 0x2e8   :  { %v5310_v40 = vpop.eup %5309  ;;  %v3843_v20 = vsel %vm6112_vm8, %v3842_v54, %v3838_v18  ;;  %v3320_v29 = vpop.permute.xlu1 %3319  ;;  %3502 = vperm.xlu1 %4988, %v3009_v14   ;;  %v3013_v21 = vadd.f32 0.5, %v2885_v19 }
 0x2e9   :  { %v3847_v25 = vrot.slane %v3320_v29, %v5735_v3  ;;  %v3323_v11 = vpop.permute.xlu0 %3322  ;;  %3517 = vperm.xlu0 %4987, %v3014_v61   ;;  %v5312_v27 = vpop.eup %5311  ;;  %v2888_v30 = vmul.f32 0.5, %v5310_v40  ;;  %v3002_v44 = vadd.f32 0.5, %v2874_v23 }
 0x2ea   :  { %v3852_v22 = vrot.slane %v3323_v11, %v5749_v34  ;;  %v2887_v10 = vmul.f32 0.5, %v5312_v27 }
 0x2eb   :  { %v3848_v63 = vsel %vm3598_vm9, %v3847_v25, %v3843_v20  ;;  %v3016_v45 = vadd.f32 0.5, %v2888_v30 }
 0x2ec   :  { %v5314_v31 = vpop.eup %5313  ;;  %v3853_v33 = vsel %vm3605_vm10, %v3852_v22, %v3848_v63  ;;  %v3326_v39 = vpop.permute.xlu1 %3325  ;;  %3508 = vperm.xlu1 %4988, %v3011_v28   ;;  %v3015_v6 = vadd.f32 0.5, %v2887_v10 }
 0x2ed   :  { %v3857_v26 = vrot.slane %v3326_v39, %v5752_v37  ;;  %v3329_v35 = vpop.permute.xlu0 %3328  ;;  %3514 = vperm.xlu0 %4987, %v3013_v21   ;;  %v2890_v12 = vmul.f32 0.5, %v5314_v31  ;;  %v5316_v24 = vpop.eup %5315 }
 0x2ee   :  { %v3862_v47 = vrot.slane %v3329_v35, %v5755_v48  ;;  %v2889_v38 = vmul.f32 0.5, %v5316_v24 }
 0x2ef   :  { %v3858_v43 = vsel %vm3612_vm11, %v3857_v26, %v3853_v33  ;;  %v3018_v62 = vadd.f32 0.5, %v2890_v12 }
 0x2f0   :  { %v3863_v50 = vsel %vm3619_vm12, %v3862_v47, %v3858_v43  ;;  %v3332_v52 = vpop.permute.xlu1 %3331  ;;  %3481 = vperm.xlu1 %4988, %v3002_v44   ;;  %v3017_v8 = vadd.f32 0.5, %v2889_v38 }
 0x2f1   :  { %v3867_v53 = vrot.slane %v3332_v52, %v5759_v51  ;;  %v3335_v55 = vpop.permute.xlu0 %3334  ;;  %3523 = vperm.xlu0 %4987, %v3016_v45  }
 0x2f2   :  { %v3872_v57 = vrot.slane %v3335_v55, %v5763_v56 }
 0x2f3   :  { %v3868_v2 = vsel %vm3626_vm13, %v3867_v53, %v3863_v50 }
 0x2f4   :  { %v3873_v17 = vsel %vm3633_vm14, %v3872_v57, %v3868_v2  ;;  %v3338_v46 = vpop.permute.xlu1 %3337  ;;  %3529 = vperm.xlu1 %4988, %v3018_v62  }
 0x2f5   :  { %v3877_v7 = vrot.slane %v3338_v46, %v5766_v60  ;;  %v3341_v5 = vpop.permute.xlu0 %3340  ;;  %3520 = vperm.xlu0 %4987, %v3015_v6  }
 0x2f6   :  { %v3882_v54 = vrot.slane %v3341_v5, %v5688_v0 }
 0x2f7   :  { %v3878_v13 = vsel %vm3640_vm15, %v3877_v7, %v3873_v17 }
 0x2f8   :  { %v4200_v36 = vsel %vm4199_vm0, %v3878_v13, %v5917_v1  ;;  %v3344_v14 = vpop.permute.xlu1 %3343  ;;  %vm4201_vm0 = vcmask 1044484  }
 0x2f9   :  { %v3886_v16 = vrot.slane %v3344_v14, %v5681_v58  ;;  %v3347_v4 = vpop.permute.xlu0 %3346  ;;  %3526 = vperm.xlu0 %4987, %v3017_v8  }
 0x2fa   :  { %v3891_v61 = vrot.slane %v3347_v4, %v5699_v15 }
 0x2fb   :  { %v3887_v19 = vsel %vm3542_vm1, %v3886_v16, %v3882_v54 }
 0x2fc   :  { %v3892_v18 = vsel %vm3549_vm2, %v3891_v61, %v3887_v19  ;;  %v3350_v40 = vpop.permute.xlu1 %3349 }
 0x2fd   :  { %v3896_v20 = vrot.slane %v3350_v40, %v5693_v9  ;;  %v3353_v29 = vpop.permute.xlu0 %3352 }
 0x2fe   :  { %v3901_v25 = vrot.slane %v3353_v29, %v5709_v32 }
 0x2ff   :  { %v3897_v1 = vsel %vm3556_vm3, %v3896_v20, %v3892_v18 }
 0x300   :  { %v3902_v11 = vsel %vm3563_vm4, %v3901_v25, %v3897_v1  ;;  %v3356_v23 = vpop.permute.xlu1 %3355 }
 0x301   :  { %v3906_v22 = vrot.slane %v3356_v23, %v5715_v41  ;;  %v3359_v27 = vpop.permute.xlu0 %3358 }
 0x302   :  { %v3911_v28 = vrot.slane %v3359_v27, %v5718_v42 }
 0x303   :  { %v3907_v21 = vsel %vm3570_vm5, %v3906_v22, %v3902_v11 }
 0x304   :  { %v3912_v30 = vsel %vm3577_vm6, %v3911_v28, %v3907_v21  ;;  %v3362_v63 = vpop.permute.xlu1 %3361 }
 0x305   :  { %v3916_v31 = vrot.slane %v3362_v63, %v5724_v49  ;;  %v3365_v33 = vpop.permute.xlu0 %3364 }
 0x306   :  { %v3921_v39 = vrot.slane %v3365_v33, %v5729_v59 }
 0x307   :  { %v3917_v26 = vsel %vm3584_vm7, %v3916_v31, %v3912_v30 }
 0x308   :  { %v3922_v35 = vsel %vm6112_vm8, %v3921_v39, %v3917_v26  ;;  %v3368_v44 = vpop.permute.xlu1 %3367 }
 0x309   :  { %v3926_v47 = vrot.slane %v3368_v44, %v5735_v3  ;;  %v3371_v45 = vpop.permute.xlu0 %3370 }
 0x30a   :  { %v3931_v10 = vrot.slane %v3371_v45, %v5749_v34 }
 0x30b   :  { %v3927_v12 = vsel %vm3598_vm9, %v3926_v47, %v3922_v35 }
 0x30c   :  { %v3932_v43 = vsel %vm3605_vm10, %v3931_v10, %v3927_v12  ;;  %v3374_v24 = vpop.permute.xlu1 %3373 }
 0x30d   :  { %v3936_v50 = vrot.slane %v3374_v24, %v5752_v37  ;;  %v3377_v52 = vpop.permute.xlu0 %3376 }
 0x30e   :  { %v3941_v53 = vrot.slane %v3377_v52, %v5755_v48 }
 0x30f   :  { %v3937_v55 = vsel %vm3612_vm11, %v3936_v50, %v3932_v43 }
 0x310   :  { %v3942_v57 = vsel %vm3619_vm12, %v3941_v53, %v3937_v55  ;;  %v3380_v6 = vpop.permute.xlu1 %3379 }
 0x311   :  { %v3946_v62 = vrot.slane %v3380_v6, %v5759_v51  ;;  %v3383_v38 = vpop.permute.xlu0 %3382 }
 0x312   :  { %v3951_v2 = vrot.slane %v3383_v38, %v5763_v56 }
 0x313   :  { %v3947_v17 = vsel %vm3626_vm13, %v3946_v62, %v3942_v57 }
 0x314   :  { %v3952_v46 = vsel %vm3633_vm14, %v3951_v2, %v3947_v17  ;;  %v3386_v7 = vpop.permute.xlu1 %3385 }
 0x315   :  { %v3956_v5 = vrot.slane %v3386_v7, %v5766_v60  ;;  %v3389_v8 = vpop.permute.xlu0 %3388 }
 0x316   :  { %v3961_v16 = vrot.slane %v3389_v8, %v5688_v0 }
 0x317   :  { %v3957_v13 = vsel %vm3640_vm15, %v3956_v5, %v3952_v46 }
 0x318   :  { %v4202_v14 = vsel %vm4201_vm0, %v3957_v13, %v4200_v36  ;;  %v3392_v54 = vpop.permute.xlu1 %3391  ;;  %vm4203_vm0 = vcmask 1045509  }
 0x319   :  { %v3965_v4 = vrot.slane %v3392_v54, %v5681_v58  ;;  %v3395_v61 = vpop.permute.xlu0 %3394 }
 0x31a   :  { %v3970_v19 = vrot.slane %v3395_v61, %v5699_v15 }
 0x31b   :  { %v3966_v18 = vsel %vm3542_vm1, %v3965_v4, %v3961_v16 }
 0x31c   :  { %v3971_v40 = vsel %vm3549_vm2, %v3970_v19, %v3966_v18  ;;  %v3398_v20 = vpop.permute.xlu1 %3397 }
 0x31d   :  { %v3975_v29 = vrot.slane %v3398_v20, %v5693_v9 }
 0x31e   :  { %v3401_v25 = vpop.permute.xlu0 %3400 }
 0x31f   :  { %v3980_v1 = vrot.slane %v3401_v25, %v5709_v32  ;;  %v3976_v36 = vsel %vm3556_vm3, %v3975_v29, %v3971_v40 }
 0x320   :  { %v3404_v23 = vpop.permute.xlu1 %3403 }
 0x321   :  { %v3981_v11 = vsel %vm3563_vm4, %v3980_v1, %v3976_v36  ;;  %v3985_v22 = vrot.slane %v3404_v23, %v5715_v41 }
 0x322   :  { %v3407_v27 = vpop.permute.xlu0 %3406 }
 0x323   :  { %v3990_v28 = vrot.slane %v3407_v27, %v5718_v42  ;;  %v3986_v21 = vsel %vm3570_vm5, %v3985_v22, %v3981_v11 }
 0x324   :  { %v3410_v63 = vpop.permute.xlu1 %3409 }
 0x325   :  { %v3991_v30 = vsel %vm3577_vm6, %v3990_v28, %v3986_v21  ;;  %v3995_v31 = vrot.slane %v3410_v63, %v5724_v49 }
 0x326   :  { %v3413_v33 = vpop.permute.xlu0 %3412 }
 0x327   :  { %v4000_v39 = vrot.slane %v3413_v33, %v5729_v59  ;;  %v3996_v26 = vsel %vm3584_vm7, %v3995_v31, %v3991_v30 }
 0x328   :  { %v3416_v44 = vpop.permute.xlu1 %3415 }
 0x329   :  { %v4001_v35 = vsel %vm6112_vm8, %v4000_v39, %v3996_v26  ;;  %v4005_v47 = vrot.slane %v3416_v44, %v5735_v3 }
 0x32a   :  { %v3419_v45 = vpop.permute.xlu0 %3418 }
 0x32b   :  { %v4010_v10 = vrot.slane %v3419_v45, %v5749_v34  ;;  %v4006_v12 = vsel %vm3598_vm9, %v4005_v47, %v4001_v35 }
 0x32c   :  { %v3422_v24 = vpop.permute.xlu1 %3421 }
 0x32d   :  { %v4011_v43 = vsel %vm3605_vm10, %v4010_v10, %v4006_v12  ;;  %v4015_v50 = vrot.slane %v3422_v24, %v5752_v37 }
 0x32e   :  { %v3425_v52 = vpop.permute.xlu0 %3424 }
 0x32f   :  { %v4020_v53 = vrot.slane %v3425_v52, %v5755_v48  ;;  %v4016_v55 = vsel %vm3612_vm11, %v4015_v50, %v4011_v43 }
 0x330   :  { %v3428_v6 = vpop.permute.xlu1 %3427 }
 0x331   :  { %v4021_v57 = vsel %vm3619_vm12, %v4020_v53, %v4016_v55  ;;  %v4025_v62 = vrot.slane %v3428_v6, %v5759_v51 }
 0x332   :  { %v3431_v38 = vpop.permute.xlu0 %3430 }
 0x333   :  { %v4030_v2 = vrot.slane %v3431_v38, %v5763_v56  ;;  %v4026_v17 = vsel %vm3626_vm13, %v4025_v62, %v4021_v57 }
 0x334   :  { %v3434_v46 = vpop.permute.xlu1 %3433 }
 0x335   :  { %v4035_v7 = vrot.slane %v3434_v46, %v5766_v60  ;;  %v4031_v8 = vsel %vm3633_vm14, %v4030_v2, %v4026_v17 }
 0x336   :  { %v3437_v5 = vpop.permute.xlu0 %3436 }
 0x337   :  { %v4036_v13 = vsel %vm3640_vm15, %v4035_v7, %v4031_v8  ;;  %v4040_v63 = vrot.slane %v3437_v5, %v5688_v0 }
 0x338   :  { %v3440_v54 = vpop.permute.xlu1 %3439  ;;  %v6017_v16 = vsel %vm4203_vm0, %v4036_v13, %v4202_v14 }
 0x339   :  { %v4044_v28 = vrot.slane %v3440_v54, %v5681_v58 }
 0x33a   :  { %v3443_v4 = vpop.permute.xlu0 %3442 }
 0x33b   :  { %v4049_v31 = vrot.slane %v3443_v4, %v5699_v15  ;;  %v4045_v39 = vsel %vm3542_vm1, %v4044_v28, %v4040_v63 }
 0x33c   :  { %v3446_v61 = vpop.permute.xlu1 %3445 }
 0x33d   :  { %v4054_v26 = vrot.slane %v3446_v61, %v5693_v9  ;;  %v4050_v10 = vsel %vm3549_vm2, %v4049_v31, %v4045_v39 }
 0x33e   :  { %v3449_v19 = vpop.permute.xlu0 %3448 }
 0x33f   :  { %v4059_v12 = vrot.slane %v3449_v19, %v5709_v32  ;;  %v4055_v24 = vsel %vm3556_vm3, %v4054_v26, %v4050_v10 }
 0x340   :  { %v3452_v18 = vpop.permute.xlu1 %3451 }
 0x342   :  { %v3455_v40 = vpop.permute.xlu0 %3454 }
 0x343   :  { %v4069_v57 = vrot.slane %v3455_v40, %v5718_v42 }
 0x344   :  { %v3458_v20 = vpop.permute.xlu1 %3457 }
 0x345   :  { %v4074_v38 = vrot.slane %v3458_v20, %v5724_v49 }
 0x346   :  { %v3461_v25 = vpop.permute.xlu0 %3460 }
 0x347   :  { %v4079_v5 = vrot.slane %v3461_v25, %v5729_v59 }
 0x348   :  { %v3464_v29 = vpop.permute.xlu1 %3463 }
 0x349   :  { %v4084_v54 = vrot.slane %v3464_v29, %v5735_v3 }
 0x34a   :  { %v3467_v36 = vpop.permute.xlu0 %3466 }
 0x34b   :  { %v4089_v40 = vrot.slane %v3467_v36, %v5749_v34 }
 0x34c   :  { %v6019_v1 = vpop.permute.xlu1 %3469 }
 0x34d   :  { %v4094_v29 = vrot.slane %v6019_v1, %v5752_v37 }
 0x350   :  { %v6021_v11 = vpop.permute.xlu1 %3475 }
 0x351   :  { %v4104_v39 = vrot.slane %v6021_v11, %v5759_v51 }
 0x353   :  { %v3488_v22 = vpop.permute.xlu0 %3487 }
 0x354   :  { %v6023_v23 = vpop.permute.xlu1 %3472  ;;  %v4123_v35 = vrot.slane %v3488_v22, %v5681_v58 }
 0x358   :  { %v6025_v27 = vpop.permute.xlu1 %3478  ;;  %v3494_v14 = vpop.permute.xlu0 %3493 }
 0x359   :  { %v4133_v52 = vrot.slane %v3494_v14, %v5693_v9  ;;  %v4109_v1 = vrot.slane %v6025_v27, %v5763_v56 }
 0x35c   :  { %v3485_v21 = vpop.permute.xlu1 %3484  ;;  %v3500_v30 = vpop.permute.xlu0 %3499 }
 0x35d   :  { %v4119_v33 = vrot.slane %v3485_v21, %v5688_v0  ;;  %v4064_v0 = vrot.slane %v3452_v18, %v5715_v41  ;;  %v4143_v17 = vrot.slane %v3500_v30, %v5715_v41 }
 0x35f   :  { %v4124_v43 = vsel %vm3542_vm1, %v4123_v35, %v4119_v33  ;;  %vm6113_vm1 = vmmov %vm6112_vm8 }
 0x360   :  { %v3491_v44 = vpop.permute.xlu1 %3490  ;;  %v3506_v47 = vpop.permute.xlu0 %3505 }
 0x361   :  { %v4128_v45 = vrot.slane %v3491_v44, %v5699_v15  ;;  %v4060_v15 = vsel %vm3563_vm4, %v4059_v12, %v4055_v24  ;;  %v4153_v61 = vrot.slane %v3506_v47, %v5724_v49  ;;  %v4099_v49 = vrot.slane %v6023_v23, %v5755_v48 }
 0x362   :  { %v4065_v62 = vsel %vm3570_vm5, %v4064_v0, %v4060_v15 }
 0x363   :  { %v4129_v50 = vsel %vm3549_vm2, %v4128_v45, %v4124_v43  ;;  %vm6114_vm2 = vmmov %vm6113_vm1 }
 0x364   :  { %v3497_v53 = vpop.permute.xlu1 %3496  ;;  %v3512_v58 = vpop.permute.xlu0 %3511  ;;  %v4134_v6 = vsel %vm3556_vm3, %v4133_v52, %v4129_v50  ;;  %vm4205_vm3 = vcmask 1046534  }
 0x365   :  { %v4138_v55 = vrot.slane %v3497_v53, %v5709_v32  ;;  %v4070_v32 = vsel %vm3577_vm6, %v4069_v57, %v4065_v62  ;;  %v4163_v20 = vrot.slane %v3512_v58, %v5735_v3 }
 0x366   :  { %v4075_v13 = vsel %vm3584_vm7, %v4074_v38, %v4070_v32 }
 0x367   :  { %v4139_v2 = vsel %vm3563_vm4, %v4138_v55, %v4134_v6  ;;  %vm4207_vm4 = vcmask 1047559  }
 0x368   :  { %v3503_v46 = vpop.permute.xlu1 %3502  ;;  %v3518_v9 = vpop.permute.xlu0 %3517  ;;  %v4144_v8 = vsel %vm3570_vm5, %v4143_v17, %v4139_v2 }
 0x369   :  { %v4148_v7 = vrot.slane %v3503_v46, %v5718_v42  ;;  %v4080_v42 = vsel %vm6113_vm1, %v4079_v5, %v4075_v13  ;;  %v4173_v33 = vrot.slane %v3518_v9, %v5752_v37 }
 0x36a   :  { %v4085_v22 = vsel %vm3598_vm9, %v4084_v54, %v4080_v42 }
 0x36b   :  { %v4149_v4 = vsel %vm3577_vm6, %v4148_v7, %v4144_v8  ;;  %v4090_v3 = vsel %vm3605_vm10, %v4089_v40, %v4085_v22 }
 0x36c   :  { %v3509_v19 = vpop.permute.xlu1 %3508  ;;  %v3515_v41 = vpop.permute.xlu0 %3514  ;;  %v4154_v25 = vsel %vm3584_vm7, %v4153_v61, %v4149_v4  ;;  %v4095_v30 = vsel %vm3612_vm11, %v4094_v29, %v4090_v3 }
 0x36d   :  { %v4158_v18 = vrot.slane %v3509_v19, %v5729_v59  ;;  %v4168_v21 = vrot.slane %v3515_v41, %v5749_v34  ;;  %v4100_v31 = vsel %vm3619_vm12, %v4099_v49, %v4095_v30 }
 0x36e   :  { %v4105_v44 = vsel %vm3626_vm13, %v4104_v39, %v4100_v31 }
 0x36f   :  { %v4159_v14 = vsel %vm6114_vm2, %v4158_v18, %v4154_v25  ;;  %v4110_v10 = vsel %vm3633_vm14, %v4109_v1, %v4105_v44 }
 0x370   :  { %v4164_v59 = vsel %vm3598_vm9, %v4163_v20, %v4159_v14  ;;  %v3524_v28 = vpop.permute.xlu0 %3523  ;;  %v3482_v36 = vpop.permute.xlu1 %3481 }
 0x371   :  { %v4169_v63 = vsel %vm3605_vm10, %v4168_v21, %v4164_v59  ;;  %v4114_v34 = vrot.slane %v3482_v36, %v5766_v60  ;;  %v4183_v27 = vrot.slane %v3524_v28, %v5759_v51 }
 0x372   :  { %v4174_v35 = vsel %vm3612_vm11, %v4173_v33, %v4169_v63 }
 0x373   :  { %v4115_v12 = vsel %vm3640_vm15, %v4114_v34, %v4110_v10 }
 0x374   :  { %v3521_v23 = vpop.permute.xlu0 %3520  ;;  %v3530_v45 = vpop.permute.xlu1 %3529  ;;  %v4206_v50 = vsel %vm4205_vm3, %v4115_v12, %v6017_v16 }
 0x375   :  { %v4178_v26 = vrot.slane %v3521_v23, %v5755_v48  ;;  %v4193_v48 = vrot.slane %v3530_v45, %v5766_v60 }
 0x377   :  { %v4179_v47 = vsel %vm3619_vm12, %v4178_v26, %v4174_v35 }
 0x378   :  { %v3527_v37 = vpop.permute.xlu0 %3526  ;;  %v4184_v43 = vsel %vm3626_vm13, %v4183_v27, %v4179_v47 }
 0x379   :  { %v4188_v11 = vrot.slane %v3527_v37, %v5763_v56 }
 0x37b   :  { %v4189_v24 = vsel %vm3633_vm14, %v4188_v11, %v4184_v43 }
 0x37c   :  { %v4194_v0 = vsel %vm3640_vm15, %v4193_v48, %v4189_v24 }
 0x37d   :  { %v4208_v51 = vsel %vm4207_vm4, %v4194_v0, %v4206_v50 }
 0x37e   :  { %4210 = vst [vmem:[#allocation6] sm:$0xff] %v4208_v51 }
 0x37f   :  { %5350 = shalt.err (!%p5347_p12)
}
 0x380   :  { %s5351_s30 = scalar_lea.hbm %s6110_s4, 128 }
 0x381   :  { %p5352_p13 = scmp.ne.s32.totalorder %s6110_s4, %s5351_s30  ;;  %p5355_p0 = scmp.lt.u32.totalorder %s5351_s30, %s6110_s4 }
 0x383   :  { %p5357_p1 = pnand %p5355_p0, %p5352_p13 }
 0x385   :  { %5360 = shalt.err (!%p5357_p1)
}
 0x386   :  { %4220 = dma.vmem_to_hbm [thread:$0]  %s4218_s26, 128, %s6110_s4, [#allocation5]  }
 0x387   :  { %5363 = dma.done.wait [#allocation5], 128  }
 0x388   :  { %5364 = vsyncadd [#allocation5], 4294967168 }
 0x389   :  { %4224 = vsyncpa [#allocation4], 1 }
 0x38a   :  { %4225 = vsyncpa [#allocation5], 1 }

// kernel: _forward_impl.1
= control target key start
LH: loop header
LB: loop body
LE: loop exit
PB: predicated region body
PF: predicated region fallthrough
CT: control target
= control target key end

     0   :  { %s3488_s17 = smov 0   ;;  %s4580_s0 = inlined_call_operand.vmem [shape: bf16[2048,128], index: 0, kind: input, shape index: {}]   ;;  %s4581_s1 = inlined_call_operand.vmem [shape: bf16[128,32], index: 1, kind: input, shape index: {}]   ;;  %s4582_s2 = inlined_call_operand.vmem [shape: f32[1,32], index: 2, kind: input, shape index: {}]   ;;  %s4583_s3 = inlined_call_operand.<no memory space> [shape: f32[1,1], index: 3, kind: input, shape index: {}]   ;;  %s4584_s4 = inlined_call_operand.vmem [shape: f32[2048,1], index: 4, kind: output, shape index: {}]  }
   0x1   :  { %9 = sst [smem:[#allocation2]] %s4583_s3 }
   0x2 LB: > { %s2799_s18 = sadd.s32 4294967295, %s3458_s17   ;;  %p2803_p0 = scmp.ge.s32.totalorder %s3458_s17, 1  ;;  %s3458_s17 = sphi %s3488_s17, %s15_s17  }
   0x3   : > { %p164_p1 = scmp.lt.s32.totalorder %s3458_s17, 3 }
   0x5   : > { %p165_p2 = pnand %p2803_p0, %p164_p1 }
   0x7   : > { %168 = sbr.rel (%p165_p2) target bundleno = 679 (0x2a7), region = 36 }
   0xe   : > { %v3123_v0 = vld [vmem:[%s4581_s1] sm:$0xff]   ;;  %s2804_s3 = sshll.u32 %s2799_s18, 7  ;;  %v3124_v1 = vld [vmem:[%s4581_s1 + $0x8] sm:$0xff]   ;;  %v3125_v2 = vld [vmem:[%s4581_s1 + $0x10] sm:$0xff]   ;;  %vm1587_vm0 = vcmask 261120   ;;  %s1972_s15 = sld [smem:[#allocation2]] }
   0xf   : > { %p191_p3 = scmp.lt.s32.totalorder %s2804_s3, 255  ;;  %2955 = vmatprep.subr.bf16.mxu0 %v3123_v0  ;;  %3099 = vmatprep.subr.bf16.mxu1 %v3123_v0  ;;  %v3126_v3 = vld [vmem:[%s4581_s1 + $0x18] sm:$0xff]   ;;  %v3127_v6 = vld [vmem:[%s4581_s1 + $0x20] sm:$0xff]   ;;  %v3128_v7 = vld [vmem:[%s4581_s1 + $0x28] sm:$0xff]   ;;  %vm2614_vm1 = vcmask 7168  }
  0x10   : > { %2956 = vmatpush3.bf16.msra.mxu0 %v3123_v0  ;;  %3107 = vmatpush3.bf16.msra.mxu1 %v3123_v0  ;;  %v3129_v8 = vld [vmem:[%s4581_s1 + $0x30] sm:$0xff]   ;;  %v3130_v9 = vld [vmem:[%s4581_s1 + $0x38] sm:$0xff]  }
  0x11   : > { %s4614_s3 = smov (!%p191_p3, %s2804_s3), 255  ;;  %2957 = vmatprep.subr.bf16.mxu0 %v3124_v1  ;;  %3100 = vmatprep.subr.bf16.mxu1 %v3124_v1 }
  0x12   : > { %s2805_s25 = sshll.u32 %s4614_s3, 2  ;;  %s2807_s16 = sshll.u32 %s4614_s3, 3 }
  0x13   : > { %s3511_s28 = scalar_lea.vmem %s4580_s0, %s2805_s25  ;;  %s4060_s20 = scalar_lea.vmem %s4584_s4, %s2807_s16 }
  0x14   : > { %2958 = vmatpush3.bf16.msra.mxu0 %v3124_v1  ;;  %3108 = vmatpush3.bf16.msra.mxu1 %v3124_v1  ;;  %v3131_v4 = vld [vmem:[%s3511_s28] sm:$0xff]   ;;  %v3133_v10 = vld [vmem:[%s3511_s28 + $0x8] sm:$0xff]   ;;  %v3135_v12 = vld [vmem:[%s3511_s28 + $0x10] sm:$0xff]  }
  0x15   : > { %2959 = vmatprep.subr.bf16.mxu0 %v3125_v2  ;;  %3101 = vmatprep.subr.bf16.mxu1 %v3125_v2  ;;  %v3132_v5 = vld [vmem:[%s3511_s28 + $0x100] sm:$0xff]   ;;  %v3134_v11 = vld [vmem:[%s3511_s28 + $0x108] sm:$0xff]   ;;  %v3137_v13 = vld [vmem:[%s3511_s28 + $0x110] sm:$0xff]  }
  0x16   : > { %2971 = vmatprep.mubr.bf16.mxu0 %v3131_v4  ;;  %3035 = vmatprep.mubr.bf16.mxu1 %v3132_v5  ;;  %v3136_v14 = vld [vmem:[%s3511_s28 + $0x18] sm:$0xff]   ;;  %v3139_v16 = vld [vmem:[%s3511_s28 + $0x20] sm:$0xff]   ;;  %v3140_v18 = vld [vmem:[%s3511_s28 + $0x28] sm:$0xff]  }
  0x17   : > { %v3138_v15 = vld [vmem:[%s3511_s28 + $0x118] sm:$0xff]   ;;  %v3141_v17 = vld [vmem:[%s3511_s28 + $0x120] sm:$0xff]   ;;  %v3142_v19 = vld [vmem:[%s3511_s28 + $0x128] sm:$0xff]  }
  0x18   : > { %2960 = vmatpush3.bf16.msra.mxu0 %v3125_v2  ;;  %3109 = vmatpush3.bf16.msra.mxu1 %v3125_v2  ;;  %v3143_v20 = vld [vmem:[%s3511_s28 + $0x30] sm:$0xff]   ;;  %v3144_v22 = vld [vmem:[%s3511_s28 + $0x38] sm:$0xff]   ;;  %v3147_v24 = vld [vmem:[%s3511_s28 + $0x40] sm:$0xff]  }
  0x19   : > { %2961 = vmatprep.subr.bf16.mxu0 %v3126_v3  ;;  %3102 = vmatprep.subr.bf16.mxu1 %v3126_v3  ;;  %v3145_v21 = vld [vmem:[%s3511_s28 + $0x130] sm:$0xff]   ;;  %v3146_v23 = vld [vmem:[%s3511_s28 + $0x138] sm:$0xff]   ;;  %v3149_v25 = vld [vmem:[%s3511_s28 + $0x140] sm:$0xff]  }
  0x1a   : > { %v3148_v26 = vld [vmem:[%s3511_s28 + $0x48] sm:$0xff]   ;;  %v3151_v28 = vld [vmem:[%s3511_s28 + $0x50] sm:$0xff]   ;;  %v3152_v30 = vld [vmem:[%s3511_s28 + $0x58] sm:$0xff]  }
  0x1b   : > { %v3150_v27 = vld [vmem:[%s3511_s28 + $0x148] sm:$0xff]   ;;  %v3153_v29 = vld [vmem:[%s3511_s28 + $0x150] sm:$0xff]   ;;  %v3154_v31 = vld [vmem:[%s3511_s28 + $0x158] sm:$0xff]  }
  0x1c   : > { %2962 = vmatpush3.bf16.msra.mxu0 %v3126_v3  ;;  %3110 = vmatpush3.bf16.msra.mxu1 %v3126_v3  ;;  %v3155_v32 = vld [vmem:[%s3511_s28 + $0x60] sm:$0xff]   ;;  %v3156_v34 = vld [vmem:[%s3511_s28 + $0x68] sm:$0xff]   ;;  %v3159_v36 = vld [vmem:[%s3511_s28 + $0x70] sm:$0xff]  }
  0x1d   : > { %2963 = vmatprep.subr.bf16.mxu0 %v3127_v6  ;;  %3103 = vmatprep.subr.bf16.mxu1 %v3127_v6  ;;  %v3157_v33 = vld [vmem:[%s3511_s28 + $0x160] sm:$0xff]   ;;  %v3158_v35 = vld [vmem:[%s3511_s28 + $0x168] sm:$0xff]   ;;  %v3161_v37 = vld [vmem:[%s3511_s28 + $0x170] sm:$0xff]  }
  0x1e   : > { %v3160_v38 = vld [vmem:[%s3511_s28 + $0x78] sm:$0xff]   ;;  %v3163_v40 = vld [vmem:[%s3511_s28 + $0x80] sm:$0xff]   ;;  %v3164_v42 = vld [vmem:[%s3511_s28 + $0x88] sm:$0xff]  }
  0x1f   : > { %v3162_v39 = vld [vmem:[%s3511_s28 + $0x178] sm:$0xff]   ;;  %v3165_v41 = vld [vmem:[%s3511_s28 + $0x180] sm:$0xff]   ;;  %v3166_v43 = vld [vmem:[%s3511_s28 + $0x188] sm:$0xff]  }
  0x20   : > { %2964 = vmatpush3.bf16.msra.mxu0 %v3127_v6  ;;  %3111 = vmatpush3.bf16.msra.mxu1 %v3127_v6  ;;  %v3167_v44 = vld [vmem:[%s3511_s28 + $0x90] sm:$0xff]   ;;  %v3168_v46 = vld [vmem:[%s3511_s28 + $0x98] sm:$0xff]   ;;  %v3171_v48 = vld [vmem:[%s3511_s28 + $0xa0] sm:$0xff]  }
  0x21   : > { %2965 = vmatprep.subr.bf16.mxu0 %v3128_v7  ;;  %3104 = vmatprep.subr.bf16.mxu1 %v3128_v7  ;;  %v3169_v45 = vld [vmem:[%s3511_s28 + $0x190] sm:$0xff]   ;;  %v3170_v47 = vld [vmem:[%s3511_s28 + $0x198] sm:$0xff]   ;;  %v3173_v49 = vld [vmem:[%s3511_s28 + $0x1a0] sm:$0xff]  }
  0x22   : > { %v3172_v50 = vld [vmem:[%s3511_s28 + $0xa8] sm:$0xff]   ;;  %v3175_v52 = vld [vmem:[%s3511_s28 + $0xb0] sm:$0xff]   ;;  %v3176_v54 = vld [vmem:[%s3511_s28 + $0xb8] sm:$0xff]  }
  0x23   : > { %v3174_v51 = vld [vmem:[%s3511_s28 + $0x1a8] sm:$0xff]   ;;  %v3177_v53 = vld [vmem:[%s3511_s28 + $0x1b0] sm:$0xff]   ;;  %v3178_v55 = vld [vmem:[%s3511_s28 + $0x1b8] sm:$0xff]  }
  0x24   : > { %2966 = vmatpush3.bf16.msra.mxu0 %v3128_v7  ;;  %3112 = vmatpush3.bf16.msra.mxu1 %v3128_v7  ;;  %v3179_v56 = vld [vmem:[%s3511_s28 + $0xc0] sm:$0xff]   ;;  %v3180_v58 = vld [vmem:[%s3511_s28 + $0xc8] sm:$0xff]   ;;  %v3183_v60 = vld [vmem:[%s3511_s28 + $0xd0] sm:$0xff]  }
  0x25   : > { %2967 = vmatprep.subr.bf16.mxu0 %v3129_v8  ;;  %3105 = vmatprep.subr.bf16.mxu1 %v3129_v8  ;;  %v3181_v57 = vld [vmem:[%s3511_s28 + $0x1c0] sm:$0xff]   ;;  %v3182_v59 = vld [vmem:[%s3511_s28 + $0x1c8] sm:$0xff]   ;;  %v3185_v61 = vld [vmem:[%s3511_s28 + $0x1d0] sm:$0xff]  }
  0x26   : > { %v3184_v62 = vld [vmem:[%s3511_s28 + $0xd8] sm:$0xff]   ;;  %v3187_v0 = vld [vmem:[%s3511_s28 + $0xe0] sm:$0xff]   ;;  %v3188_v2 = vld [vmem:[%s3511_s28 + $0xe8] sm:$0xff]  }
  0x27   : > { %v3186_v63 = vld [vmem:[%s3511_s28 + $0x1d8] sm:$0xff]   ;;  %v3189_v1 = vld [vmem:[%s3511_s28 + $0x1e0] sm:$0xff]   ;;  %v3190_v3 = vld [vmem:[%s3511_s28 + $0x1e8] sm:$0xff]  }
  0x28   : > { %2968 = vmatpush3.bf16.msra.mxu0 %v3129_v8  ;;  %3113 = vmatpush3.bf16.msra.mxu1 %v3129_v8  ;;  %v3191_v4 = vld [vmem:[%s3511_s28 + $0xf0] sm:$0xff]   ;;  %v3192_v6 = vld [vmem:[%s3511_s28 + $0xf8] sm:$0xff]  }
  0x29   : > { %2969 = vmatprep.subr.bf16.mxu0 %v3130_v9  ;;  %3106 = vmatprep.subr.bf16.mxu1 %v3130_v9  ;;  %v3193_v5 = vld [vmem:[%s3511_s28 + $0x1f0] sm:$0xff]   ;;  %v3194_v7 = vld [vmem:[%s3511_s28 + $0x1f8] sm:$0xff]  }
  0x2c   : > { %2970 = vmatpush3.bf16.msra.mxu0 %v3130_v9  ;;  %3114 = vmatpush3.bf16.msra.mxu1 %v3130_v9 }
  0x2f   : > { %2972 = vmatmul.mubr.bf16.vlgmr.msra.gmra.mrb[0].mxu0 %v3133_v10  ;;  %3036 = vmatmul.mubr.bf16.vlgmr.msra.gmra.mrb[0].mxu1 %v3134_v11  ;;  %v3595_v10 = vld [vmem:[%s4582_s2] ss:$0 sm:$0xff] }
  0x30   : > { %2975 = vmatprep.mubr.bf16.mxu0 %v3135_v12  ;;  %3039 = vmatprep.mubr.bf16.mxu1 %v3137_v13 }
  0x37   : > { %2976 = vmatmul.mubr.bf16.gmra.mrb[4].mxu0 %v3136_v14  ;;  %3040 = vmatmul.mubr.bf16.gmra.mrb[4].mxu1 %v3138_v15 }
  0x38   : > { %2979 = vmatprep.mubr.bf16.mxu0 %v3139_v16  ;;  %3043 = vmatprep.mubr.bf16.mxu1 %v3141_v17 }
  0x3f   : > { %2980 = vmatmul.mubr.bf16.gmra.mrb[8].mxu0 %v3140_v18  ;;  %3044 = vmatmul.mubr.bf16.gmra.mrb[8].mxu1 %v3142_v19 }
  0x40   : > { %2983 = vmatprep.mubr.bf16.mxu0 %v3143_v20  ;;  %3047 = vmatprep.mubr.bf16.mxu1 %v3145_v21 }
  0x47   : > { %2984 = vmatmul.mubr.bf16.gmra.mrb[12].mxu0 %v3144_v22  ;;  %3048 = vmatmul.mubr.bf16.gmra.mrb[12].mxu1 %v3146_v23 }
  0x48   : > { %2987 = vmatprep.mubr.bf16.mxu0 %v3147_v24  ;;  %3051 = vmatprep.mubr.bf16.mxu1 %v3149_v25 }
  0x4f   : > { %2988 = vmatmul.mubr.bf16.gmra.mrb[16].mxu0 %v3148_v26  ;;  %3052 = vmatmul.mubr.bf16.gmra.mrb[16].mxu1 %v3150_v27 }
  0x50   : > { %2991 = vmatprep.mubr.bf16.mxu0 %v3151_v28  ;;  %3055 = vmatprep.mubr.bf16.mxu1 %v3153_v29 }
  0x57   : > { %2992 = vmatmul.mubr.bf16.gmra.mrb[20].mxu0 %v3152_v30  ;;  %3056 = vmatmul.mubr.bf16.gmra.mrb[20].mxu1 %v3154_v31 }
  0x58   : > { %2995 = vmatprep.mubr.bf16.mxu0 %v3155_v32  ;;  %3059 = vmatprep.mubr.bf16.mxu1 %v3157_v33 }
  0x5f   : > { %2996 = vmatmul.mubr.bf16.gmra.mrb[24].mxu0 %v3156_v34  ;;  %3060 = vmatmul.mubr.bf16.gmra.mrb[24].mxu1 %v3158_v35 }
  0x60   : > { %2999 = vmatprep.mubr.bf16.mxu0 %v3159_v36  ;;  %3063 = vmatprep.mubr.bf16.mxu1 %v3161_v37 }
  0x67   : > { %3000 = vmatmul.mubr.bf16.gmra.mrb[28].mxu0 %v3160_v38  ;;  %3064 = vmatmul.mubr.bf16.gmra.mrb[28].mxu1 %v3162_v39 }
  0x68   : > { %3003 = vmatprep.mubr.bf16.mxu0 %v3163_v40  ;;  %3067 = vmatprep.mubr.bf16.mxu1 %v3165_v41 }
  0x6f   : > { %3004 = vmatmul.mubr.bf16.gmra.mrb[32].mxu0 %v3164_v42  ;;  %3068 = vmatmul.mubr.bf16.gmra.mrb[32].mxu1 %v3166_v43 }
  0x70   : > { %3007 = vmatprep.mubr.bf16.mxu0 %v3167_v44  ;;  %3071 = vmatprep.mubr.bf16.mxu1 %v3169_v45 }
  0x77   : > { %3008 = vmatmul.mubr.bf16.gmra.mrb[36].mxu0 %v3168_v46  ;;  %3072 = vmatmul.mubr.bf16.gmra.mrb[36].mxu1 %v3170_v47 }
  0x78   : > { %3011 = vmatprep.mubr.bf16.mxu0 %v3171_v48  ;;  %3075 = vmatprep.mubr.bf16.mxu1 %v3173_v49 }
  0x7f   : > { %3012 = vmatmul.mubr.bf16.gmra.mrb[40].mxu0 %v3172_v50  ;;  %3076 = vmatmul.mubr.bf16.gmra.mrb[40].mxu1 %v3174_v51 }
  0x80   : > { %3015 = vmatprep.mubr.bf16.mxu0 %v3175_v52  ;;  %3079 = vmatprep.mubr.bf16.mxu1 %v3177_v53 }
  0x87   : > { %3016 = vmatmul.mubr.bf16.gmra.mrb[44].mxu0 %v3176_v54  ;;  %3080 = vmatmul.mubr.bf16.gmra.mrb[44].mxu1 %v3178_v55 }
  0x88   : > { %3019 = vmatprep.mubr.bf16.mxu0 %v3179_v56  ;;  %3083 = vmatprep.mubr.bf16.mxu1 %v3181_v57 }
  0x8f   : > { %3020 = vmatmul.mubr.bf16.gmra.mrb[48].mxu0 %v3180_v58  ;;  %3084 = vmatmul.mubr.bf16.gmra.mrb[48].mxu1 %v3182_v59 }
  0x90   : > { %3023 = vmatprep.mubr.bf16.mxu0 %v3183_v60  ;;  %3087 = vmatprep.mubr.bf16.mxu1 %v3185_v61 }
  0x97   : > { %3024 = vmatmul.mubr.bf16.gmra.mrb[52].mxu0 %v3184_v62  ;;  %3088 = vmatmul.mubr.bf16.gmra.mrb[52].mxu1 %v3186_v63 }
  0x98   : > { %3027 = vmatprep.mubr.bf16.mxu0 %v3187_v0  ;;  %3091 = vmatprep.mubr.bf16.mxu1 %v3189_v1 }
  0x9f   : > { %3028 = vmatmul.mubr.bf16.gmra.mrb[56].mxu0 %v3188_v2  ;;  %3092 = vmatmul.mubr.bf16.gmra.mrb[56].mxu1 %v3190_v3 }
  0xa0   : > { %3031 = vmatprep.mubr.bf16.mxu0 %v3191_v4  ;;  %3095 = vmatprep.mubr.bf16.mxu1 %v3193_v5 }
  0xa7   : > { %3032 = vmatmul.mubr.bf16.gmra.mrb[60].mxu0 %v3192_v6  ;;  %3096 = vmatmul.mubr.bf16.gmra.mrb[60].mxu1 %v3194_v7 }
 0x102   : > { %v2973_v8 = vpop.f32.mrb[0].mxu0  ;;  %v3037_v9 = vpop.f32.mrb[0].mxu1 }
 0x103   : > { %v1326_v11 = vmax.f32 %v2973_v8, 0.0  ;;  %v1390_v12 = vmax.f32 %v3037_v9, 0.0  ;;  %v813_v13 = vpop.f32.mrb[1].mxu0  ;;  %v1069_v14 = vpop.f32.mrb[1].mxu1 }
 0x104   : > { %v1324_v15 = vmax.f32 %v813_v13, 0.0  ;;  %v2974_v16 = vpop.f32.mrb[2].mxu0  ;;  %v3038_v17 = vpop.f32.mrb[2].mxu1  ;;  %v1388_v23 = vmax.f32 %v1069_v14, 0.0 }
 0x105   : > { %v1327_v18 = vmax.f32 %v2974_v16, 0.0  ;;  %v816_v19 = vpop.f32.mrb[3].mxu0  ;;  %v1072_v20 = vpop.f32.mrb[3].mxu1  ;;  %v1525_v21 = vmul.f32 %v3595_v10, %v1390_v12  ;;  %v1461_v22 = vmul.f32 %v3595_v10, %v1326_v11  ;;  %v1391_v24 = vmax.f32 %v3038_v17, 0.0 }
 0x106   : > { %v1459_v27 = vmul.f32 %v3595_v10, %v1324_v15  ;;  %v1389_v29 = vmax.f32 %v1072_v20, 0.0  ;;  %v1523_v31 = vmul.f32 %v3595_v10, %v1388_v23  ;;  %v1325_v33 = vmax.f32 %v816_v19, 0.0 }
 0x107   : > { %v1786_v25 = vsel %vm1587_vm0, %v1525_v21, 0.0  ;;  %v1594_v26 = vsel %vm1587_vm0, %v1461_v22, 0.0  ;;  %v1462_v28 = vmul.f32 %v3595_v10, %v1327_v18  ;;  %v1526_v37 = vmul.f32 %v3595_v10, %v1391_v24 }
 0x108   : > { %1787 = vadd.xlane.f32.xlu0 %v1786_v25  ;;  %1595 = vadd.xlane.f32.xlu1 %v1594_v26  ;;  %v1588_v34 = vsel %vm1587_vm0, %v1459_v27, 0.0  ;;  %v1780_v43 = vsel %vm1587_vm0, %v1523_v31, 0.0  ;;  %v1524_v44 = vmul.f32 %v3595_v10, %v1389_v29  ;;  %v1460_v48 = vmul.f32 %v3595_v10, %v1325_v33 }
 0x109   : > { %v1597_v35 = vsel %vm1587_vm0, %v1462_v28, 0.0  ;;  %v1789_v47 = vsel %vm1587_vm0, %v1526_v37, 0.0 }
 0x10a   : > { %v2977_v30 = vpop.f32.mrb[4].mxu0  ;;  %v3041_v32 = vpop.f32.mrb[4].mxu1  ;;  %v1783_v50 = vsel %vm1587_vm0, %v1524_v44, 0.0  ;;  %v1591_v54 = vsel %vm1587_vm0, %v1460_v48, 0.0 }
 0x10b   : > { %v829_v36 = vpop.f32.mrb[5].mxu0  ;;  %v1085_v38 = vpop.f32.mrb[5].mxu1  ;;  %v1330_v45 = vmax.f32 %v2977_v30, 0.0  ;;  %v1394_v49 = vmax.f32 %v3041_v32, 0.0 }
 0x10c   : > { %1589 = vadd.xlane.f32.xlu0 %v1588_v34  ;;  %1598 = vadd.xlane.f32.xlu1 %v1597_v35  ;;  %v2978_v39 = vpop.f32.mrb[6].mxu0  ;;  %v3042_v40 = vpop.f32.mrb[6].mxu1  ;;  %v1328_v63 = vmax.f32 %v829_v36, 0.0  ;;  %v1392_v5 = vmax.f32 %v1085_v38, 0.0 }
 0x10d   : > { %v832_v41 = vpop.f32.mrb[7].mxu0  ;;  %v1088_v42 = vpop.f32.mrb[7].mxu1  ;;  %v1331_v46 = vmax.f32 %v2978_v39, 0.0  ;;  %v1395_v53 = vmax.f32 %v3042_v40, 0.0  ;;  %v1465_v55 = vmul.f32 %v3595_v10, %v1330_v45  ;;  %v1529_v0 = vmul.f32 %v3595_v10, %v1394_v49 }
 0x10e   : > { %v1329_v1 = vmax.f32 %v832_v41, 0.0  ;;  %v1463_v6 = vmul.f32 %v3595_v10, %v1328_v63  ;;  %v1393_v9 = vmax.f32 %v1088_v42, 0.0  ;;  %v1527_v21 = vmul.f32 %v3595_v10, %v1392_v5 }
 0x10f   : > { %v1466_v56 = vmul.f32 %v3595_v10, %v1331_v46  ;;  %v1606_v2 = vsel %vm1587_vm0, %v1465_v55, 0.0  ;;  %v1530_v4 = vmul.f32 %v3595_v10, %v1395_v53  ;;  %v1798_v11 = vsel %vm1587_vm0, %v1529_v0, 0.0 }
 0x110   : > { %1781 = vadd.xlane.f32.xlu0 %v1780_v43  ;;  %1790 = vadd.xlane.f32.xlu1 %v1789_v47  ;;  %v1464_v13 = vmul.f32 %v3595_v10, %v1329_v1  ;;  %v1600_v20 = vsel %vm1587_vm0, %v1463_v6, 0.0  ;;  %v1528_v25 = vmul.f32 %v3595_v10, %v1393_v9  ;;  %v1792_v27 = vsel %vm1587_vm0, %v1527_v21, 0.0 }
 0x111   : > { %v1609_v3 = vsel %vm1587_vm0, %v1466_v56, 0.0  ;;  %v1801_v12 = vsel %vm1587_vm0, %v1530_v4, 0.0 }
 0x112   : > { %v2981_v51 = vpop.f32.mrb[8].mxu0  ;;  %v3612_v52 = vpop.f32.mrb[8].mxu1  ;;  %v1603_v24 = vsel %vm1587_vm0, %v1464_v13, 0.0  ;;  %v1795_v31 = vsel %vm1587_vm0, %v1528_v25, 0.0 }
 0x113   : > { %v3617_v57 = vpop.f32.mrb[9].mxu0  ;;  %v3619_v58 = vpop.f32.mrb[9].mxu1  ;;  %v1334_v22 = vmax.f32 %v2981_v51, 0.0  ;;  %v1398_v26 = vmax.f32 %v3612_v52, 0.0 }
 0x114   : > { %1784 = vadd.xlane.f32.xlu1 %v1783_v50  ;;  %1592 = vadd.xlane.f32.xlu0 %v1591_v54  ;;  %v2982_v59 = vpop.f32.mrb[10].mxu0  ;;  %v3046_v60 = vpop.f32.mrb[10].mxu1  ;;  %v1332_v40 = vmax.f32 %v3617_v57, 0.0  ;;  %v1396_v46 = vmax.f32 %v3619_v58, 0.0 }
 0x115   : > { %v3621_v61 = vpop.f32.mrb[11].mxu0  ;;  %v3623_v62 = vpop.f32.mrb[11].mxu1  ;;  %v1335_v23 = vmax.f32 %v2982_v59, 0.0  ;;  %v1399_v30 = vmax.f32 %v3046_v60, 0.0  ;;  %v1469_v32 = vmul.f32 %v3595_v10, %v1334_v22  ;;  %v1533_v41 = vmul.f32 %v3595_v10, %v1398_v26 }
 0x116   : > { %v1333_v42 = vmax.f32 %v3621_v61, 0.0  ;;  %v1467_v47 = vmul.f32 %v3595_v10, %v1332_v40  ;;  %v1397_v50 = vmax.f32 %v3623_v62, 0.0  ;;  %v1531_v61 = vmul.f32 %v3595_v10, %v1396_v46 }
 0x117   : > { %v1470_v33 = vmul.f32 %v3595_v10, %v1335_v23  ;;  %v1618_v43 = vsel %vm1587_vm0, %v1469_v32, 0.0  ;;  %v1534_v45 = vmul.f32 %v3595_v10, %v1399_v30  ;;  %v1810_v51 = vsel %vm1587_vm0, %v1533_v41, 0.0 }
 0x118   : > { %1607 = vadd.xlane.f32.xlu0 %v1606_v2  ;;  %1610 = vadd.xlane.f32.xlu1 %v1609_v3  ;;  %v1468_v53 = vmul.f32 %v3595_v10, %v1333_v42  ;;  %v1612_v60 = vsel %vm1587_vm0, %v1467_v47, 0.0  ;;  %v1532_v1 = vmul.f32 %v3595_v10, %v1397_v50  ;;  %v1804_v3 = vsel %vm1587_vm0, %v1531_v61, 0.0 }
 0x119   : > { %v1621_v44 = vsel %vm1587_vm0, %v1470_v33, 0.0  ;;  %v1813_v52 = vsel %vm1587_vm0, %v1534_v45, 0.0 }
 0x11a   : > { %v3630_v7 = vpop.f32.mrb[12].mxu0  ;;  %v3632_v8 = vpop.f32.mrb[12].mxu1  ;;  %v1615_v0 = vsel %vm1587_vm0, %v1468_v53, 0.0 }
 0x11b   : > { %v3637_v14 = vpop.f32.mrb[13].mxu0  ;;  %v3639_v15 = vpop.f32.mrb[13].mxu1  ;;  %v1338_v62 = vmax.f32 %v3630_v7, 0.0  ;;  %v1402_v2 = vmax.f32 %v3632_v8, 0.0  ;;  %v1807_v7 = vsel %vm1587_vm0, %v1532_v1, 0.0 }
 0x11c   : > { %1799 = vadd.xlane.f32.xlu0 %v1798_v11  ;;  %1802 = vadd.xlane.f32.xlu1 %v1801_v12  ;;  %v3641_v16 = vpop.f32.mrb[14].mxu0  ;;  %v3643_v17 = vpop.f32.mrb[14].mxu1 }
 0x11d   : > { %v3645_v18 = vpop.f32.mrb[15].mxu0  ;;  %v3647_v19 = vpop.f32.mrb[15].mxu1  ;;  %v1339_v63 = vmax.f32 %v3641_v16, 0.0  ;;  %v1403_v6 = vmax.f32 %v3643_v17, 0.0  ;;  %v1473_v9 = vmul.f32 %v3595_v10, %v1338_v62  ;;  %v1336_v17 = vmax.f32 %v3637_v14, 0.0 }
 0x11e   : > { %v1537_v22 = vmul.f32 %v3595_v10, %v1402_v2  ;;  %v1337_v23 = vmax.f32 %v3645_v18, 0.0  ;;  %v1401_v14 = vmax.f32 %v3647_v19, 0.0 }
 0x11f   : > { %v1474_v11 = vmul.f32 %v3595_v10, %v1339_v63  ;;  %v1538_v26 = vmul.f32 %v3595_v10, %v1403_v6  ;;  %v1471_v30 = vmul.f32 %v3595_v10, %v1336_v17 }
 0x120   : > { %1601 = vadd.xlane.f32.xlu0 %v1600_v20  ;;  %1604 = vadd.xlane.f32.xlu1 %v1603_v24  ;;  %v1630_v24 = vsel %vm1587_vm0, %v1473_v9, 0.0  ;;  %v1822_v18 = vsel %vm1587_vm0, %v1537_v22, 0.0  ;;  %v1472_v40 = vmul.f32 %v3595_v10, %v1337_v23 }
 0x121   : > { %v1633_v25 = vsel %vm1587_vm0, %v1474_v11, 0.0  ;;  %v1825_v33 = vsel %vm1587_vm0, %v1538_v26, 0.0  ;;  %v1624_v19 = vsel %vm1587_vm0, %v1471_v30, 0.0 }
 0x122   : > { %v3655_v28 = vpop.f32.mrb[16].mxu0  ;;  %v3657_v29 = vpop.f32.mrb[16].mxu1 }
 0x123   : > { %v3662_v34 = vpop.f32.mrb[17].mxu0  ;;  %v3664_v35 = vpop.f32.mrb[17].mxu1  ;;  %v1342_v47 = vmax.f32 %v3655_v28, 0.0  ;;  %v1406_v53 = vmax.f32 %v3657_v29, 0.0 }
 0x124   : > { %1793 = vadd.xlane.f32.xlu0 %v1792_v27  ;;  %1796 = vadd.xlane.f32.xlu1 %v1795_v31  ;;  %v3666_v36 = vpop.f32.mrb[18].mxu0  ;;  %v3668_v37 = vpop.f32.mrb[18].mxu1  ;;  %v1400_v27 = vmax.f32 %v3639_v15, 0.0 }
 0x125   : > { %v3670_v38 = vpop.f32.mrb[19].mxu0  ;;  %v3672_v39 = vpop.f32.mrb[19].mxu1  ;;  %v1343_v50 = vmax.f32 %v3666_v36, 0.0  ;;  %v1407_v63 = vmax.f32 %v3668_v37, 0.0  ;;  %v1477_v36 = vmul.f32 %v3595_v10, %v1342_v47  ;;  %v1340_v37 = vmax.f32 %v3662_v34, 0.0 }
 0x126   : > { %v1535_v46 = vmul.f32 %v3595_v10, %v1400_v27  ;;  %v1541_v9 = vmul.f32 %v3595_v10, %v1406_v53  ;;  %v1341_v11 = vmax.f32 %v3670_v38, 0.0  ;;  %v1405_v34 = vmax.f32 %v3672_v39, 0.0 }
 0x127   : > { %v1642_v17 = vsel %vm1587_vm0, %v1477_v36, 0.0  ;;  %v1542_v23 = vmul.f32 %v3595_v10, %v1407_v63 }
 0x128   : > { %1619 = vadd.xlane.f32.xlu0 %v1618_v43  ;;  %1622 = vadd.xlane.f32.xlu1 %v1621_v44  ;;  %v1834_v38 = vsel %vm1587_vm0, %v1541_v9, 0.0  ;;  %v1540_v53 = vmul.f32 %v3595_v10, %v1405_v34 }
 0x129   : > { %v1837_v30 = vsel %vm1587_vm0, %v1542_v23, 0.0 }
 0x12a   : > { %v3682_v48 = vpop.f32.mrb[20].mxu0  ;;  %v3684_v49 = vpop.f32.mrb[20].mxu1 }
 0x12b   : > { %v3690_v54 = vpop.f32.mrb[21].mxu0  ;;  %v3692_v55 = vpop.f32.mrb[21].mxu1 }
 0x12c   : > { %1811 = vadd.xlane.f32.xlu0 %v1810_v51  ;;  %1814 = vadd.xlane.f32.xlu1 %v1813_v52  ;;  %v3694_v56 = vpop.f32.mrb[22].mxu0  ;;  %v3696_v57 = vpop.f32.mrb[22].mxu1  ;;  %v1627_v51 = vsel %vm1587_vm0, %v1472_v40, 0.0  ;;  %v1536_v52 = vmul.f32 %v3595_v10, %v1401_v14  ;;  %v1476_v14 = vmul.f32 %v3595_v10, %v1341_v11 }
 0x12d   : > { %v3698_v58 = vpop.f32.mrb[23].mxu0  ;;  %v3700_v59 = vpop.f32.mrb[23].mxu1 }
 0x12e   : > { %v1819_v28 = vsel %vm1587_vm0, %v1536_v52, 0.0  ;;  %v1639_v52 = vsel %vm1587_vm0, %v1476_v14, 0.0  ;;  %v1408_v14 = vmax.f32 %v3692_v55, 0.0 }
 0x130   : > { %1613 = vadd.xlane.f32.xlu0 %v1612_v60  ;;  %1616 = vadd.xlane.f32.xlu1 %v1615_v0  ;;  %v1816_v60 = vsel %vm1587_vm0, %v1535_v46, 0.0  ;;  %v1478_v0 = vmul.f32 %v3595_v10, %v1343_v50  ;;  %v1346_v50 = vmax.f32 %v3682_v48, 0.0  ;;  %v1831_v48 = vsel %vm1587_vm0, %v1540_v53, 0.0 }
 0x132   : > { %v3710_v4 = vpop.f32.mrb[24].mxu0  ;;  %v3712_v5 = vpop.f32.mrb[24].mxu1  ;;  %v1645_v22 = vsel %vm1587_vm0, %v1478_v0, 0.0  ;;  %v1411_v0 = vmax.f32 %v3696_v57, 0.0  ;;  %v1344_v57 = vmax.f32 %v3690_v54, 0.0  ;;  %v1409_v54 = vmax.f32 %v3700_v59, 0.0 }
 0x133   : > { %v3718_v12 = vpop.f32.mrb[25].mxu0  ;;  %v3720_v13 = vpop.f32.mrb[25].mxu1 }
 0x134   : > { %1805 = vadd.xlane.f32.xlu0 %v1804_v3  ;;  %1808 = vadd.xlane.f32.xlu1 %v1807_v7  ;;  %v3722_v8 = vpop.f32.mrb[26].mxu0  ;;  %v3724_v16 = vpop.f32.mrb[26].mxu1 }
 0x135   : > { %v3726_v20 = vpop.f32.mrb[27].mxu0  ;;  %v3728_v21 = vpop.f32.mrb[27].mxu1 }
 0x138   : > { %1631 = vadd.xlane.f32.xlu0 %v1630_v24  ;;  %1634 = vadd.xlane.f32.xlu1 %v1633_v25  ;;  %v1404_v24 = vmax.f32 %v3664_v35, 0.0  ;;  %v1475_v25 = vmul.f32 %v3595_v10, %v1340_v37 }
 0x13a   : > { %v3738_v31 = vpop.f32.mrb[28].mxu0  ;;  %v3740_v32 = vpop.f32.mrb[28].mxu1  ;;  %v1636_v39 = vsel %vm1587_vm0, %v1475_v25, 0.0  ;;  %v1539_v47 = vmul.f32 %v3595_v10, %v1404_v24  ;;  %v1345_v25 = vmax.f32 %v3698_v58, 0.0 }
 0x13b   : > { %v3746_v41 = vpop.f32.mrb[29].mxu0  ;;  %v3748_v42 = vpop.f32.mrb[29].mxu1 }
 0x13c   : > { %1823 = vadd.xlane.f32.xlu0 %v1822_v18  ;;  %1826 = vadd.xlane.f32.xlu1 %v1825_v33  ;;  %v3750_v15 = vpop.f32.mrb[30].mxu0  ;;  %v3752_v43 = vpop.f32.mrb[30].mxu1  ;;  %v1828_v63 = vsel %vm1587_vm0, %v1539_v47, 0.0 }
 0x13d   : > { %v3754_v44 = vpop.f32.mrb[31].mxu0  ;;  %v3756_v45 = vpop.f32.mrb[31].mxu1 }
 0x140   : > { %1625 = vadd.xlane.f32.xlu0 %v1624_v19  ;;  %1628 = vadd.xlane.f32.xlu1 %v1627_v51  ;;  %v1347_v51 = vmax.f32 %v3694_v56, 0.0  ;;  %v1481_v56 = vmul.f32 %v3595_v10, %v1346_v50 }
 0x142   : > { %v3766_v61 = vpop.f32.mrb[32].mxu0  ;;  %v3768_v62 = vpop.f32.mrb[32].mxu1  ;;  %v1482_v37 = vmul.f32 %v3595_v10, %v1347_v51  ;;  %v1654_v34 = vsel %vm1587_vm0, %v1481_v56, 0.0  ;;  %v1543_v56 = vmul.f32 %v3595_v10, %v1408_v14  ;;  %v1415_v14 = vmax.f32 %v3724_v16, 0.0 }
 0x143   : > { %v3774_v1 = vpop.f32.mrb[33].mxu0  ;;  %v3776_v2 = vpop.f32.mrb[33].mxu1  ;;  %v1348_v16 = vmax.f32 %v3718_v12, 0.0  ;;  %v1413_v12 = vmax.f32 %v3728_v21, 0.0 }
 0x144   : > { %1817 = vadd.xlane.f32.xlu0 %v1816_v60  ;;  %1820 = vadd.xlane.f32.xlu1 %v1819_v28  ;;  %v3778_v29 = vpop.f32.mrb[34].mxu0  ;;  %v3780_v3 = vpop.f32.mrb[34].mxu1  ;;  %v1410_v60 = vmax.f32 %v3684_v49, 0.0 }
 0x145   : > { %v3782_v6 = vpop.f32.mrb[35].mxu0  ;;  %v3784_v7 = vpop.f32.mrb[35].mxu1 }
 0x146   : > { %v1545_v24 = vmul.f32 %v3595_v10, %v1410_v60 }
 0x148   : > { %1643 = vadd.xlane.f32.xlu0 %v1642_v17  ;;  %1646 = vadd.xlane.f32.xlu1 %v1645_v22  ;;  %v1846_v58 = vsel %vm1587_vm0, %v1545_v24, 0.0 }
 0x14a   : > { %v3794_v26 = vpop.f32.mrb[36].mxu0  ;;  %v3796_v27 = vpop.f32.mrb[36].mxu1 }
 0x14b   : > { %v3802_v18 = vpop.f32.mrb[37].mxu0  ;;  %v3804_v33 = vpop.f32.mrb[37].mxu1 }
 0x14c   : > { %1835 = vadd.xlane.f32.xlu0 %v1834_v38  ;;  %1838 = vadd.xlane.f32.xlu1 %v1837_v30  ;;  %v3806_v35 = vpop.f32.mrb[38].mxu0  ;;  %v3808_v40 = vpop.f32.mrb[38].mxu1  ;;  %v1657_v38 = vsel %vm1587_vm0, %v1482_v37, 0.0  ;;  %v1546_v30 = vmul.f32 %v3595_v10, %v1411_v0  ;;  %v1350_v37 = vmax.f32 %v3710_v4, 0.0 }
 0x14d   : > { %v3810_v19 = vpop.f32.mrb[39].mxu0  ;;  %v3812_v46 = vpop.f32.mrb[39].mxu1 }
 0x14e   : > { %v1849_v51 = vsel %vm1587_vm0, %v1546_v30, 0.0 }
 0x150   : > { %1637 = vadd.xlane.f32.xlu0 %v1636_v39  ;;  %1640 = vadd.xlane.f32.xlu1 %v1639_v52  ;;  %v1479_v39 = vmul.f32 %v3595_v10, %v1344_v57  ;;  %v1480_v52 = vmul.f32 %v3595_v10, %v1345_v25  ;;  %v1351_v57 = vmax.f32 %v3722_v8, 0.0  ;;  %v1544_v25 = vmul.f32 %v3595_v10, %v1409_v54 }
 0x151   : > { %v1485_v8 = vmul.f32 %v3595_v10, %v1350_v37 }
 0x152   : > { %v3822_v28 = vpop.f32.mrb[40].mxu0  ;;  %v3824_v36 = vpop.f32.mrb[40].mxu1  ;;  %v1648_v59 = vsel %vm1587_vm0, %v1479_v39, 0.0  ;;  %v1651_v24 = vsel %vm1587_vm0, %v1480_v52, 0.0  ;;  %v1843_v4 = vsel %vm1587_vm0, %v1544_v25, 0.0  ;;  %v1486_v39 = vmul.f32 %v3595_v10, %v1351_v57 }
 0x153   : > { %v3830_v9 = vpop.f32.mrb[41].mxu0  ;;  %v3832_v11 = vpop.f32.mrb[41].mxu1  ;;  %v1349_v57 = vmax.f32 %v3726_v20, 0.0 }
 0x154   : > { %1829 = vadd.xlane.f32.xlu0 %v1828_v63  ;;  %1832 = vadd.xlane.f32.xlu1 %v1831_v48  ;;  %v3834_v49 = vpop.f32.mrb[42].mxu0  ;;  %v3836_v17 = vpop.f32.mrb[42].mxu1  ;;  %v1669_v25 = vsel %vm1587_vm0, %v1486_v39, 0.0 }
 0x155   : > { %v3838_v22 = vpop.f32.mrb[43].mxu0  ;;  %v3840_v23 = vpop.f32.mrb[43].mxu1 }
 0x158   : > { %1655 = vadd.xlane.f32.xlu0 %v1654_v34  ;;  %1658 = vadd.xlane.f32.xlu1 %v1657_v38  ;;  %v1414_v34 = vmax.f32 %v3712_v5, 0.0  ;;  %v1840_v38 = vsel %vm1587_vm0, %v1543_v56, 0.0 }
 0x15a   : > { %v3850_v47 = vpop.f32.mrb[44].mxu0  ;;  %v3852_v50 = vpop.f32.mrb[44].mxu1  ;;  %v1549_v37 = vmul.f32 %v3595_v10, %v1414_v34 }
 0x15b   : > { %v3858_v53 = vpop.f32.mrb[45].mxu0  ;;  %v3860_v60 = vpop.f32.mrb[45].mxu1 }
 0x15c   : > { %1847 = vadd.xlane.f32.xlu0 %v1846_v58  ;;  %1850 = vadd.xlane.f32.xlu1 %v1849_v51  ;;  %v3862_v55 = vpop.f32.mrb[46].mxu0  ;;  %v3864_v63 = vpop.f32.mrb[46].mxu1  ;;  %v1858_v20 = vsel %vm1587_vm0, %v1549_v37, 0.0 }
 0x15d   : > { %v3866_v0 = vpop.f32.mrb[47].mxu0  ;;  %v3868_v48 = vpop.f32.mrb[47].mxu1 }
 0x160   : > { %1649 = vadd.xlane.f32.xlu0 %v1648_v59  ;;  %1652 = vadd.xlane.f32.xlu1 %v1651_v24  ;;  %v1666_v24 = vsel %vm1587_vm0, %v1485_v8, 0.0  ;;  %v1484_v8 = vmul.f32 %v3595_v10, %v1349_v57  ;;  %v1354_v57 = vmax.f32 %v3738_v31, 0.0 }
 0x162   : > { %v3878_v30 = vpop.f32.mrb[48].mxu0  ;;  %v3880_v58 = vpop.f32.mrb[48].mxu1 }
 0x163   : > { %v3886_v51 = vpop.f32.mrb[49].mxu0  ;;  %v3888_v54 = vpop.f32.mrb[49].mxu1 }
 0x164   : > { %4585 = vst [vmem:[#allocation3_spill] sm:$0xff] %v3888_v54  ;;  %1841 = vadd.xlane.f32.xlu0 %v1840_v38  ;;  %1844 = vadd.xlane.f32.xlu1 %v1843_v4  ;;  %v3890_v5 = vpop.f32.mrb[50].mxu0  ;;  %v3892_v52 = vpop.f32.mrb[50].mxu1  ;;  %v1550_v38 = vmul.f32 %v3595_v10, %v1415_v14  ;;  %v1412_v4 = vmax.f32 %v3720_v13, 0.0  ;;  %v1483_v54 = vmul.f32 %v3595_v10, %v1348_v16 }
 0x165   : > { %v3894_v59 = vpop.f32.mrb[51].mxu0  ;;  %v3896_v56 = vpop.f32.mrb[51].mxu1 }
 0x166   : > { %4586 = vst [vmem:[#allocation4_spill] sm:$0xff] %v3894_v59  ;;  %4587 = vst [vmem:[#allocation5_spill] sm:$0xff] %v3896_v56  ;;  %v1861_v34 = vsel %vm1587_vm0, %v1550_v38, 0.0  ;;  %v1660_v21 = vsel %vm1587_vm0, %v1483_v54, 0.0  ;;  %v1547_v37 = vmul.f32 %v3595_v10, %v1412_v4  ;;  %v1355_v38 = vmax.f32 %v3750_v15, 0.0 }
 0x167   : > { %v1419_v54 = vmax.f32 %v3752_v43, 0.0  ;;  %v1489_v15 = vmul.f32 %v3595_v10, %v1354_v57  ;;  %v1352_v43 = vmax.f32 %v3746_v41, 0.0  ;;  %v1417_v41 = vmax.f32 %v3756_v45, 0.0 }
 0x168   : > { %1667 = vadd.xlane.f32.xlu0 %v1666_v24  ;;  %1670 = vadd.xlane.f32.xlu1 %v1669_v25  ;;  %v1490_v4 = vmul.f32 %v3595_v10, %v1355_v38  ;;  %v1353_v38 = vmax.f32 %v3754_v44, 0.0 }
 0x16a   : > { %v3906_v59 = vpop.f32.mrb[52].mxu0  ;;  %v3908_v56 = vpop.f32.mrb[52].mxu1 }
 0x16b   : > { %v3914_v39 = vpop.f32.mrb[53].mxu0  ;;  %v3916_v14 = vpop.f32.mrb[53].mxu1 }
 0x16c   : > { %4588 = vst [vmem:[#allocation6_spill] sm:$0xff] %v3914_v39  ;;  %4589 = vst [vmem:[#allocation7_spill] sm:$0xff] %v3916_v14  ;;  %1859 = vadd.xlane.f32.xlu0 %v1858_v20  ;;  %1862 = vadd.xlane.f32.xlu1 %v1861_v34  ;;  %v3918_v13 = vpop.f32.mrb[54].mxu0  ;;  %v3920_v16 = vpop.f32.mrb[54].mxu1  ;;  %v1663_v14 = vsel %vm1587_vm0, %v1484_v8, 0.0  ;;  %v1548_v20 = vmul.f32 %v3595_v10, %v1413_v12  ;;  %v1418_v34 = vmax.f32 %v3740_v32, 0.0 }
 0x16d   : > { %v3922_v24 = vpop.f32.mrb[55].mxu0  ;;  %v3924_v25 = vpop.f32.mrb[55].mxu1 }
 0x16e   : > { %4590 = vst [vmem:[#allocation8_spill] sm:$0xff] %v3922_v24  ;;  %4591 = vst [vmem:[#allocation9_spill] sm:$0xff] %v3924_v25  ;;  %v1852_v24 = vsel %vm1587_vm0, %v1547_v37, 0.0  ;;  %v1855_v31 = vsel %vm1587_vm0, %v1548_v20, 0.0  ;;  %v1553_v57 = vmul.f32 %v3595_v10, %v1418_v34  ;;  %v1678_v20 = vsel %vm1587_vm0, %v1489_v15, 0.0 }
 0x16f   : > { %v1488_v15 = vmul.f32 %v3595_v10, %v1353_v38  ;;  %v1358_v38 = vmax.f32 %v3766_v61, 0.0 }
 0x170   : > { %1661 = vadd.xlane.f32.xlu0 %v1660_v21  ;;  %1664 = vadd.xlane.f32.xlu1 %v1663_v14  ;;  %v1870_v44 = vsel %vm1587_vm0, %v1553_v57, 0.0 }
 0x172   : > { %v3934_v39 = vpop.f32.mrb[56].mxu0  ;;  %v3936_v25 = vpop.f32.mrb[56].mxu1 }
 0x173   : > { %v3942_v8 = vpop.f32.mrb[57].mxu0  ;;  %v3944_v12 = vpop.f32.mrb[57].mxu1 }
 0x174   : > { %4592 = vst [vmem:[#allocation10_spill] sm:$0xff] %v3942_v8  ;;  %4593 = vst [vmem:[#allocation11_spill] sm:$0xff] %v3944_v12  ;;  %1853 = vadd.xlane.f32.xlu0 %v1852_v24  ;;  %1856 = vadd.xlane.f32.xlu1 %v1855_v31  ;;  %v3946_v32 = vpop.f32.mrb[58].mxu0  ;;  %v3948_v14 = vpop.f32.mrb[58].mxu1  ;;  %v1681_v12 = vsel %vm1587_vm0, %v1490_v4, 0.0  ;;  %v1554_v24 = vmul.f32 %v3595_v10, %v1419_v54  ;;  %v1416_v31 = vmax.f32 %v3748_v42, 0.0 }
 0x175   : > { %v3950_v21 = vpop.f32.mrb[59].mxu0  ;;  %v3952_v37 = vpop.f32.mrb[59].mxu1 }
 0x176   : > { %4594 = vst [vmem:[#allocation12_spill] sm:$0xff] %v3950_v21  ;;  %4595 = vst [vmem:[#allocation13_spill] sm:$0xff] %v3952_v37  ;;  %v1487_v21 = vmul.f32 %v3595_v10, %v1352_v43  ;;  %v1873_v34 = vsel %vm1587_vm0, %v1554_v24, 0.0  ;;  %v1551_v57 = vmul.f32 %v3595_v10, %v1416_v31  ;;  %v1359_v24 = vmax.f32 %v3778_v29, 0.0 }
 0x177   : > { %v1493_v31 = vmul.f32 %v3595_v10, %v1358_v38  ;;  %v1356_v29 = vmax.f32 %v3774_v1, 0.0 }
 0x178   : > { %1679 = vadd.xlane.f32.xlu0 %v1678_v20  ;;  %1682 = vadd.xlane.f32.xlu1 %v1681_v12  ;;  %v1672_v45 = vsel %vm1587_vm0, %v1487_v21, 0.0  ;;  %v1494_v61 = vmul.f32 %v3595_v10, %v1359_v24 }
 0x17a   : > { %v3962_v8 = vpop.f32.mrb[60].mxu0  ;;  %v3964_v37 = vpop.f32.mrb[60].mxu1 }
 0x17b   : > { %4596 = vst [vmem:[#allocation14_spill] sm:$0xff] %v3964_v37  ;;  %v3970_v4 = vpop.f32.mrb[61].mxu0  ;;  %v3972_v54 = vpop.f32.mrb[61].mxu1  ;;  %v1675_v37 = vsel %vm1587_vm0, %v1488_v15, 0.0  ;;  %v1693_v15 = vsel %vm1587_vm0, %v1494_v61, 0.0  ;;  %v4014_v61 = vstv %s1972_s15 }
 0x17c   : > { %1871 = vadd.xlane.f32.xlu0 %v1870_v44  ;;  %1874 = vadd.xlane.f32.xlu1 %v1873_v34  ;;  %v3974_v42 = vpop.f32.mrb[62].mxu0  ;;  %v3976_v12 = vpop.f32.mrb[62].mxu1  ;;  %v1552_v44 = vmul.f32 %v3595_v10, %v1417_v41  ;;  %v1422_v34 = vmax.f32 %v3768_v62, 0.0  ;;  %v1690_v62 = vsel %vm1587_vm0, %v1493_v31, 0.0 }
 0x17d   : > { %4597 = vst [vmem:[#allocation15_spill] sm:$0xff] %v3976_v12  ;;  %v3978_v43 = vpop.f32.mrb[63].mxu0  ;;  %v3980_v20 = vpop.f32.mrb[63].mxu1  ;;  %v1864_v12 = vsel %vm1587_vm0, %v1551_v57, 0.0  ;;  %v1491_v57 = vmul.f32 %v3595_v10, %v1356_v29  ;;  %v1427_v29 = vmax.f32 %v3808_v40, 0.0  ;;  %v1361_v40 = vmax.f32 %v3810_v19, 0.0 }
 0x17e   : > { %4598 = vst [vmem:[#allocation16_spill] sm:$0xff] %v3980_v20  ;;  %v1423_v20 = vmax.f32 %v3780_v3, 0.0  ;;  %v1867_v21 = vsel %vm1587_vm0, %v1552_v44, 0.0  ;;  %v1557_v41 = vmul.f32 %v3595_v10, %v1422_v34  ;;  %v1362_v44 = vmax.f32 %v3794_v26, 0.0 }
 0x17f   : > { %v1684_v24 = vsel %vm1587_vm0, %v1491_v57, 0.0 }
 0x180   : > { %1673 = vadd.xlane.f32.xlu0 %v1672_v45  ;;  %1676 = vadd.xlane.f32.xlu1 %v1675_v37  ;;  %v1357_v37 = vmax.f32 %v3782_v6, 0.0  ;;  %v1558_v3 = vmul.f32 %v3595_v10, %v1423_v20  ;;  %v1420_v45 = vmax.f32 %v3776_v2, 0.0  ;;  %v1882_v1 = vsel %vm1587_vm0, %v1557_v41, 0.0 }
 0x181   : > { %v1363_v2 = vmax.f32 %v3806_v35, 0.0  ;;  %v1497_v26 = vmul.f32 %v3595_v10, %v1362_v44 }
 0x182   : > { %v1885_v38 = vsel %vm1587_vm0, %v1558_v3, 0.0  ;;  %v1492_v6 = vmul.f32 %v3595_v10, %v1357_v37  ;;  %v1555_v20 = vmul.f32 %v3595_v10, %v1420_v45 }
 0x183   : > { %v1498_v35 = vmul.f32 %v3595_v10, %v1363_v2  ;;  %v1702_v57 = vsel %vm1587_vm0, %v1497_v26, 0.0  ;;  %v1366_v26 = vmax.f32 %v3822_v28, 0.0  ;;  %v1430_v28 = vmax.f32 %v3824_v36, 0.0 }
 0x184   : > { %1865 = vadd.xlane.f32.xlu0 %v1864_v12  ;;  %1868 = vadd.xlane.f32.xlu1 %v1867_v21  ;;  %v1421_v12 = vmax.f32 %v3784_v7, 0.0  ;;  %v1687_v34 = vsel %vm1587_vm0, %v1492_v6, 0.0  ;;  %v1426_v21 = vmax.f32 %v3796_v27, 0.0  ;;  %v1876_v31 = vsel %vm1587_vm0, %v1555_v20, 0.0 }
 0x186   : > { %v1556_v7 = vmul.f32 %v3595_v10, %v1421_v12  ;;  %v1561_v45 = vmul.f32 %v3595_v10, %v1426_v21  ;;  %v1705_v12 = vsel %vm1587_vm0, %v1498_v35, 0.0 }
 0x188   : > { %1691 = vadd.xlane.f32.xlu0 %v1690_v62  ;;  %1694 = vadd.xlane.f32.xlu1 %v1693_v15  ;;  %v1879_v41 = vsel %vm1587_vm0, %v1556_v7, 0.0  ;;  %v1360_v15 = vmax.f32 %v3802_v18, 0.0  ;;  %v1424_v18 = vmax.f32 %v3804_v33, 0.0  ;;  %v1894_v7 = vsel %vm1587_vm0, %v1561_v45, 0.0 }
 0x18a   : > { %v1559_v35 = vmul.f32 %v3595_v10, %v1424_v18 }
 0x18c   : > { %1883 = vadd.xlane.f32.xlu0 %v1882_v1  ;;  %1886 = vadd.xlane.f32.xlu1 %v1885_v38  ;;  %v1562_v1 = vmul.f32 %v3595_v10, %v1427_v29 }
 0x18e   : > { %v1897_v21 = vsel %vm1587_vm0, %v1562_v1, 0.0 }
 0x190   : > { %1685 = vadd.xlane.f32.xlu0 %v1684_v24  ;;  %1688 = vadd.xlane.f32.xlu1 %v1687_v34  ;;  %v1425_v24 = vmax.f32 %v3812_v46, 0.0  ;;  %v1495_v34 = vmul.f32 %v3595_v10, %v1360_v15 }
 0x192   : > { %v1696_v15 = vsel %vm1587_vm0, %v1495_v34, 0.0  ;;  %v1560_v45 = vmul.f32 %v3595_v10, %v1425_v24  ;;  %v1431_v24 = vmax.f32 %v3836_v17, 0.0 }
 0x194   : > { %1877 = vadd.xlane.f32.xlu0 %v1876_v31  ;;  %1880 = vadd.xlane.f32.xlu1 %v1879_v41  ;;  %v1496_v31 = vmul.f32 %v3595_v10, %v1361_v40 }
 0x195   : > { %v1788_v37 = vpop.xlane.xlu0 %1787  ;;  %v1596_v62 = vpop.xlane.xlu1 %1595 }
 0x196   : > { %v2040_v27 = vadd.f32 %v4014_v61, %v1788_v37  ;;  %v1976_v3 = vadd.f32 %v4014_v61, %v1596_v62 }
 0x198   : > { %v2168_v38 = vmul.f32 0.5, %v2040_v27  ;;  %v2104_v6 = vmul.f32 0.5, %v1976_v3  ;;  %1703 = vadd.xlane.f32.xlu0 %v1702_v57  ;;  %1706 = vadd.xlane.f32.xlu1 %v1705_v12  ;;  %v1367_v27 = vmax.f32 %v3834_v49, 0.0  ;;  %v1699_v3 = vsel %vm1587_vm0, %v1496_v31, 0.0 }
 0x199   : > { %v1590_v20 = vpop.xlane.xlu0 %1589  ;;  %v1599_v44 = vpop.xlane.xlu1 %1598  ;;  %v1888_v49 = vsel %vm1587_vm0, %v1559_v35, 0.0  ;;  %v1365_v31 = vmax.f32 %v3838_v22, 0.0 }
 0x19a   : > { %3195 = vtanh.f32 %v2168_v38  ;;  %v1974_v2 = vadd.f32 %v4014_v61, %v1590_v20  ;;  %v1977_v19 = vadd.f32 %v4014_v61, %v1599_v44  ;;  %v1501_v38 = vmul.f32 %v3595_v10, %v1366_v26 }
 0x19b   : > { %3197 = vtanh.f32 %v2104_v6  ;;  %v1891_v20 = vsel %vm1587_vm0, %v1560_v45, 0.0  ;;  %v1502_v44 = vmul.f32 %v3595_v10, %v1367_v27  ;;  %v1428_v27 = vmax.f32 %v3832_v11, 0.0 }
 0x19c   : > { %v2102_v29 = vmul.f32 0.5, %v1974_v2  ;;  %v2105_v33 = vmul.f32 0.5, %v1977_v19  ;;  %1895 = vadd.xlane.f32.xlu0 %v1894_v7  ;;  %1898 = vadd.xlane.f32.xlu1 %v1897_v21  ;;  %v1364_v2 = vmax.f32 %v3830_v9, 0.0  ;;  %v1714_v17 = vsel %vm1587_vm0, %v1501_v38, 0.0 }
 0x19d   : > { %v1782_v46 = vpop.xlane.xlu0 %1781  ;;  %v1791_v41 = vpop.xlane.xlu1 %1790  ;;  %v1717_v22 = vsel %vm1587_vm0, %v1502_v44, 0.0 }
 0x19e   : > { %3199 = vtanh.f32 %v2102_v29  ;;  %v2038_v37 = vadd.f32 %v4014_v61, %v1782_v46  ;;  %v2041_v62 = vadd.f32 %v4014_v61, %v1791_v41  ;;  %v1565_v46 = vmul.f32 %v3595_v10, %v1430_v28 }
 0x19f   : > { %3201 = vtanh.f32 %v2105_v33  ;;  %v1429_v28 = vmax.f32 %v3840_v23, 0.0 }
 0x1a0   : > { %v2166_v40 = vmul.f32 0.5, %v2038_v37  ;;  %v2169_v57 = vmul.f32 0.5, %v2041_v62  ;;  %1697 = vadd.xlane.f32.xlu0 %v1696_v15  ;;  %1700 = vadd.xlane.f32.xlu1 %v1699_v3  ;;  %v1566_v37 = vmul.f32 %v3595_v10, %v1431_v24  ;;  %v1906_v38 = vsel %vm1587_vm0, %v1565_v46, 0.0  ;;  %v4074_v10 = vld [vmem:[%s4582_s2] ss:$0 sm:$0xff] }
 0x1a1   : > { %v1785_v12 = vpop.xlane.xlu1 %1784  ;;  %v1593_v1 = vpop.xlane.xlu0 %1592  ;;  %v1499_v11 = vmul.f32 %v4074_v10, %v1364_v2 }
 0x1a2   : > { %3203 = vtanh.f32 %v2166_v40  ;;  %v2039_v6 = vadd.f32 %v4014_v61, %v1785_v12  ;;  %v1975_v18 = vadd.f32 %v4014_v61, %v1593_v1  ;;  %v1909_v24 = vsel %vm1587_vm0, %v1566_v37, 0.0 }
 0x1a3   : > { %3205 = vtanh.f32 %v2169_v57  ;;  %v1708_v46 = vsel %vm1587_vm0, %v1499_v11, 0.0 }
 0x1a4   : > { %v3196_v36 = vpop.eup %3195  ;;  %v2167_v19 = vmul.f32 0.5, %v2039_v6  ;;  %v2103_v34 = vmul.f32 0.5, %v1975_v18  ;;  %1889 = vadd.xlane.f32.xlu0 %v1888_v49  ;;  %1892 = vadd.xlane.f32.xlu1 %v1891_v20  ;;  %v1500_v20 = vmul.f32 %v4074_v10, %v1365_v31  ;;  %v1564_v31 = vmul.f32 %v4074_v10, %v1429_v28 }
 0x1a5   : > { %v3198_v7 = vpop.eup %3197  ;;  %v2424_v21 = vmul.f32 0.5, %v3196_v36  ;;  %v1608_v29 = vpop.xlane.xlu0 %1607 }
 0x1a6   : > { %v1611_v33 = vpop.xlane.xlu1 %1610  ;;  %v2360_v9 = vmul.f32 0.5, %v3198_v7  ;;  %3207 = vtanh.f32 %v2167_v19  ;;  %v1980_v41 = vadd.f32 %v4014_v61, %v1608_v29  ;;  %v1711_v37 = vsel %vm1587_vm0, %v1500_v20, 0.0 }
 0x1a7   : > { %v1981_v26 = vadd.f32 %v4014_v61, %v1611_v33  ;;  %v2552_v35 = vadd.f32 0.5, %v2424_v21  ;;  %3209 = vtanh.f32 %v2103_v34  ;;  %v1563_v34 = vmul.f32 %v4074_v10, %v1428_v27 }
 0x1a8   : > { %v3200_v62 = vpop.eup %3199  ;;  %v2488_v15 = vadd.f32 0.5, %v2360_v9  ;;  %v2108_v3 = vmul.f32 0.5, %v1980_v41  ;;  %1715 = vadd.xlane.f32.xlu0 %v1714_v17  ;;  %1718 = vadd.xlane.f32.xlu1 %v1717_v22  ;;  %v1370_v17 = vmax.f32 %v3850_v47, 0.0  ;;  %v1371_v22 = vmax.f32 %v3862_v55, 0.0 }
 0x1a9   : > { %v2109_v45 = vmul.f32 0.5, %v1981_v26  ;;  %v3202_v40 = vpop.eup %3201  ;;  %2681 = vst.msk [vmem:[%s4060_s20 + $0x210] sm:$0xff] %vm2614_vm1, %v2552_v35  ;;  %v2358_v57 = vmul.f32 0.5, %v3200_v62  ;;  %v1800_v12 = vpop.xlane.xlu0 %1799  ;;  %v1903_v55 = vsel %vm1587_vm0, %v1564_v31, 0.0  ;;  %v1368_v20 = vmax.f32 %v3858_v53, 0.0 }
 0x1aa   : > { %v1803_v1 = vpop.xlane.xlu1 %1802  ;;  %2617 = vst.msk [vmem:[%s4060_s20 + $0x10] sm:$0xff] %vm2614_vm1, %v2488_v15  ;;  %v2361_v6 = vmul.f32 0.5, %v3202_v40  ;;  %3211 = vtanh.f32 %v2108_v3  ;;  %v2044_v18 = vadd.f32 %v4014_v61, %v1800_v12  ;;  %v1900_v3 = vsel %vm1587_vm0, %v1563_v34, 0.0 }
 0x1ab   : > { %v2045_v23 = vadd.f32 %v4014_v61, %v1803_v1  ;;  %v2486_v49 = vadd.f32 0.5, %v2358_v57  ;;  %3213 = vtanh.f32 %v2109_v45  ;;  %v1434_v57 = vmax.f32 %v3852_v50, 0.0 }
 0x1ac   : > { %v3204_v44 = vpop.eup %3203  ;;  %v2489_v36 = vadd.f32 0.5, %v2361_v6  ;;  %v2172_v19 = vmul.f32 0.5, %v2044_v18  ;;  %1907 = vadd.xlane.f32.xlu0 %v1906_v38  ;;  %1910 = vadd.xlane.f32.xlu1 %v1909_v24  ;;  %v1505_v1 = vmul.f32 %v4074_v10, %v1370_v17  ;;  %v1506_v50 = vmul.f32 %v4074_v10, %v1371_v22 }
 0x1ad   : > { %v2173_v2 = vmul.f32 0.5, %v2045_v23  ;;  %v3206_v7 = vpop.eup %3205  ;;  %2615 = vst.msk [vmem:[%s4060_s20] sm:$0xff] %vm2614_vm1, %v2486_v49  ;;  %v2422_v21 = vmul.f32 0.5, %v3204_v44  ;;  %v1602_v29 = vpop.xlane.xlu0 %1601  ;;  %v1435_v23 = vmax.f32 %v3864_v63, 0.0  ;;  %v1369_v34 = vmax.f32 %v3866_v0, 0.0 }
 0x1ae   : > { %v1605_v33 = vpop.xlane.xlu1 %1604  ;;  %2618 = vst.msk [vmem:[%s4060_s20 + $0x18] sm:$0xff] %vm2614_vm1, %v2489_v36  ;;  %v2425_v9 = vmul.f32 0.5, %v3206_v7  ;;  %3215 = vtanh.f32 %v2172_v19  ;;  %v1978_v41 = vadd.f32 %v4014_v61, %v1602_v29  ;;  %v1726_v63 = vsel %vm1587_vm0, %v1505_v1, 0.0 }
 0x1af   : > { %v1979_v26 = vadd.f32 %v4014_v61, %v1605_v33  ;;  %v2550_v35 = vadd.f32 0.5, %v2422_v21  ;;  %3217 = vtanh.f32 %v2173_v2  ;;  %v1569_v29 = vmul.f32 %v4074_v10, %v1434_v57 }
 0x1b0   : > { %v3208_v47 = vpop.eup %3207  ;;  %v2553_v62 = vadd.f32 0.5, %v2425_v9  ;;  %v2106_v15 = vmul.f32 0.5, %v1978_v41  ;;  %1709 = vadd.xlane.f32.xlu0 %v1708_v46  ;;  %1712 = vadd.xlane.f32.xlu1 %v1711_v37  ;;  %v1729_v31 = vsel %vm1587_vm0, %v1506_v50, 0.0  ;;  %v1570_v0 = vmul.f32 %v4074_v10, %v1435_v23 }
 0x1b1   : > { %v2107_v27 = vmul.f32 0.5, %v1979_v26  ;;  %v3210_v45 = vpop.eup %3209  ;;  %2679 = vst.msk [vmem:[%s4060_s20 + $0x200] sm:$0xff] %vm2614_vm1, %v2550_v35  ;;  %v2423_v40 = vmul.f32 0.5, %v3208_v47  ;;  %v1794_v28 = vpop.xlane.xlu0 %1793  ;;  %v1432_v26 = vmax.f32 %v3860_v60, 0.0 }
 0x1b2   : > { %v1797_v12 = vpop.xlane.xlu1 %1796  ;;  %2682 = vst.msk [vmem:[%s4060_s20 + $0x218] sm:$0xff] %vm2614_vm1, %v2553_v62  ;;  %v2359_v38 = vmul.f32 0.5, %v3210_v45  ;;  %3219 = vtanh.f32 %v2106_v15  ;;  %v2042_v11 = vadd.f32 %v4014_v61, %v1794_v28  ;;  %v1433_v62 = vmax.f32 %v3868_v48, 0.0 }
 0x1b3   : > { %v2043_v6 = vadd.f32 %v4014_v61, %v1797_v12  ;;  %v2551_v18 = vadd.f32 0.5, %v2423_v40  ;;  %3221 = vtanh.f32 %v2107_v27  ;;  %v1504_v45 = vmul.f32 %v4074_v10, %v1369_v34 }
 0x1b4   : > { %v3212_v49 = vpop.eup %3211  ;;  %v2487_v24 = vadd.f32 0.5, %v2359_v38  ;;  %v2170_v44 = vmul.f32 0.5, %v2042_v11  ;;  %1901 = vadd.xlane.f32.xlu0 %v1900_v3  ;;  %1904 = vadd.xlane.f32.xlu1 %v1903_v55  ;;  %v1503_v3 = vmul.f32 %v4074_v10, %v1368_v20  ;;  %v1918_v12 = vsel %vm1587_vm0, %v1569_v29, 0.0 }
 0x1b5   : > { %v2171_v36 = vmul.f32 0.5, %v2043_v6  ;;  %v3214_v19 = vpop.eup %3213  ;;  %2680 = vst.msk [vmem:[%s4060_s20 + $0x208] sm:$0xff] %vm2614_vm1, %v2551_v18  ;;  %v2364_v2 = vmul.f32 0.5, %v3212_v49  ;;  %v1620_v7 = vpop.xlane.xlu0 %1619  ;;  %v1921_v48 = vsel %vm1587_vm0, %v1570_v0, 0.0  ;;  %v1567_v6 = vmul.f32 %v4074_v10, %v1432_v26 }
 0x1b6   : > { %v1623_v21 = vpop.xlane.xlu1 %1622  ;;  %2616 = vst.msk [vmem:[%s4060_s20 + $0x8] sm:$0xff] %vm2614_vm1, %v2487_v24  ;;  %v2365_v33 = vmul.f32 0.5, %v3214_v19  ;;  %3223 = vtanh.f32 %v2170_v44  ;;  %v1984_v53 = vadd.f32 %v4014_v61, %v1620_v7  ;;  %v1720_v24 = vsel %vm1587_vm0, %v1503_v3, 0.0 }
 0x1b7   : > { %v1985_v17 = vadd.f32 %v4014_v61, %v1623_v21  ;;  %v2492_v46 = vadd.f32 0.5, %v2364_v2  ;;  %3225 = vtanh.f32 %v2171_v36  ;;  %v1723_v20 = vsel %vm1587_vm0, %v1504_v45, 0.0 }
 0x1b8   : > { %v3216_v9 = vpop.eup %3215  ;;  %v2493_v41 = vadd.f32 0.5, %v2365_v33  ;;  %v2112_v35 = vmul.f32 0.5, %v1984_v53  ;;  %1727 = vadd.xlane.f32.xlu0 %v1726_v63  ;;  %1730 = vadd.xlane.f32.xlu1 %v1729_v31  ;;  %v1568_v44 = vmul.f32 %v4074_v10, %v1433_v62  ;;  %v1374_v7 = vmax.f32 %v3878_v30, 0.0 }
 0x1b9   : > { %v2113_v22 = vmul.f32 0.5, %v1985_v17  ;;  %v3218_v37 = vpop.eup %3217  ;;  %2621 = vst.msk [vmem:[%s4060_s20 + $0x30] sm:$0xff] %vm2614_vm1, %v2492_v46  ;;  %v2428_v47 = vmul.f32 0.5, %v3216_v9  ;;  %v1812_v15 = vpop.xlane.xlu0 %1811  ;;  %v1375_v21 = vmax.f32 %v3890_v5, 0.0  ;;  %v1912_v17 = vsel %vm1587_vm0, %v1567_v6, 0.0 }
 0x1ba   : > { %v1815_v27 = vpop.xlane.xlu1 %1814  ;;  %2622 = vst.msk [vmem:[%s4060_s20 + $0x38] sm:$0xff] %vm2614_vm1, %v2493_v41  ;;  %v2429_v40 = vmul.f32 0.5, %v3218_v37  ;;  %3227 = vtanh.f32 %v2112_v35  ;;  %v2048_v60 = vadd.f32 %v4014_v61, %v1812_v15  ;;  %v1438_v0 = vmax.f32 %v3880_v58, 0.0 }
 0x1bb   : > { %v2049_v57 = vadd.f32 %v4014_v61, %v1815_v27  ;;  %v2556_v28 = vadd.f32 0.5, %v2428_v47  ;;  %3229 = vtanh.f32 %v2113_v22  ;;  %v1439_v30 = vmax.f32 %v3892_v52, 0.0 }
 0x1bc   : > { %v3220_v55 = vpop.eup %3219  ;;  %v2557_v1 = vadd.f32 0.5, %v2429_v40  ;;  %v2176_v38 = vmul.f32 0.5, %v2048_v60  ;;  %1919 = vadd.xlane.f32.xlu0 %v1918_v12  ;;  %1922 = vadd.xlane.f32.xlu1 %v1921_v48  ;;  %v1915_v5 = vsel %vm1587_vm0, %v1568_v44, 0.0  ;;  %v1509_v47 = vmul.f32 %v4074_v10, %v1374_v7  ;;  %v4599_v60 = vld [vmem:[#allocation4_spill] sm:$0xff]  ;;  %v4601_v7 = vld [vmem:[#allocation5_spill] sm:$0xff] }
 0x1bd   : > { %v2177_v11 = vmul.f32 0.5, %v2049_v57  ;;  %v3222_v18 = vpop.eup %3221  ;;  %2685 = vst.msk [vmem:[%s4060_s20 + $0x230] sm:$0xff] %vm2614_vm1, %v2556_v28  ;;  %v2362_v23 = vmul.f32 0.5, %v3220_v55  ;;  %v1614_v50 = vpop.xlane.xlu0 %1613  ;;  %v1510_v58 = vmul.f32 %v4074_v10, %v1375_v21  ;;  %v1372_v15 = vmax.f32 %v3886_v51, 0.0 }
 0x1be   : > { %v1617_v49 = vpop.xlane.xlu1 %1616  ;;  %2686 = vst.msk [vmem:[%s4060_s20 + $0x238] sm:$0xff] %vm2614_vm1, %v2557_v1  ;;  %v2363_v36 = vmul.f32 0.5, %v3222_v18  ;;  %3231 = vtanh.f32 %v2176_v38  ;;  %v1982_v19 = vadd.f32 %v4014_v61, %v1614_v50  ;;  %v1373_v57 = vmax.f32 %v4599_v60, 0.0 }
 0x1bf   : > { %v1983_v2 = vadd.f32 %v4014_v61, %v1617_v49  ;;  %v2490_v34 = vadd.f32 0.5, %v2362_v23  ;;  %3233 = vtanh.f32 %v2177_v11  ;;  %v1573_v28 = vmul.f32 %v4074_v10, %v1438_v0  ;;  %v4600_v49 = vld [vmem:[#allocation3_spill] sm:$0xff] }
 0x1c0   : > { %v3224_v63 = vpop.eup %3223  ;;  %v2491_v29 = vadd.f32 0.5, %v2363_v36  ;;  %v2110_v33 = vmul.f32 0.5, %v1982_v19  ;;  %1721 = vadd.xlane.f32.xlu0 %v1720_v24  ;;  %1724 = vadd.xlane.f32.xlu1 %v1723_v20  ;;  %v1574_v12 = vmul.f32 %v4074_v10, %v1439_v30  ;;  %v1738_v6 = vsel %vm1587_vm0, %v1509_v47, 0.0 }
 0x1c1   : > { %v2111_v53 = vmul.f32 0.5, %v1983_v2  ;;  %v3226_v46 = vpop.eup %3225  ;;  %2619 = vst.msk [vmem:[%s4060_s20 + $0x20] sm:$0xff] %vm2614_vm1, %v2490_v34  ;;  %v2426_v31 = vmul.f32 0.5, %v3224_v63  ;;  %v1806_v9 = vpop.xlane.xlu0 %1805  ;;  %v1741_v18 = vsel %vm1587_vm0, %v1510_v58, 0.0  ;;  %v1436_v24 = vmax.f32 %v4600_v49, 0.0 }
 0x1c2   : > { %v1809_v41 = vpop.xlane.xlu1 %1808  ;;  %2620 = vst.msk [vmem:[%s4060_s20 + $0x28] sm:$0xff] %vm2614_vm1, %v2491_v29  ;;  %v2427_v26 = vmul.f32 0.5, %v3226_v46  ;;  %3235 = vtanh.f32 %v2110_v33  ;;  %v2046_v35 = vadd.f32 %v4014_v61, %v1806_v9  ;;  %v1507_v2 = vmul.f32 %v4074_v10, %v1372_v15 }
 0x1c3   : > { %v2047_v22 = vadd.f32 %v4014_v61, %v1809_v41  ;;  %v2554_v37 = vadd.f32 0.5, %v2426_v31  ;;  %3237 = vtanh.f32 %v2111_v53  ;;  %v1508_v34 = vmul.f32 %v4074_v10, %v1373_v57 }
 0x1c4   : > { %v3228_v62 = vpop.eup %3227  ;;  %v2555_v52 = vadd.f32 0.5, %v2427_v26  ;;  %v2174_v27 = vmul.f32 0.5, %v2046_v35  ;;  %1913 = vadd.xlane.f32.xlu0 %v1912_v17  ;;  %1916 = vadd.xlane.f32.xlu1 %v1915_v5  ;;  %v1437_v21 = vmax.f32 %v4601_v7, 0.0  ;;  %v1930_v31 = vsel %vm1587_vm0, %v1573_v28, 0.0 }
 0x1c5   : > { %v2175_v3 = vmul.f32 0.5, %v2047_v22  ;;  %v3230_v45 = vpop.eup %3229  ;;  %2683 = vst.msk [vmem:[%s4060_s20 + $0x220] sm:$0xff] %vm2614_vm1, %v2554_v37  ;;  %v2368_v40 = vmul.f32 0.5, %v3228_v62  ;;  %v1632_v48 = vpop.xlane.xlu0 %1631  ;;  %v1933_v0 = vsel %vm1587_vm0, %v1574_v12, 0.0  ;;  %v1571_v30 = vmul.f32 %v4074_v10, %v1436_v24 }
 0x1c6   : > { %v1635_v55 = vpop.xlane.xlu1 %1634  ;;  %2684 = vst.msk [vmem:[%s4060_s20 + $0x228] sm:$0xff] %vm2614_vm1, %v2555_v52  ;;  %v2369_v1 = vmul.f32 0.5, %v3230_v45  ;;  %3239 = vtanh.f32 %v2174_v27  ;;  %v1988_v51 = vadd.f32 %v4014_v61, %v1632_v48  ;;  %v1572_v37 = vmul.f32 %v4074_v10, %v1437_v21  ;;  %v4603_v21 = vld [vmem:[#allocation8_spill] sm:$0xff] }
 0x1c7   : > { %v1989_v38 = vadd.f32 %v4014_v61, %v1635_v55  ;;  %v2496_v11 = vadd.f32 0.5, %v2368_v40  ;;  %3241 = vtanh.f32 %v2175_v3  ;;  %v1732_v62 = vsel %vm1587_vm0, %v1507_v2, 0.0 }
 0x1c8   : > { %v3232_v23 = vpop.eup %3231  ;;  %v2497_v50 = vadd.f32 0.5, %v2369_v1  ;;  %v2116_v20 = vmul.f32 0.5, %v1988_v51  ;;  %1739 = vadd.xlane.f32.xlu0 %v1738_v6  ;;  %1742 = vadd.xlane.f32.xlu1 %v1741_v18  ;;  %v1735_v52 = vsel %vm1587_vm0, %v1508_v34, 0.0  ;;  %v1378_v40 = vmax.f32 %v3906_v59, 0.0 }
 0x1c9   : > { %v2117_v44 = vmul.f32 0.5, %v1989_v38  ;;  %v3234_v36 = vpop.eup %3233  ;;  %2625 = vst.msk [vmem:[%s4060_s20 + $0x50] sm:$0xff] %vm2614_vm1, %v2496_v11  ;;  %v2432_v19 = vmul.f32 0.5, %v3232_v23  ;;  %v1824_v63 = vpop.xlane.xlu0 %1823  ;;  %v1379_v60 = vmax.f32 %v3918_v13, 0.0  ;;  %v1924_v55 = vsel %vm1587_vm0, %v1571_v30, 0.0 }
 0x1ca   : > { %v1827_v29 = vpop.xlane.xlu1 %1826  ;;  %2626 = vst.msk [vmem:[%s4060_s20 + $0x58] sm:$0xff] %vm2614_vm1, %v2497_v50  ;;  %v2433_v33 = vmul.f32 0.5, %v3234_v36  ;;  %3243 = vtanh.f32 %v2116_v20  ;;  %v2052_v53 = vadd.f32 %v4014_v61, %v1824_v63  ;;  %v1442_v38 = vmax.f32 %v3908_v56, 0.0 }
 0x1cb   : > { %v2053_v17 = vadd.f32 %v4014_v61, %v1827_v29  ;;  %v2560_v46 = vadd.f32 0.5, %v2432_v19  ;;  %3245 = vtanh.f32 %v2117_v44  ;;  %v1443_v59 = vmax.f32 %v3920_v16, 0.0  ;;  %v4602_v44 = vld [vmem:[#allocation6_spill] sm:$0xff] }
 0x1cc   : > { %v3236_v9 = vpop.eup %3235  ;;  %v2561_v41 = vadd.f32 0.5, %v2433_v33  ;;  %v2180_v5 = vmul.f32 0.5, %v2052_v53  ;;  %1931 = vadd.xlane.f32.xlu0 %v1930_v31  ;;  %1934 = vadd.xlane.f32.xlu1 %v1933_v0  ;;  %v1927_v13 = vsel %vm1587_vm0, %v1572_v37, 0.0  ;;  %v1513_v24 = vmul.f32 %v4074_v10, %v1378_v40 }
 0x1cd   : > { %v2181_v26 = vmul.f32 0.5, %v2053_v17  ;;  %v3238_v35 = vpop.eup %3237  ;;  %2689 = vst.msk [vmem:[%s4060_s20 + $0x250] sm:$0xff] %vm2614_vm1, %v2560_v46  ;;  %v2366_v22 = vmul.f32 0.5, %v3236_v9  ;;  %v1626_v47 = vpop.xlane.xlu0 %1625  ;;  %v1514_v56 = vmul.f32 %v4074_v10, %v1379_v60  ;;  %v1376_v36 = vmax.f32 %v4602_v44, 0.0 }
 0x1ce   : > { %v1629_v58 = vpop.xlane.xlu1 %1628  ;;  %2690 = vst.msk [vmem:[%s4060_s20 + $0x258] sm:$0xff] %vm2614_vm1, %v2561_v41  ;;  %v2367_v15 = vmul.f32 0.5, %v3238_v35  ;;  %3247 = vtanh.f32 %v2180_v5  ;;  %v1986_v27 = vadd.f32 %v4014_v61, %v1626_v47  ;;  %v1377_v63 = vmax.f32 %v4603_v21, 0.0  ;;  %v4604_v35 = vld [vmem:[#allocation7_spill] sm:$0xff] }
 0x1cf   : > { %v1987_v3 = vadd.f32 %v4014_v61, %v1629_v58  ;;  %v2494_v45 = vadd.f32 0.5, %v2366_v22  ;;  %3249 = vtanh.f32 %v2181_v26  ;;  %v1577_v29 = vmul.f32 %v4074_v10, %v1442_v38 }
 0x1d0   : > { %v3240_v57 = vpop.eup %3239  ;;  %v2495_v28 = vadd.f32 0.5, %v2367_v15  ;;  %v2114_v12 = vmul.f32 0.5, %v1986_v27  ;;  %1733 = vadd.xlane.f32.xlu0 %v1732_v62  ;;  %1736 = vadd.xlane.f32.xlu1 %v1735_v52  ;;  %v1578_v33 = vmul.f32 %v4074_v10, %v1443_v59  ;;  %v1750_v41 = vsel %vm1587_vm0, %v1513_v24, 0.0  ;;  %v4605_v27 = vld [vmem:[#allocation9_spill] sm:$0xff] }
 0x1d1   : > { %v2115_v48 = vmul.f32 0.5, %v1987_v3  ;;  %v3242_v1 = vpop.eup %3241  ;;  %2623 = vst.msk [vmem:[%s4060_s20 + $0x40] sm:$0xff] %vm2614_vm1, %v2494_v45  ;;  %v2430_v51 = vmul.f32 0.5, %v3240_v57  ;;  %v1818_v11 = vpop.xlane.xlu0 %1817  ;;  %v1753_v30 = vsel %vm1587_vm0, %v1514_v56, 0.0  ;;  %v1440_v22 = vmax.f32 %v4604_v35, 0.0 }
 0x1d2   : > { %v1821_v6 = vpop.xlane.xlu1 %1820  ;;  %2624 = vst.msk [vmem:[%s4060_s20 + $0x48] sm:$0xff] %vm2614_vm1, %v2495_v28  ;;  %v2431_v18 = vmul.f32 0.5, %v3242_v1  ;;  %3251 = vtanh.f32 %v2114_v12  ;;  %v2050_v23 = vadd.f32 %v4014_v61, %v1818_v11  ;;  %v1511_v52 = vmul.f32 %v4074_v10, %v1376_v36 }
 0x1d3   : > { %v2051_v50 = vadd.f32 %v4014_v61, %v1821_v6  ;;  %v2558_v49 = vadd.f32 0.5, %v2430_v51  ;;  %3253 = vtanh.f32 %v2115_v48  ;;  %v1512_v15 = vmul.f32 %v4074_v10, %v1377_v63 }
 0x1d4   : > { %v3244_v20 = vpop.eup %3243  ;;  %v2559_v16 = vadd.f32 0.5, %v2431_v18  ;;  %v2178_v19 = vmul.f32 0.5, %v2050_v23  ;;  %1925 = vadd.xlane.f32.xlu0 %v1924_v55  ;;  %1928 = vadd.xlane.f32.xlu1 %v1927_v13  ;;  %v1441_v3 = vmax.f32 %v4605_v27, 0.0  ;;  %v1942_v48 = vsel %vm1587_vm0, %v1577_v29, 0.0 }
 0x1d5   : > { %v2179_v2 = vmul.f32 0.5, %v2051_v50  ;;  %v3246_v34 = vpop.eup %3245  ;;  %2687 = vst.msk [vmem:[%s4060_s20 + $0x240] sm:$0xff] %vm2614_vm1, %v2558_v49  ;;  %v2372_v7 = vmul.f32 0.5, %v3244_v20  ;;  %v1644_v53 = vpop.xlane.xlu0 %1643  ;;  %v1945_v55 = vsel %vm1587_vm0, %v1578_v33, 0.0  ;;  %v1575_v38 = vmul.f32 %v4074_v10, %v1440_v22 }
 0x1d6   : > { %v1647_v17 = vpop.xlane.xlu1 %1646  ;;  %2688 = vst.msk [vmem:[%s4060_s20 + $0x248] sm:$0xff] %vm2614_vm1, %v2559_v16  ;;  %v2373_v46 = vmul.f32 0.5, %v3246_v34  ;;  %3255 = vtanh.f32 %v2178_v19  ;;  %v1992_v31 = vadd.f32 %v4014_v61, %v1644_v53  ;;  %v1576_v18 = vmul.f32 %v4074_v10, %v1441_v3 }
 0x1d7   : > { %v1993_v0 = vadd.f32 %v4014_v61, %v1647_v17  ;;  %v2500_v9 = vadd.f32 0.5, %v2372_v7  ;;  %3257 = vtanh.f32 %v2179_v2  ;;  %v1744_v49 = vsel %vm1587_vm0, %v1511_v52, 0.0 }
 0x1d8   : > { %v3248_v5 = vpop.eup %3247  ;;  %v2501_v26 = vadd.f32 0.5, %v2373_v46  ;;  %v2120_v37 = vmul.f32 0.5, %v1992_v31  ;;  %1751 = vadd.xlane.f32.xlu0 %v1750_v41  ;;  %1754 = vadd.xlane.f32.xlu1 %v1753_v30  ;;  %v1747_v24 = vsel %vm1587_vm0, %v1512_v15, 0.0  ;;  %v1382_v36 = vmax.f32 %v3934_v39, 0.0 }
 0x1d9   : > { %v2121_v47 = vmul.f32 0.5, %v1993_v0  ;;  %v3250_v58 = vpop.eup %3249  ;;  %2629 = vst.msk [vmem:[%s4060_s20 + $0x70] sm:$0xff] %vm2614_vm1, %v2500_v9  ;;  %v2436_v62 = vmul.f32 0.5, %v3248_v5  ;;  %v1836_v45 = vpop.xlane.xlu0 %1835  ;;  %v1383_v19 = vmax.f32 %v3946_v32, 0.0  ;;  %v1936_v63 = vsel %vm1587_vm0, %v1575_v38, 0.0 }
 0x1da   : > { %v1839_v40 = vpop.xlane.xlu1 %1838  ;;  %2630 = vst.msk [vmem:[%s4060_s20 + $0x78] sm:$0xff] %vm2614_vm1, %v2501_v26  ;;  %v2437_v60 = vmul.f32 0.5, %v3250_v58  ;;  %3259 = vtanh.f32 %v2120_v37  ;;  %v2056_v57 = vadd.f32 %v4014_v61, %v1836_v45  ;;  %v1446_v53 = vmax.f32 %v3936_v25, 0.0  ;;  %v4606_v26 = vld [vmem:[#allocation10_spill] sm:$0xff] }
 0x1db   : > { %v2057_v28 = vadd.f32 %v4014_v61, %v1839_v40  ;;  %v2564_v12 = vadd.f32 0.5, %v2436_v62  ;;  %3261 = vtanh.f32 %v2121_v47  ;;  %v1447_v39 = vmax.f32 %v3948_v14, 0.0  ;;  %v4607_v62 = vld [vmem:[#allocation12_spill] sm:$0xff] }
 0x1dc   : > { %v3252_v1 = vpop.eup %3251  ;;  %v2565_v51 = vadd.f32 0.5, %v2437_v60  ;;  %v2184_v11 = vmul.f32 0.5, %v2056_v57  ;;  %1943 = vadd.xlane.f32.xlu0 %v1942_v48  ;;  %1946 = vadd.xlane.f32.xlu1 %v1945_v55  ;;  %v1939_v32 = vsel %vm1587_vm0, %v1576_v18, 0.0  ;;  %v1517_v30 = vmul.f32 %v4074_v10, %v1382_v36 }
 0x1dd   : > { %v2185_v6 = vmul.f32 0.5, %v2057_v28  ;;  %v3254_v59 = vpop.eup %3253  ;;  %2693 = vst.msk [vmem:[%s4060_s20 + $0x270] sm:$0xff] %vm2614_vm1, %v2564_v12  ;;  %v2370_v13 = vmul.f32 0.5, %v3252_v1  ;;  %v1638_v23 = vpop.xlane.xlu0 %1637  ;;  %v1518_v25 = vmul.f32 %v4074_v10, %v1383_v19  ;;  %v1380_v35 = vmax.f32 %v4606_v26, 0.0 }
 0x1de   : > { %v1641_v50 = vpop.xlane.xlu1 %1640  ;;  %2694 = vst.msk [vmem:[%s4060_s20 + $0x278] sm:$0xff] %vm2614_vm1, %v2565_v51  ;;  %v2371_v56 = vmul.f32 0.5, %v3254_v59  ;;  %3263 = vtanh.f32 %v2184_v11  ;;  %v1990_v20 = vadd.f32 %v4014_v61, %v1638_v23  ;;  %v1381_v52 = vmax.f32 %v4607_v62, 0.0  ;;  %v4608_v51 = vld [vmem:[#allocation11_spill] sm:$0xff]  ;;  %v4609_v23 = vld [vmem:[#allocation13_spill] sm:$0xff] }
 0x1df   : > { %v1991_v16 = vadd.f32 %v4014_v61, %v1641_v50  ;;  %v2498_v44 = vadd.f32 0.5, %v2370_v13  ;;  %3265 = vtanh.f32 %v2185_v6  ;;  %v1581_v15 = vmul.f32 %v4074_v10, %v1446_v53 }
 0x1e0   : > { %v3256_v2 = vpop.eup %3255  ;;  %v2499_v34 = vadd.f32 0.5, %v2371_v56  ;;  %v2118_v7 = vmul.f32 0.5, %v1990_v20  ;;  %1745 = vadd.xlane.f32.xlu0 %v1744_v49  ;;  %1748 = vadd.xlane.f32.xlu1 %v1747_v24  ;;  %v1582_v27 = vmul.f32 %v4074_v10, %v1447_v39  ;;  %v1762_v12 = vsel %vm1587_vm0, %v1517_v30, 0.0 }
 0x1e1   : > { %v2119_v21 = vmul.f32 0.5, %v1991_v16  ;;  %v3258_v29 = vpop.eup %3257  ;;  %2627 = vst.msk [vmem:[%s4060_s20 + $0x60] sm:$0xff] %vm2614_vm1, %v2498_v44  ;;  %v2434_v33 = vmul.f32 0.5, %v3256_v2  ;;  %v1830_v17 = vpop.xlane.xlu0 %1829  ;;  %v1765_v48 = vsel %vm1587_vm0, %v1518_v25, 0.0  ;;  %v1444_v38 = vmax.f32 %v4608_v51, 0.0 }
 0x1e2   : > { %v1833_v46 = vpop.xlane.xlu1 %1832  ;;  %2628 = vst.msk [vmem:[%s4060_s20 + $0x68] sm:$0xff] %vm2614_vm1, %v2499_v34  ;;  %v2435_v31 = vmul.f32 0.5, %v3258_v29  ;;  %3267 = vtanh.f32 %v2118_v7  ;;  %v2054_v0 = vadd.f32 %v4014_v61, %v1830_v17  ;;  %v1515_v18 = vmul.f32 %v4074_v10, %v1380_v35 }
 0x1e3   : > { %v2055_v9 = vadd.f32 %v4014_v61, %v1833_v46  ;;  %v2562_v41 = vadd.f32 0.5, %v2434_v33  ;;  %3269 = vtanh.f32 %v2119_v21  ;;  %v1445_v50 = vmax.f32 %v4609_v23, 0.0 }
 0x1e4   : > { %v3260_v5 = vpop.eup %3259  ;;  %v2563_v14 = vadd.f32 0.5, %v2435_v31  ;;  %v2182_v22 = vmul.f32 0.5, %v2054_v0  ;;  %1937 = vadd.xlane.f32.xlu0 %v1936_v63  ;;  %1940 = vadd.xlane.f32.xlu1 %v1939_v32  ;;  %v1954_v56 = vsel %vm1587_vm0, %v1581_v15, 0.0  ;;  %v1516_v19 = vmul.f32 %v4074_v10, %v1381_v52 }
 0x1e5   : > { %v2183_v37 = vmul.f32 0.5, %v2055_v9  ;;  %v3262_v47 = vpop.eup %3261  ;;  %2691 = vst.msk [vmem:[%s4060_s20 + $0x260] sm:$0xff] %vm2614_vm1, %v2562_v41  ;;  %v2376_v58 = vmul.f32 0.5, %v3260_v5  ;;  %v1656_v3 = vpop.xlane.xlu0 %1655  ;;  %v1957_v2 = vsel %vm1587_vm0, %v1582_v27, 0.0  ;;  %v1579_v21 = vmul.f32 %v4074_v10, %v1444_v38 }
 0x1e6   : > { %v1659_v45 = vpop.xlane.xlu1 %1658  ;;  %2692 = vst.msk [vmem:[%s4060_s20 + $0x268] sm:$0xff] %vm2614_vm1, %v2563_v14  ;;  %v2377_v40 = vmul.f32 0.5, %v3262_v47  ;;  %3271 = vtanh.f32 %v2182_v22  ;;  %v1996_v60 = vadd.f32 %v4014_v61, %v1656_v3  ;;  %v1580_v17 = vmul.f32 %v4074_v10, %v1445_v50 }
 0x1e7   : > { %v1997_v57 = vadd.f32 %v4014_v61, %v1659_v45  ;;  %v2504_v28 = vadd.f32 0.5, %v2376_v58  ;;  %3273 = vtanh.f32 %v2183_v37  ;;  %v1386_v32 = vmax.f32 %v3962_v8, 0.0 }
 0x1e8   : > { %v3264_v55 = vpop.eup %3263  ;;  %v2505_v1 = vadd.f32 0.5, %v2377_v40  ;;  %v2124_v11 = vmul.f32 0.5, %v1996_v60  ;;  %1763 = vadd.xlane.f32.xlu0 %v1762_v12  ;;  %1766 = vadd.xlane.f32.xlu1 %v1765_v48  ;;  %v1756_v31 = vsel %vm1587_vm0, %v1515_v18, 0.0  ;;  %v1387_v25 = vmax.f32 %v3974_v42, 0.0 }
 0x1e9   : > { %v2125_v6 = vmul.f32 0.5, %v1997_v57  ;;  %v3266_v59 = vpop.eup %3265  ;;  %2633 = vst.msk [vmem:[%s4060_s20 + $0x90] sm:$0xff] %vm2614_vm1, %v2504_v28  ;;  %v2440_v13 = vmul.f32 0.5, %v3264_v55  ;;  %v1848_v49 = vpop.xlane.xlu0 %1847  ;;  %v1759_v5 = vsel %vm1587_vm0, %v1516_v19, 0.0  ;;  %v1948_v22 = vsel %vm1587_vm0, %v1579_v21, 0.0  ;;  %v4612_v21 = vld [vmem:[#allocation15_spill] sm:$0xff] }
 0x1ea   : > { %v1851_v24 = vpop.xlane.xlu1 %1850  ;;  %2634 = vst.msk [vmem:[%s4060_s20 + $0x98] sm:$0xff] %vm2614_vm1, %v2505_v1  ;;  %v2441_v20 = vmul.f32 0.5, %v3266_v59  ;;  %3275 = vtanh.f32 %v2124_v11  ;;  %v2060_v16 = vadd.f32 %v4014_v61, %v1848_v49  ;;  %v1521_v58 = vmul.f32 %v4074_v10, %v1386_v32  ;;  %v4610_v59 = vld [vmem:[#allocation16_spill] sm:$0xff] }
 0x1eb   : > { %v2061_v44 = vadd.f32 %v4014_v61, %v1851_v24  ;;  %v2568_v36 = vadd.f32 0.5, %v2440_v13  ;;  %3277 = vtanh.f32 %v2125_v6  ;;  %v1384_v62 = vmax.f32 %v3970_v4, 0.0 }
 0x1ec   : > { %v3268_v34 = vpop.eup %3267  ;;  %v2569_v7 = vadd.f32 0.5, %v2441_v20  ;;  %v2188_v63 = vmul.f32 0.5, %v2060_v16  ;;  %1955 = vadd.xlane.f32.xlu0 %v1954_v56  ;;  %1958 = vadd.xlane.f32.xlu1 %v1957_v2  ;;  %v1951_v15 = vsel %vm1587_vm0, %v1580_v17, 0.0  ;;  %v1522_v60 = vmul.f32 %v4074_v10, %v1387_v25  ;;  %v4611_v16 = vld [vmem:[#allocation14_spill] sm:$0xff] }
 0x1ed   : > { %v2189_v29 = vmul.f32 0.5, %v2061_v44  ;;  %v3270_v33 = vpop.eup %3269  ;;  %2697 = vst.msk [vmem:[%s4060_s20 + $0x290] sm:$0xff] %vm2614_vm1, %v2568_v36  ;;  %v2374_v53 = vmul.f32 0.5, %v3268_v34  ;;  %v1650_v46 = vpop.xlane.xlu0 %1649  ;;  %v1385_v57 = vmax.f32 %v3978_v43, 0.0  ;;  %v1448_v55 = vmax.f32 %v3972_v54, 0.0 }
 0x1ee   : > { %v1653_v39 = vpop.xlane.xlu1 %1652  ;;  %2698 = vst.msk [vmem:[%s4060_s20 + $0x298] sm:$0xff] %vm2614_vm1, %v2569_v7  ;;  %v2375_v0 = vmul.f32 0.5, %v3270_v33  ;;  %3279 = vtanh.f32 %v2188_v63  ;;  %v1994_v9 = vadd.f32 %v4014_v61, %v1650_v46  ;;  %v1519_v38 = vmul.f32 %v4074_v10, %v1384_v62 }
 0x1ef   : > { %v1995_v41 = vadd.f32 %v4014_v61, %v1653_v39  ;;  %v2502_v30 = vadd.f32 0.5, %v2374_v53  ;;  %3281 = vtanh.f32 %v2189_v29  ;;  %v1449_v13 = vmax.f32 %v4610_v59, 0.0 }
 0x1f0   : > { %v3272_v14 = vpop.eup %3271  ;;  %v2503_v8 = vadd.f32 0.5, %v2375_v0  ;;  %v2122_v26 = vmul.f32 0.5, %v1994_v9  ;;  %1757 = vadd.xlane.f32.xlu0 %v1756_v31  ;;  %1760 = vadd.xlane.f32.xlu1 %v1759_v5  ;;  %v1774_v43 = vsel %vm1587_vm0, %v1521_v58, 0.0  ;;  %v1520_v49 = vmul.f32 %v4074_v10, %v1385_v57 }
 0x1f1   : > { %v2123_v35 = vmul.f32 0.5, %v1995_v41  ;;  %v3274_v37 = vpop.eup %3273  ;;  %2631 = vst.msk [vmem:[%s4060_s20 + $0x80] sm:$0xff] %vm2614_vm1, %v2502_v30  ;;  %v2438_v47 = vmul.f32 0.5, %v3272_v14  ;;  %v1842_v42 = vpop.xlane.xlu0 %1841  ;;  %v1777_v24 = vsel %vm1587_vm0, %v1522_v60, 0.0  ;;  %v1450_v44 = vmax.f32 %v4611_v16, 0.0 }
 0x1f2   : > { %v1845_v52 = vpop.xlane.xlu1 %1844  ;;  %2632 = vst.msk [vmem:[%s4060_s20 + $0x88] sm:$0xff] %vm2614_vm1, %v2503_v8  ;;  %v2439_v27 = vmul.f32 0.5, %v3274_v37  ;;  %3283 = vtanh.f32 %v2122_v26  ;;  %v2058_v3 = vadd.f32 %v4014_v61, %v1842_v42  ;;  %v1583_v7 = vmul.f32 %v4074_v10, %v1448_v55 }
 0x1f3   : > { %v2059_v45 = vadd.f32 %v4014_v61, %v1845_v52  ;;  %v2566_v40 = vadd.f32 0.5, %v2438_v47  ;;  %3285 = vtanh.f32 %v2123_v35  ;;  %v1451_v63 = vmax.f32 %v4612_v21, 0.0 }
 0x1f4   : > { %v3276_v4 = vpop.eup %3275  ;;  %v2567_v28 = vadd.f32 0.5, %v2439_v27  ;;  %v2186_v12 = vmul.f32 0.5, %v2058_v3  ;;  %1949 = vadd.xlane.f32.xlu0 %v1948_v22  ;;  %1952 = vadd.xlane.f32.xlu1 %v1951_v15  ;;  %v1584_v29 = vmul.f32 %v4074_v10, %v1449_v13  ;;  %v1768_v31 = vsel %vm1587_vm0, %v1519_v38, 0.0 }
 0x1f5   : > { %v2187_v48 = vmul.f32 0.5, %v2059_v45  ;;  %v3278_v1 = vpop.eup %3277  ;;  %2695 = vst.msk [vmem:[%s4060_s20 + $0x280] sm:$0xff] %vm2614_vm1, %v2566_v40  ;;  %v2380_v51 = vmul.f32 0.5, %v3276_v4  ;;  %v1668_v11 = vpop.xlane.xlu0 %1667  ;;  %v1771_v0 = vsel %vm1587_vm0, %v1520_v49, 0.0  ;;  %v1585_v8 = vmul.f32 %v4074_v10, %v1450_v44 }
 0x1f6   : > { %v1671_v6 = vpop.xlane.xlu1 %1670  ;;  %2696 = vst.msk [vmem:[%s4060_s20 + $0x288] sm:$0xff] %vm2614_vm1, %v2567_v28  ;;  %v2381_v18 = vmul.f32 0.5, %v3278_v1  ;;  %3287 = vtanh.f32 %v2186_v12  ;;  %v2000_v23 = vadd.f32 %v4014_v61, %v1668_v11  ;;  %v1586_v26 = vmul.f32 %v4074_v10, %v1451_v63 }
 0x1f7   : > { %v2001_v54 = vadd.f32 %v4014_v61, %v1671_v6  ;;  %v2508_v50 = vadd.f32 0.5, %v2380_v51  ;;  %3289 = vtanh.f32 %v2187_v48  ;;  %v1960_v42 = vsel %vm1587_vm0, %v1583_v7, 0.0 }
 0x1f8   : > { %v3280_v56 = vpop.eup %3279  ;;  %v2509_v20 = vadd.f32 0.5, %v2381_v18  ;;  %v2128_v36 = vmul.f32 0.5, %v2000_v23  ;;  %1775 = vadd.xlane.f32.xlu0 %v1774_v43  ;;  %1778 = vadd.xlane.f32.xlu1 %v1777_v24  ;;  %v1963_v52 = vsel %vm1587_vm0, %v1584_v29, 0.0  ;;  %v1966_v55 = vsel %vm1587_vm0, %v1585_v8, 0.0 }
 0x1f9   : > { %v2129_v19 = vmul.f32 0.5, %v2001_v54  ;;  %v3282_v2 = vpop.eup %3281  ;;  %2637 = vst.msk [vmem:[%s4060_s20 + $0xb0] sm:$0xff] %vm2614_vm1, %v2508_v50  ;;  %v2444_v34 = vmul.f32 0.5, %v3280_v56  ;;  %v1860_v33 = vpop.xlane.xlu0 %1859  ;;  %v1969_v1 = vsel %vm1587_vm0, %v1586_v26, 0.0 }
 0x1fa   : > { %v1863_v53 = vpop.xlane.xlu1 %1862  ;;  %2638 = vst.msk [vmem:[%s4060_s20 + $0xb8] sm:$0xff] %vm2614_vm1, %v2509_v20  ;;  %v2445_v17 = vmul.f32 0.5, %v3282_v2  ;;  %3291 = vtanh.f32 %v2128_v36  ;;  %v2064_v46 = vadd.f32 %v4014_v61, %v1860_v33 }
 0x1fb   : > { %v2065_v39 = vadd.f32 %v4014_v61, %v1863_v53  ;;  %v2572_v32 = vadd.f32 0.5, %v2444_v34  ;;  %3293 = vtanh.f32 %v2129_v19 }
 0x1fc   : > { %v3284_v9 = vpop.eup %3283  ;;  %v2573_v41 = vadd.f32 0.5, %v2445_v17  ;;  %v2192_v30 = vmul.f32 0.5, %v2064_v46  ;;  %1769 = vadd.xlane.f32.xlu0 %v1768_v31  ;;  %1772 = vadd.xlane.f32.xlu1 %v1771_v0 }
 0x1fd   : > { %v2193_v25 = vmul.f32 0.5, %v2065_v39  ;;  %v3286_v5 = vpop.eup %3285  ;;  %2701 = vst.msk [vmem:[%s4060_s20 + $0x2b0] sm:$0xff] %vm2614_vm1, %v2572_v32  ;;  %v2378_v14 = vmul.f32 0.5, %v3284_v9  ;;  %v1662_v35 = vpop.xlane.xlu0 %1661 }
 0x1fe   : > { %v1665_v22 = vpop.xlane.xlu1 %1664  ;;  %2702 = vst.msk [vmem:[%s4060_s20 + $0x2b8] sm:$0xff] %vm2614_vm1, %v2573_v41  ;;  %v2379_v37 = vmul.f32 0.5, %v3286_v5  ;;  %3295 = vtanh.f32 %v2192_v30  ;;  %v1998_v47 = vadd.f32 %v4014_v61, %v1662_v35 }
 0x1ff   : > { %v1999_v58 = vadd.f32 %v4014_v61, %v1665_v22  ;;  %v2506_v62 = vadd.f32 0.5, %v2378_v14  ;;  %3297 = vtanh.f32 %v2193_v25 }
 0x200   : > { %v3288_v15 = vpop.eup %3287  ;;  %v2507_v10 = vadd.f32 0.5, %v2379_v37  ;;  %v2126_v27 = vmul.f32 0.5, %v1998_v47  ;;  %1961 = vadd.xlane.f32.xlu0 %v1960_v42  ;;  %1964 = vadd.xlane.f32.xlu1 %v1963_v52 }
 0x201   : > { %v2127_v3 = vmul.f32 0.5, %v1999_v58  ;;  %v3290_v45 = vpop.eup %3289  ;;  %2635 = vst.msk [vmem:[%s4060_s20 + $0xa0] sm:$0xff] %vm2614_vm1, %v2506_v62  ;;  %v2442_v40 = vmul.f32 0.5, %v3288_v15  ;;  %v1854_v60 = vpop.xlane.xlu0 %1853 }
 0x202   : > { %v1857_v57 = vpop.xlane.xlu1 %1856  ;;  %2636 = vst.msk [vmem:[%s4060_s20 + $0xa8] sm:$0xff] %vm2614_vm1, %v2507_v10  ;;  %v2443_v4 = vmul.f32 0.5, %v3290_v45  ;;  %3299 = vtanh.f32 %v2126_v27  ;;  %v2062_v28 = vadd.f32 %v4014_v61, %v1854_v60 }
 0x203   : > { %v2063_v12 = vadd.f32 %v4014_v61, %v1857_v57  ;;  %v2570_v48 = vadd.f32 0.5, %v2442_v40  ;;  %3301 = vtanh.f32 %v2127_v3 }
 0x204   : > { %v3292_v51 = vpop.eup %3291  ;;  %v2571_v38 = vadd.f32 0.5, %v2443_v4  ;;  %v2190_v11 = vmul.f32 0.5, %v2062_v28  ;;  %1967 = vadd.xlane.f32.xlu0 %v1966_v55  ;;  %1970 = vadd.xlane.f32.xlu1 %v1969_v1 }
 0x205   : > { %v2191_v6 = vmul.f32 0.5, %v2063_v12  ;;  %v3294_v59 = vpop.eup %3293  ;;  %2699 = vst.msk [vmem:[%s4060_s20 + $0x2a0] sm:$0xff] %vm2614_vm1, %v2570_v48  ;;  %v2384_v13 = vmul.f32 0.5, %v3292_v51  ;;  %v1680_v43 = vpop.xlane.xlu0 %1679 }
 0x206   : > { %v1683_v18 = vpop.xlane.xlu1 %1682  ;;  %2700 = vst.msk [vmem:[%s4060_s20 + $0x2a8] sm:$0xff] %vm2614_vm1, %v2571_v38  ;;  %v2385_v23 = vmul.f32 0.5, %v3294_v59  ;;  %3303 = vtanh.f32 %v2190_v11  ;;  %v2004_v54 = vadd.f32 %v4014_v61, %v1680_v43 }
 0x207   : > { %v2005_v50 = vadd.f32 %v4014_v61, %v1683_v18  ;;  %v2512_v49 = vadd.f32 0.5, %v2384_v13  ;;  %3305 = vtanh.f32 %v2191_v6 }
 0x208   : > { %v3296_v24 = vpop.eup %3295  ;;  %v2513_v56 = vadd.f32 0.5, %v2385_v23  ;;  %v2132_v20 = vmul.f32 0.5, %v2004_v54 }
 0x209   : > { %v2133_v16 = vmul.f32 0.5, %v2005_v50  ;;  %v3298_v44 = vpop.eup %3297  ;;  %2641 = vst.msk [vmem:[%s4060_s20 + $0xd0] sm:$0xff] %vm2614_vm1, %v2512_v49  ;;  %v2448_v36 = vmul.f32 0.5, %v3296_v24  ;;  %v1872_v19 = vpop.xlane.xlu0 %1871 }
 0x20a   : > { %v1875_v2 = vpop.xlane.xlu1 %1874  ;;  %2642 = vst.msk [vmem:[%s4060_s20 + $0xd8] sm:$0xff] %vm2614_vm1, %v2513_v56  ;;  %v2449_v34 = vmul.f32 0.5, %v3298_v44  ;;  %3307 = vtanh.f32 %v2132_v20  ;;  %v2068_v7 = vadd.f32 %v4014_v61, %v1872_v19 }
 0x20b   : > { %v2069_v21 = vadd.f32 %v4014_v61, %v1875_v2  ;;  %v2576_v63 = vadd.f32 0.5, %v2448_v36  ;;  %3309 = vtanh.f32 %v2133_v16 }
 0x20c   : > { %v3300_v29 = vpop.eup %3299  ;;  %v2577_v33 = vadd.f32 0.5, %v2449_v34  ;;  %v2196_v53 = vmul.f32 0.5, %v2068_v7 }
 0x20d   : > { %v2197_v17 = vmul.f32 0.5, %v2069_v21  ;;  %v3302_v46 = vpop.eup %3301  ;;  %2705 = vst.msk [vmem:[%s4060_s20 + $0x2d0] sm:$0xff] %vm2614_vm1, %v2576_v63  ;;  %v2382_v39 = vmul.f32 0.5, %v3300_v29  ;;  %v1674_v32 = vpop.xlane.xlu0 %1673 }
 0x20e   : > { %v1677_v31 = vpop.xlane.xlu1 %1676  ;;  %2706 = vst.msk [vmem:[%s4060_s20 + $0x2d8] sm:$0xff] %vm2614_vm1, %v2577_v33  ;;  %v2383_v0 = vmul.f32 0.5, %v3302_v46  ;;  %3311 = vtanh.f32 %v2196_v53  ;;  %v2002_v9 = vadd.f32 %v4014_v61, %v1674_v32 }
 0x20f   : > { %v2003_v41 = vadd.f32 %v4014_v61, %v1677_v31  ;;  %v2510_v30 = vadd.f32 0.5, %v2382_v39  ;;  %3313 = vtanh.f32 %v2197_v17 }
 0x210   : > { %v3304_v25 = vpop.eup %3303  ;;  %v2511_v5 = vadd.f32 0.5, %v2383_v0  ;;  %v2130_v14 = vmul.f32 0.5, %v2002_v9 }
 0x211   : > { %v2131_v8 = vmul.f32 0.5, %v2003_v41  ;;  %v3306_v26 = vpop.eup %3305  ;;  %2639 = vst.msk [vmem:[%s4060_s20 + $0xc0] sm:$0xff] %vm2614_vm1, %v2510_v30  ;;  %v2446_v35 = vmul.f32 0.5, %v3304_v25  ;;  %v1866_v22 = vpop.xlane.xlu0 %1865 }
 0x212   : > { %v1869_v37 = vpop.xlane.xlu1 %1868  ;;  %2640 = vst.msk [vmem:[%s4060_s20 + $0xc8] sm:$0xff] %vm2614_vm1, %v2511_v5  ;;  %v2447_v47 = vmul.f32 0.5, %v3306_v26  ;;  %3315 = vtanh.f32 %v2130_v14  ;;  %v2066_v58 = vadd.f32 %v4014_v61, %v1866_v22 }
 0x213   : > { %v2067_v62 = vadd.f32 %v4014_v61, %v1869_v37  ;;  %v2574_v42 = vadd.f32 0.5, %v2446_v35  ;;  %3317 = vtanh.f32 %v2131_v8 }
 0x214   : > { %v3308_v52 = vpop.eup %3307  ;;  %v2575_v15 = vadd.f32 0.5, %v2447_v47  ;;  %v2194_v10 = vmul.f32 0.5, %v2066_v58 }
 0x215   : > { %v2195_v27 = vmul.f32 0.5, %v2067_v62  ;;  %v3310_v3 = vpop.eup %3309  ;;  %2703 = vst.msk [vmem:[%s4060_s20 + $0x2c0] sm:$0xff] %vm2614_vm1, %v2574_v42  ;;  %v2388_v45 = vmul.f32 0.5, %v3308_v52  ;;  %v1692_v40 = vpop.xlane.xlu0 %1691 }
 0x216   : > { %v1695_v60 = vpop.xlane.xlu1 %1694  ;;  %2704 = vst.msk [vmem:[%s4060_s20 + $0x2c8] sm:$0xff] %vm2614_vm1, %v2575_v15  ;;  %v2389_v57 = vmul.f32 0.5, %v3310_v3  ;;  %3319 = vtanh.f32 %v2194_v10  ;;  %v2008_v4 = vadd.f32 %v4014_v61, %v1692_v40 }
 0x217   : > { %v2009_v28 = vadd.f32 %v4014_v61, %v1695_v60  ;;  %v2516_v12 = vadd.f32 0.5, %v2388_v45  ;;  %3321 = vtanh.f32 %v2195_v27 }
 0x218   : > { %v3312_v48 = vpop.eup %3311  ;;  %v2517_v55 = vadd.f32 0.5, %v2389_v57  ;;  %v2136_v1 = vmul.f32 0.5, %v2008_v4 }
 0x219   : > { %v2137_v51 = vmul.f32 0.5, %v2009_v28  ;;  %v3314_v38 = vpop.eup %3313  ;;  %2645 = vst.msk [vmem:[%s4060_s20 + $0xf0] sm:$0xff] %vm2614_vm1, %v2516_v12  ;;  %v2452_v11 = vmul.f32 0.5, %v3312_v48  ;;  %v1884_v6 = vpop.xlane.xlu0 %1883 }
 0x21a   : > { %v1887_v59 = vpop.xlane.xlu1 %1886  ;;  %2646 = vst.msk [vmem:[%s4060_s20 + $0xf8] sm:$0xff] %vm2614_vm1, %v2517_v55  ;;  %v2453_v13 = vmul.f32 0.5, %v3314_v38  ;;  %3323 = vtanh.f32 %v2136_v1  ;;  %v2072_v43 = vadd.f32 %v4014_v61, %v1884_v6 }
 0x21b   : > { %v2073_v18 = vadd.f32 %v4014_v61, %v1887_v59  ;;  %v2580_v23 = vadd.f32 0.5, %v2452_v11  ;;  %3325 = vtanh.f32 %v2137_v51 }
 0x21c   : > { %v3316_v54 = vpop.eup %3315  ;;  %v2581_v50 = vadd.f32 0.5, %v2453_v13  ;;  %v2200_v49 = vmul.f32 0.5, %v2072_v43 }
 0x21d   : > { %v2201_v24 = vmul.f32 0.5, %v2073_v18  ;;  %v3318_v56 = vpop.eup %3317  ;;  %2709 = vst.msk [vmem:[%s4060_s20 + $0x2f0] sm:$0xff] %vm2614_vm1, %v2580_v23  ;;  %v2386_v20 = vmul.f32 0.5, %v3316_v54  ;;  %v1686_v16 = vpop.xlane.xlu0 %1685 }
 0x21e   : > { %v1689_v44 = vpop.xlane.xlu1 %1688  ;;  %2710 = vst.msk [vmem:[%s4060_s20 + $0x2f8] sm:$0xff] %vm2614_vm1, %v2581_v50  ;;  %v2387_v36 = vmul.f32 0.5, %v3318_v56  ;;  %3327 = vtanh.f32 %v2200_v49  ;;  %v2006_v19 = vadd.f32 %v4014_v61, %v1686_v16 }
 0x21f   : > { %v2007_v2 = vadd.f32 %v4014_v61, %v1689_v44  ;;  %v2514_v34 = vadd.f32 0.5, %v2386_v20  ;;  %3329 = vtanh.f32 %v2201_v24 }
 0x220   : > { %v3320_v7 = vpop.eup %3319  ;;  %v2515_v21 = vadd.f32 0.5, %v2387_v36  ;;  %v2134_v63 = vmul.f32 0.5, %v2006_v19 }
 0x221   : > { %v2135_v29 = vmul.f32 0.5, %v2007_v2  ;;  %v3322_v33 = vpop.eup %3321  ;;  %2643 = vst.msk [vmem:[%s4060_s20 + $0xe0] sm:$0xff] %vm2614_vm1, %v2514_v34  ;;  %v2450_v53 = vmul.f32 0.5, %v3320_v7  ;;  %v1878_v17 = vpop.xlane.xlu0 %1877 }
 0x222   : > { %v1881_v46 = vpop.xlane.xlu1 %1880  ;;  %2644 = vst.msk [vmem:[%s4060_s20 + $0xe8] sm:$0xff] %vm2614_vm1, %v2515_v21  ;;  %v2451_v39 = vmul.f32 0.5, %v3322_v33  ;;  %3331 = vtanh.f32 %v2134_v63  ;;  %v2070_v32 = vadd.f32 %v4014_v61, %v1878_v17 }
 0x223   : > { %v2071_v31 = vadd.f32 %v4014_v61, %v1881_v46  ;;  %v2578_v0 = vadd.f32 0.5, %v2450_v53  ;;  %3333 = vtanh.f32 %v2135_v29 }
 0x224   : > { %v3324_v9 = vpop.eup %3323  ;;  %v2579_v41 = vadd.f32 0.5, %v2451_v39  ;;  %v2198_v30 = vmul.f32 0.5, %v2070_v32 }
 0x225   : > { %v2199_v25 = vmul.f32 0.5, %v2071_v31  ;;  %v3326_v5 = vpop.eup %3325  ;;  %2707 = vst.msk [vmem:[%s4060_s20 + $0x2e0] sm:$0xff] %vm2614_vm1, %v2578_v0  ;;  %v2392_v14 = vmul.f32 0.5, %v3324_v9  ;;  %v1704_v8 = vpop.xlane.xlu0 %1703 }
 0x226   : > { %v1707_v26 = vpop.xlane.xlu1 %1706  ;;  %2708 = vst.msk [vmem:[%s4060_s20 + $0x2e8] sm:$0xff] %vm2614_vm1, %v2579_v41  ;;  %v2393_v35 = vmul.f32 0.5, %v3326_v5  ;;  %3335 = vtanh.f32 %v2198_v30  ;;  %v2012_v22 = vadd.f32 %v4014_v61, %v1704_v8 }
 0x227   : > { %v2013_v37 = vadd.f32 %v4014_v61, %v1707_v26  ;;  %v2520_v47 = vadd.f32 0.5, %v2392_v14  ;;  %3337 = vtanh.f32 %v2199_v25 }
 0x228   : > { %v3328_v58 = vpop.eup %3327  ;;  %v2521_v62 = vadd.f32 0.5, %v2393_v35  ;;  %v2140_v42 = vmul.f32 0.5, %v2012_v22 }
 0x229   : > { %v2141_v52 = vmul.f32 0.5, %v2013_v37  ;;  %v3330_v15 = vpop.eup %3329  ;;  %2649 = vst.msk [vmem:[%s4060_s20 + $0x110] sm:$0xff] %vm2614_vm1, %v2520_v47  ;;  %v2456_v10 = vmul.f32 0.5, %v3328_v58  ;;  %v1896_v27 = vpop.xlane.xlu0 %1895 }
 0x22a   : > { %v1899_v3 = vpop.xlane.xlu1 %1898  ;;  %2650 = vst.msk [vmem:[%s4060_s20 + $0x118] sm:$0xff] %vm2614_vm1, %v2521_v62  ;;  %v2457_v45 = vmul.f32 0.5, %v3330_v15  ;;  %3339 = vtanh.f32 %v2140_v42  ;;  %v2076_v40 = vadd.f32 %v4014_v61, %v1896_v27 }
 0x22b   : > { %v2077_v60 = vadd.f32 %v4014_v61, %v1899_v3  ;;  %v2584_v57 = vadd.f32 0.5, %v2456_v10  ;;  %3341 = vtanh.f32 %v2141_v52 }
 0x22c   : > { %v3332_v4 = vpop.eup %3331  ;;  %v2585_v28 = vadd.f32 0.5, %v2457_v45  ;;  %v2204_v12 = vmul.f32 0.5, %v2076_v40 }
 0x22d   : > { %v2205_v48 = vmul.f32 0.5, %v2077_v60  ;;  %v3334_v55 = vpop.eup %3333  ;;  %2713 = vst.msk [vmem:[%s4060_s20 + $0x310] sm:$0xff] %vm2614_vm1, %v2584_v57  ;;  %v2390_v1 = vmul.f32 0.5, %v3332_v4  ;;  %v1698_v51 = vpop.xlane.xlu0 %1697 }
 0x22e   : > { %v1701_v38 = vpop.xlane.xlu1 %1700  ;;  %2714 = vst.msk [vmem:[%s4060_s20 + $0x318] sm:$0xff] %vm2614_vm1, %v2585_v28  ;;  %v2391_v11 = vmul.f32 0.5, %v3334_v55  ;;  %3343 = vtanh.f32 %v2204_v12  ;;  %v2010_v6 = vadd.f32 %v4014_v61, %v1698_v51 }
 0x22f   : > { %v2011_v59 = vadd.f32 %v4014_v61, %v1701_v38  ;;  %v2518_v13 = vadd.f32 0.5, %v2390_v1  ;;  %3345 = vtanh.f32 %v2205_v48 }
 0x230   : > { %v3336_v43 = vpop.eup %3335  ;;  %v2519_v18 = vadd.f32 0.5, %v2391_v11  ;;  %v2138_v23 = vmul.f32 0.5, %v2010_v6 }
 0x231   : > { %v2139_v54 = vmul.f32 0.5, %v2011_v59  ;;  %v3338_v50 = vpop.eup %3337  ;;  %2647 = vst.msk [vmem:[%s4060_s20 + $0x100] sm:$0xff] %vm2614_vm1, %v2518_v13  ;;  %v2454_v49 = vmul.f32 0.5, %v3336_v43  ;;  %v1890_v24 = vpop.xlane.xlu0 %1889 }
 0x232   : > { %v1893_v56 = vpop.xlane.xlu1 %1892  ;;  %2648 = vst.msk [vmem:[%s4060_s20 + $0x108] sm:$0xff] %vm2614_vm1, %v2519_v18  ;;  %v2455_v20 = vmul.f32 0.5, %v3338_v50  ;;  %3347 = vtanh.f32 %v2138_v23  ;;  %v2074_v16 = vadd.f32 %v4014_v61, %v1890_v24 }
 0x233   : > { %v2075_v44 = vadd.f32 %v4014_v61, %v1893_v56  ;;  %v2582_v36 = vadd.f32 0.5, %v2454_v49  ;;  %3349 = vtanh.f32 %v2139_v54 }
 0x234   : > { %v3340_v19 = vpop.eup %3339  ;;  %v2583_v2 = vadd.f32 0.5, %v2455_v20  ;;  %v2202_v34 = vmul.f32 0.5, %v2074_v16 }
 0x235   : > { %v2203_v7 = vmul.f32 0.5, %v2075_v44  ;;  %v3342_v21 = vpop.eup %3341  ;;  %2711 = vst.msk [vmem:[%s4060_s20 + $0x300] sm:$0xff] %vm2614_vm1, %v2582_v36  ;;  %v2396_v63 = vmul.f32 0.5, %v3340_v19  ;;  %v1716_v29 = vpop.xlane.xlu0 %1715 }
 0x236   : > { %v1719_v33 = vpop.xlane.xlu1 %1718  ;;  %2712 = vst.msk [vmem:[%s4060_s20 + $0x308] sm:$0xff] %vm2614_vm1, %v2583_v2  ;;  %v2397_v53 = vmul.f32 0.5, %v3342_v21  ;;  %3351 = vtanh.f32 %v2202_v34  ;;  %v2016_v17 = vadd.f32 %v4014_v61, %v1716_v29 }
 0x237   : > { %v2017_v46 = vadd.f32 %v4014_v61, %v1719_v33  ;;  %v2524_v39 = vadd.f32 0.5, %v2396_v63  ;;  %3353 = vtanh.f32 %v2203_v7 }
 0x238   : > { %v3344_v32 = vpop.eup %3343  ;;  %v2525_v31 = vadd.f32 0.5, %v2397_v53  ;;  %v2144_v0 = vmul.f32 0.5, %v2016_v17 }
 0x239   : > { %v2145_v9 = vmul.f32 0.5, %v2017_v46  ;;  %v3346_v41 = vpop.eup %3345  ;;  %2653 = vst.msk [vmem:[%s4060_s20 + $0x130] sm:$0xff] %vm2614_vm1, %v2524_v39  ;;  %v2460_v30 = vmul.f32 0.5, %v3344_v32  ;;  %v1908_v25 = vpop.xlane.xlu0 %1907 }
 0x23a   : > { %v1911_v5 = vpop.xlane.xlu1 %1910  ;;  %2654 = vst.msk [vmem:[%s4060_s20 + $0x138] sm:$0xff] %vm2614_vm1, %v2525_v31  ;;  %v2461_v14 = vmul.f32 0.5, %v3346_v41  ;;  %3355 = vtanh.f32 %v2144_v0  ;;  %v2080_v8 = vadd.f32 %v4014_v61, %v1908_v25 }
 0x23b   : > { %v2081_v26 = vadd.f32 %v4014_v61, %v1911_v5  ;;  %v2588_v35 = vadd.f32 0.5, %v2460_v30  ;;  %3357 = vtanh.f32 %v2145_v9 }
 0x23c   : > { %v3348_v22 = vpop.eup %3347  ;;  %v2589_v37 = vadd.f32 0.5, %v2461_v14  ;;  %v2208_v47 = vmul.f32 0.5, %v2080_v8 }
 0x23d   : > { %v2209_v58 = vmul.f32 0.5, %v2081_v26  ;;  %v3350_v62 = vpop.eup %3349  ;;  %2717 = vst.msk [vmem:[%s4060_s20 + $0x330] sm:$0xff] %vm2614_vm1, %v2588_v35  ;;  %v2394_v42 = vmul.f32 0.5, %v3348_v22  ;;  %v1710_v52 = vpop.xlane.xlu0 %1709 }
 0x23e   : > { %v1713_v15 = vpop.xlane.xlu1 %1712  ;;  %2718 = vst.msk [vmem:[%s4060_s20 + $0x338] sm:$0xff] %vm2614_vm1, %v2589_v37  ;;  %v2395_v10 = vmul.f32 0.5, %v3350_v62  ;;  %3359 = vtanh.f32 %v2208_v47  ;;  %v2014_v27 = vadd.f32 %v4014_v61, %v1710_v52 }
 0x23f   : > { %v2015_v3 = vadd.f32 %v4014_v61, %v1713_v15  ;;  %v2522_v45 = vadd.f32 0.5, %v2394_v42  ;;  %3361 = vtanh.f32 %v2209_v58 }
 0x240   : > { %v3352_v40 = vpop.eup %3351  ;;  %v2523_v60 = vadd.f32 0.5, %v2395_v10  ;;  %v2142_v57 = vmul.f32 0.5, %v2014_v27 }
 0x241   : > { %v2143_v4 = vmul.f32 0.5, %v2015_v3  ;;  %v3354_v28 = vpop.eup %3353  ;;  %2651 = vst.msk [vmem:[%s4060_s20 + $0x120] sm:$0xff] %vm2614_vm1, %v2522_v45  ;;  %v2458_v12 = vmul.f32 0.5, %v3352_v40  ;;  %v1902_v48 = vpop.xlane.xlu0 %1901 }
 0x242   : > { %v1905_v55 = vpop.xlane.xlu1 %1904  ;;  %2652 = vst.msk [vmem:[%s4060_s20 + $0x128] sm:$0xff] %vm2614_vm1, %v2523_v60  ;;  %v2459_v1 = vmul.f32 0.5, %v3354_v28  ;;  %3363 = vtanh.f32 %v2142_v57  ;;  %v2078_v51 = vadd.f32 %v4014_v61, %v1902_v48 }
 0x243   : > { %v2079_v38 = vadd.f32 %v4014_v61, %v1905_v55  ;;  %v2586_v11 = vadd.f32 0.5, %v2458_v12  ;;  %3365 = vtanh.f32 %v2143_v4 }
 0x244   : > { %v3356_v6 = vpop.eup %3355  ;;  %v2587_v59 = vadd.f32 0.5, %v2459_v1  ;;  %v2206_v13 = vmul.f32 0.5, %v2078_v51 }
 0x245   : > { %v2207_v43 = vmul.f32 0.5, %v2079_v38  ;;  %v3358_v18 = vpop.eup %3357  ;;  %2715 = vst.msk [vmem:[%s4060_s20 + $0x320] sm:$0xff] %vm2614_vm1, %v2586_v11  ;;  %v2400_v23 = vmul.f32 0.5, %v3356_v6  ;;  %v1728_v54 = vpop.xlane.xlu0 %1727 }
 0x246   : > { %v1731_v50 = vpop.xlane.xlu1 %1730  ;;  %2716 = vst.msk [vmem:[%s4060_s20 + $0x328] sm:$0xff] %vm2614_vm1, %v2587_v59  ;;  %v2401_v49 = vmul.f32 0.5, %v3358_v18  ;;  %3367 = vtanh.f32 %v2206_v13  ;;  %v2020_v24 = vadd.f32 %v4014_v61, %v1728_v54 }
 0x247   : > { %v2021_v56 = vadd.f32 %v4014_v61, %v1731_v50  ;;  %v2528_v20 = vadd.f32 0.5, %v2400_v23  ;;  %3369 = vtanh.f32 %v2207_v43 }
 0x248   : > { %v3360_v16 = vpop.eup %3359  ;;  %v2529_v44 = vadd.f32 0.5, %v2401_v49  ;;  %v2148_v36 = vmul.f32 0.5, %v2020_v24 }
 0x249   : > { %v2149_v19 = vmul.f32 0.5, %v2021_v56  ;;  %v3362_v2 = vpop.eup %3361  ;;  %2657 = vst.msk [vmem:[%s4060_s20 + $0x150] sm:$0xff] %vm2614_vm1, %v2528_v20  ;;  %v2464_v34 = vmul.f32 0.5, %v3360_v16  ;;  %v1920_v7 = vpop.xlane.xlu0 %1919 }
 0x24a   : > { %v1923_v21 = vpop.xlane.xlu1 %1922  ;;  %2658 = vst.msk [vmem:[%s4060_s20 + $0x158] sm:$0xff] %vm2614_vm1, %v2529_v44  ;;  %v2465_v63 = vmul.f32 0.5, %v3362_v2  ;;  %3371 = vtanh.f32 %v2148_v36  ;;  %v2084_v29 = vadd.f32 %v4014_v61, %v1920_v7 }
 0x24b   : > { %v2085_v33 = vadd.f32 %v4014_v61, %v1923_v21  ;;  %v2592_v53 = vadd.f32 0.5, %v2464_v34  ;;  %3373 = vtanh.f32 %v2149_v19 }
 0x24c   : > { %v3364_v17 = vpop.eup %3363  ;;  %v2593_v46 = vadd.f32 0.5, %v2465_v63  ;;  %v2212_v39 = vmul.f32 0.5, %v2084_v29 }
 0x24d   : > { %v2213_v32 = vmul.f32 0.5, %v2085_v33  ;;  %v3366_v31 = vpop.eup %3365  ;;  %2721 = vst.msk [vmem:[%s4060_s20 + $0x350] sm:$0xff] %vm2614_vm1, %v2592_v53  ;;  %v2398_v0 = vmul.f32 0.5, %v3364_v17  ;;  %v1722_v9 = vpop.xlane.xlu0 %1721 }
 0x24e   : > { %v1725_v41 = vpop.xlane.xlu1 %1724  ;;  %2722 = vst.msk [vmem:[%s4060_s20 + $0x358] sm:$0xff] %vm2614_vm1, %v2593_v46  ;;  %v2399_v30 = vmul.f32 0.5, %v3366_v31  ;;  %3375 = vtanh.f32 %v2212_v39  ;;  %v2018_v25 = vadd.f32 %v4014_v61, %v1722_v9 }
 0x24f   : > { %v2019_v5 = vadd.f32 %v4014_v61, %v1725_v41  ;;  %v2526_v14 = vadd.f32 0.5, %v2398_v0  ;;  %3377 = vtanh.f32 %v2213_v32 }
 0x250   : > { %v3368_v8 = vpop.eup %3367  ;;  %v2527_v26 = vadd.f32 0.5, %v2399_v30  ;;  %v2146_v35 = vmul.f32 0.5, %v2018_v25 }
 0x251   : > { %v2147_v22 = vmul.f32 0.5, %v2019_v5  ;;  %v3370_v37 = vpop.eup %3369  ;;  %2655 = vst.msk [vmem:[%s4060_s20 + $0x140] sm:$0xff] %vm2614_vm1, %v2526_v14  ;;  %v2462_v47 = vmul.f32 0.5, %v3368_v8  ;;  %v1914_v58 = vpop.xlane.xlu0 %1913 }
 0x252   : > { %v1917_v62 = vpop.xlane.xlu1 %1916  ;;  %2656 = vst.msk [vmem:[%s4060_s20 + $0x148] sm:$0xff] %vm2614_vm1, %v2527_v26  ;;  %v2463_v42 = vmul.f32 0.5, %v3370_v37  ;;  %3379 = vtanh.f32 %v2146_v35  ;;  %v2082_v52 = vadd.f32 %v4014_v61, %v1914_v58 }
 0x253   : > { %v2083_v15 = vadd.f32 %v4014_v61, %v1917_v62  ;;  %v2590_v10 = vadd.f32 0.5, %v2462_v47  ;;  %3381 = vtanh.f32 %v2147_v22 }
 0x254   : > { %v3372_v27 = vpop.eup %3371  ;;  %v2591_v3 = vadd.f32 0.5, %v2463_v42  ;;  %v2210_v45 = vmul.f32 0.5, %v2082_v52 }
 0x255   : > { %v2211_v40 = vmul.f32 0.5, %v2083_v15  ;;  %v3374_v60 = vpop.eup %3373  ;;  %2719 = vst.msk [vmem:[%s4060_s20 + $0x340] sm:$0xff] %vm2614_vm1, %v2590_v10  ;;  %v2404_v57 = vmul.f32 0.5, %v3372_v27  ;;  %v1740_v4 = vpop.xlane.xlu0 %1739 }
 0x256   : > { %v1743_v28 = vpop.xlane.xlu1 %1742  ;;  %2720 = vst.msk [vmem:[%s4060_s20 + $0x348] sm:$0xff] %vm2614_vm1, %v2591_v3  ;;  %v2405_v12 = vmul.f32 0.5, %v3374_v60  ;;  %3383 = vtanh.f32 %v2210_v45  ;;  %v2024_v48 = vadd.f32 %v4014_v61, %v1740_v4 }
 0x257   : > { %v2025_v55 = vadd.f32 %v4014_v61, %v1743_v28  ;;  %v2532_v1 = vadd.f32 0.5, %v2404_v57  ;;  %3385 = vtanh.f32 %v2211_v40 }
 0x258   : > { %v3376_v51 = vpop.eup %3375  ;;  %v2533_v38 = vadd.f32 0.5, %v2405_v12  ;;  %v2152_v11 = vmul.f32 0.5, %v2024_v48 }
 0x259   : > { %v2153_v6 = vmul.f32 0.5, %v2025_v55  ;;  %v3378_v59 = vpop.eup %3377  ;;  %2661 = vst.msk [vmem:[%s4060_s20 + $0x170] sm:$0xff] %vm2614_vm1, %v2532_v1  ;;  %v2468_v13 = vmul.f32 0.5, %v3376_v51  ;;  %v1932_v43 = vpop.xlane.xlu0 %1931 }
 0x25a   : > { %v1935_v18 = vpop.xlane.xlu1 %1934  ;;  %2662 = vst.msk [vmem:[%s4060_s20 + $0x178] sm:$0xff] %vm2614_vm1, %v2533_v38  ;;  %v2469_v23 = vmul.f32 0.5, %v3378_v59  ;;  %3387 = vtanh.f32 %v2152_v11  ;;  %v2088_v54 = vadd.f32 %v4014_v61, %v1932_v43 }
 0x25b   : > { %v2089_v50 = vadd.f32 %v4014_v61, %v1935_v18  ;;  %v2596_v49 = vadd.f32 0.5, %v2468_v13  ;;  %3389 = vtanh.f32 %v2153_v6 }
 0x25c   : > { %v3380_v24 = vpop.eup %3379  ;;  %v2597_v56 = vadd.f32 0.5, %v2469_v23  ;;  %v2216_v20 = vmul.f32 0.5, %v2088_v54 }
 0x25d   : > { %v2217_v16 = vmul.f32 0.5, %v2089_v50  ;;  %v3382_v44 = vpop.eup %3381  ;;  %2725 = vst.msk [vmem:[%s4060_s20 + $0x370] sm:$0xff] %vm2614_vm1, %v2596_v49  ;;  %v2402_v36 = vmul.f32 0.5, %v3380_v24  ;;  %v1734_v19 = vpop.xlane.xlu0 %1733 }
 0x25e   : > { %v1737_v2 = vpop.xlane.xlu1 %1736  ;;  %2726 = vst.msk [vmem:[%s4060_s20 + $0x378] sm:$0xff] %vm2614_vm1, %v2597_v56  ;;  %v2403_v34 = vmul.f32 0.5, %v3382_v44  ;;  %3391 = vtanh.f32 %v2216_v20  ;;  %v2022_v7 = vadd.f32 %v4014_v61, %v1734_v19 }
 0x25f   : > { %v2023_v21 = vadd.f32 %v4014_v61, %v1737_v2  ;;  %v2530_v63 = vadd.f32 0.5, %v2402_v36  ;;  %3393 = vtanh.f32 %v2217_v16 }
 0x260   : > { %v3384_v29 = vpop.eup %3383  ;;  %v2531_v33 = vadd.f32 0.5, %v2403_v34  ;;  %v2150_v53 = vmul.f32 0.5, %v2022_v7 }
 0x261   : > { %v2151_v17 = vmul.f32 0.5, %v2023_v21  ;;  %v3386_v46 = vpop.eup %3385  ;;  %2659 = vst.msk [vmem:[%s4060_s20 + $0x160] sm:$0xff] %vm2614_vm1, %v2530_v63  ;;  %v2466_v39 = vmul.f32 0.5, %v3384_v29  ;;  %v1926_v32 = vpop.xlane.xlu0 %1925 }
 0x262   : > { %v1929_v31 = vpop.xlane.xlu1 %1928  ;;  %2660 = vst.msk [vmem:[%s4060_s20 + $0x168] sm:$0xff] %vm2614_vm1, %v2531_v33  ;;  %v2467_v0 = vmul.f32 0.5, %v3386_v46  ;;  %3395 = vtanh.f32 %v2150_v53  ;;  %v2086_v9 = vadd.f32 %v4014_v61, %v1926_v32 }
 0x263   : > { %v2087_v41 = vadd.f32 %v4014_v61, %v1929_v31  ;;  %v2594_v30 = vadd.f32 0.5, %v2466_v39  ;;  %3397 = vtanh.f32 %v2151_v17 }
 0x264   : > { %v3388_v25 = vpop.eup %3387  ;;  %v2595_v5 = vadd.f32 0.5, %v2467_v0  ;;  %v2214_v14 = vmul.f32 0.5, %v2086_v9 }
 0x265   : > { %v2215_v8 = vmul.f32 0.5, %v2087_v41  ;;  %v3390_v26 = vpop.eup %3389  ;;  %2723 = vst.msk [vmem:[%s4060_s20 + $0x360] sm:$0xff] %vm2614_vm1, %v2594_v30  ;;  %v2408_v35 = vmul.f32 0.5, %v3388_v25  ;;  %v1752_v22 = vpop.xlane.xlu0 %1751 }
 0x266   : > { %v1755_v37 = vpop.xlane.xlu1 %1754  ;;  %2724 = vst.msk [vmem:[%s4060_s20 + $0x368] sm:$0xff] %vm2614_vm1, %v2595_v5  ;;  %v2409_v47 = vmul.f32 0.5, %v3390_v26  ;;  %3399 = vtanh.f32 %v2214_v14  ;;  %v2028_v58 = vadd.f32 %v4014_v61, %v1752_v22 }
 0x267   : > { %v2029_v62 = vadd.f32 %v4014_v61, %v1755_v37  ;;  %v2536_v42 = vadd.f32 0.5, %v2408_v35  ;;  %3401 = vtanh.f32 %v2215_v8 }
 0x268   : > { %v3392_v52 = vpop.eup %3391  ;;  %v2537_v15 = vadd.f32 0.5, %v2409_v47  ;;  %v2156_v10 = vmul.f32 0.5, %v2028_v58 }
 0x269   : > { %v2157_v27 = vmul.f32 0.5, %v2029_v62  ;;  %v3394_v3 = vpop.eup %3393  ;;  %2665 = vst.msk [vmem:[%s4060_s20 + $0x190] sm:$0xff] %vm2614_vm1, %v2536_v42  ;;  %v2472_v45 = vmul.f32 0.5, %v3392_v52  ;;  %v1944_v40 = vpop.xlane.xlu0 %1943 }
 0x26a   : > { %v1947_v60 = vpop.xlane.xlu1 %1946  ;;  %2666 = vst.msk [vmem:[%s4060_s20 + $0x198] sm:$0xff] %vm2614_vm1, %v2537_v15  ;;  %v2473_v57 = vmul.f32 0.5, %v3394_v3  ;;  %3403 = vtanh.f32 %v2156_v10  ;;  %v2092_v4 = vadd.f32 %v4014_v61, %v1944_v40 }
 0x26b   : > { %v2093_v28 = vadd.f32 %v4014_v61, %v1947_v60  ;;  %v2600_v12 = vadd.f32 0.5, %v2472_v45  ;;  %3405 = vtanh.f32 %v2157_v27 }
 0x26c   : > { %v3396_v48 = vpop.eup %3395  ;;  %v2601_v55 = vadd.f32 0.5, %v2473_v57  ;;  %v2220_v1 = vmul.f32 0.5, %v2092_v4 }
 0x26d   : > { %v2221_v51 = vmul.f32 0.5, %v2093_v28  ;;  %v3398_v38 = vpop.eup %3397  ;;  %2729 = vst.msk [vmem:[%s4060_s20 + $0x390] sm:$0xff] %vm2614_vm1, %v2600_v12  ;;  %v2406_v11 = vmul.f32 0.5, %v3396_v48  ;;  %v1746_v6 = vpop.xlane.xlu0 %1745 }
 0x26e   : > { %v1749_v59 = vpop.xlane.xlu1 %1748  ;;  %2730 = vst.msk [vmem:[%s4060_s20 + $0x398] sm:$0xff] %vm2614_vm1, %v2601_v55  ;;  %v2407_v13 = vmul.f32 0.5, %v3398_v38  ;;  %3407 = vtanh.f32 %v2220_v1  ;;  %v2026_v43 = vadd.f32 %v4014_v61, %v1746_v6 }
 0x26f   : > { %v2027_v18 = vadd.f32 %v4014_v61, %v1749_v59  ;;  %v2534_v23 = vadd.f32 0.5, %v2406_v11  ;;  %3409 = vtanh.f32 %v2221_v51 }
 0x270   : > { %v3400_v54 = vpop.eup %3399  ;;  %v2535_v50 = vadd.f32 0.5, %v2407_v13  ;;  %v2154_v49 = vmul.f32 0.5, %v2026_v43 }
 0x271   : > { %v2155_v24 = vmul.f32 0.5, %v2027_v18  ;;  %v3402_v56 = vpop.eup %3401  ;;  %2663 = vst.msk [vmem:[%s4060_s20 + $0x180] sm:$0xff] %vm2614_vm1, %v2534_v23  ;;  %v2470_v20 = vmul.f32 0.5, %v3400_v54  ;;  %v1938_v16 = vpop.xlane.xlu0 %1937 }
 0x272   : > { %v1941_v44 = vpop.xlane.xlu1 %1940  ;;  %2664 = vst.msk [vmem:[%s4060_s20 + $0x188] sm:$0xff] %vm2614_vm1, %v2535_v50  ;;  %v2471_v36 = vmul.f32 0.5, %v3402_v56  ;;  %3411 = vtanh.f32 %v2154_v49  ;;  %v2090_v19 = vadd.f32 %v4014_v61, %v1938_v16 }
 0x273   : > { %v2091_v2 = vadd.f32 %v4014_v61, %v1941_v44  ;;  %v2598_v34 = vadd.f32 0.5, %v2470_v20  ;;  %3413 = vtanh.f32 %v2155_v24 }
 0x274   : > { %v3404_v7 = vpop.eup %3403  ;;  %v2599_v21 = vadd.f32 0.5, %v2471_v36  ;;  %v2218_v63 = vmul.f32 0.5, %v2090_v19 }
 0x275   : > { %v2219_v29 = vmul.f32 0.5, %v2091_v2  ;;  %v3406_v33 = vpop.eup %3405  ;;  %2727 = vst.msk [vmem:[%s4060_s20 + $0x380] sm:$0xff] %vm2614_vm1, %v2598_v34  ;;  %v2412_v53 = vmul.f32 0.5, %v3404_v7  ;;  %v1764_v17 = vpop.xlane.xlu0 %1763 }
 0x276   : > { %v1767_v46 = vpop.xlane.xlu1 %1766  ;;  %2728 = vst.msk [vmem:[%s4060_s20 + $0x388] sm:$0xff] %vm2614_vm1, %v2599_v21  ;;  %v2413_v39 = vmul.f32 0.5, %v3406_v33  ;;  %3415 = vtanh.f32 %v2218_v63  ;;  %v2032_v32 = vadd.f32 %v4014_v61, %v1764_v17 }
 0x277   : > { %v2033_v31 = vadd.f32 %v4014_v61, %v1767_v46  ;;  %v2540_v0 = vadd.f32 0.5, %v2412_v53  ;;  %3417 = vtanh.f32 %v2219_v29 }
 0x278   : > { %v3408_v9 = vpop.eup %3407  ;;  %v2541_v41 = vadd.f32 0.5, %v2413_v39  ;;  %v2160_v30 = vmul.f32 0.5, %v2032_v32 }
 0x279   : > { %v2161_v25 = vmul.f32 0.5, %v2033_v31  ;;  %v3410_v5 = vpop.eup %3409  ;;  %2669 = vst.msk [vmem:[%s4060_s20 + $0x1b0] sm:$0xff] %vm2614_vm1, %v2540_v0  ;;  %v2476_v14 = vmul.f32 0.5, %v3408_v9  ;;  %v1956_v8 = vpop.xlane.xlu0 %1955 }
 0x27a   : > { %v1959_v26 = vpop.xlane.xlu1 %1958  ;;  %2670 = vst.msk [vmem:[%s4060_s20 + $0x1b8] sm:$0xff] %vm2614_vm1, %v2541_v41  ;;  %v2477_v35 = vmul.f32 0.5, %v3410_v5  ;;  %3419 = vtanh.f32 %v2160_v30  ;;  %v2096_v22 = vadd.f32 %v4014_v61, %v1956_v8 }
 0x27b   : > { %v2097_v37 = vadd.f32 %v4014_v61, %v1959_v26  ;;  %v2604_v47 = vadd.f32 0.5, %v2476_v14  ;;  %3421 = vtanh.f32 %v2161_v25 }
 0x27c   : > { %v3412_v58 = vpop.eup %3411  ;;  %v2605_v62 = vadd.f32 0.5, %v2477_v35  ;;  %v2224_v42 = vmul.f32 0.5, %v2096_v22 }
 0x27d   : > { %v2225_v52 = vmul.f32 0.5, %v2097_v37  ;;  %v3414_v15 = vpop.eup %3413  ;;  %2733 = vst.msk [vmem:[%s4060_s20 + $0x3b0] sm:$0xff] %vm2614_vm1, %v2604_v47  ;;  %v2410_v10 = vmul.f32 0.5, %v3412_v58  ;;  %v1758_v27 = vpop.xlane.xlu0 %1757 }
 0x27e   : > { %v1761_v3 = vpop.xlane.xlu1 %1760  ;;  %2734 = vst.msk [vmem:[%s4060_s20 + $0x3b8] sm:$0xff] %vm2614_vm1, %v2605_v62  ;;  %v2411_v45 = vmul.f32 0.5, %v3414_v15  ;;  %3423 = vtanh.f32 %v2224_v42  ;;  %v2030_v40 = vadd.f32 %v4014_v61, %v1758_v27 }
 0x27f   : > { %v2031_v60 = vadd.f32 %v4014_v61, %v1761_v3  ;;  %v2538_v57 = vadd.f32 0.5, %v2410_v10  ;;  %3425 = vtanh.f32 %v2225_v52 }
 0x280   : > { %v3416_v4 = vpop.eup %3415  ;;  %v2539_v28 = vadd.f32 0.5, %v2411_v45  ;;  %v2158_v12 = vmul.f32 0.5, %v2030_v40 }
 0x281   : > { %v2159_v48 = vmul.f32 0.5, %v2031_v60  ;;  %v3418_v55 = vpop.eup %3417  ;;  %2667 = vst.msk [vmem:[%s4060_s20 + $0x1a0] sm:$0xff] %vm2614_vm1, %v2538_v57  ;;  %v2474_v1 = vmul.f32 0.5, %v3416_v4  ;;  %v1950_v51 = vpop.xlane.xlu0 %1949 }
 0x282   : > { %v1953_v38 = vpop.xlane.xlu1 %1952  ;;  %2668 = vst.msk [vmem:[%s4060_s20 + $0x1a8] sm:$0xff] %vm2614_vm1, %v2539_v28  ;;  %v2475_v11 = vmul.f32 0.5, %v3418_v55  ;;  %3427 = vtanh.f32 %v2158_v12  ;;  %v2094_v6 = vadd.f32 %v4014_v61, %v1950_v51 }
 0x283   : > { %v2095_v59 = vadd.f32 %v4014_v61, %v1953_v38  ;;  %v2602_v13 = vadd.f32 0.5, %v2474_v1  ;;  %3429 = vtanh.f32 %v2159_v48 }
 0x284   : > { %v3420_v43 = vpop.eup %3419  ;;  %v2603_v18 = vadd.f32 0.5, %v2475_v11  ;;  %v2222_v23 = vmul.f32 0.5, %v2094_v6 }
 0x285   : > { %v2223_v54 = vmul.f32 0.5, %v2095_v59  ;;  %v3422_v50 = vpop.eup %3421  ;;  %2731 = vst.msk [vmem:[%s4060_s20 + $0x3a0] sm:$0xff] %vm2614_vm1, %v2602_v13  ;;  %v2416_v49 = vmul.f32 0.5, %v3420_v43  ;;  %v1776_v24 = vpop.xlane.xlu0 %1775 }
 0x286   : > { %v1779_v56 = vpop.xlane.xlu1 %1778  ;;  %2732 = vst.msk [vmem:[%s4060_s20 + $0x3a8] sm:$0xff] %vm2614_vm1, %v2603_v18  ;;  %v2417_v20 = vmul.f32 0.5, %v3422_v50  ;;  %3431 = vtanh.f32 %v2222_v23  ;;  %v2036_v16 = vadd.f32 %v4014_v61, %v1776_v24 }
 0x287   : > { %v2037_v44 = vadd.f32 %v4014_v61, %v1779_v56  ;;  %v2544_v36 = vadd.f32 0.5, %v2416_v49  ;;  %3433 = vtanh.f32 %v2223_v54 }
 0x288   : > { %v3424_v19 = vpop.eup %3423  ;;  %v2545_v2 = vadd.f32 0.5, %v2417_v20  ;;  %v2164_v34 = vmul.f32 0.5, %v2036_v16 }
 0x289   : > { %v2165_v7 = vmul.f32 0.5, %v2037_v44  ;;  %v3426_v21 = vpop.eup %3425  ;;  %2673 = vst.msk [vmem:[%s4060_s20 + $0x1d0] sm:$0xff] %vm2614_vm1, %v2544_v36  ;;  %v2480_v63 = vmul.f32 0.5, %v3424_v19  ;;  %v1770_v29 = vpop.xlane.xlu0 %1769 }
 0x28a   : > { %v1773_v33 = vpop.xlane.xlu1 %1772  ;;  %2674 = vst.msk [vmem:[%s4060_s20 + $0x1d8] sm:$0xff] %vm2614_vm1, %v2545_v2  ;;  %v2481_v53 = vmul.f32 0.5, %v3426_v21  ;;  %3435 = vtanh.f32 %v2164_v34  ;;  %v2034_v17 = vadd.f32 %v4014_v61, %v1770_v29 }
 0x28b   : > { %v2035_v46 = vadd.f32 %v4014_v61, %v1773_v33  ;;  %v2608_v39 = vadd.f32 0.5, %v2480_v63  ;;  %3437 = vtanh.f32 %v2165_v7 }
 0x28c   : > { %v3428_v32 = vpop.eup %3427  ;;  %v2609_v31 = vadd.f32 0.5, %v2481_v53  ;;  %v2162_v0 = vmul.f32 0.5, %v2034_v17 }
 0x28d   : > { %v2163_v9 = vmul.f32 0.5, %v2035_v46  ;;  %v3430_v41 = vpop.eup %3429  ;;  %2737 = vst.msk [vmem:[%s4060_s20 + $0x3d0] sm:$0xff] %vm2614_vm1, %v2608_v39  ;;  %v2414_v30 = vmul.f32 0.5, %v3428_v32  ;;  %v1962_v25 = vpop.xlane.xlu0 %1961 }
 0x28e   : > { %v1965_v5 = vpop.xlane.xlu1 %1964  ;;  %2738 = vst.msk [vmem:[%s4060_s20 + $0x3d8] sm:$0xff] %vm2614_vm1, %v2609_v31  ;;  %v2415_v14 = vmul.f32 0.5, %v3430_v41  ;;  %3439 = vtanh.f32 %v2162_v0  ;;  %v2098_v8 = vadd.f32 %v4014_v61, %v1962_v25 }
 0x28f   : > { %v2099_v26 = vadd.f32 %v4014_v61, %v1965_v5  ;;  %v2542_v35 = vadd.f32 0.5, %v2414_v30  ;;  %3441 = vtanh.f32 %v2163_v9 }
 0x290   : > { %v3432_v22 = vpop.eup %3431  ;;  %v2543_v37 = vadd.f32 0.5, %v2415_v14  ;;  %v2226_v47 = vmul.f32 0.5, %v2098_v8 }
 0x291   : > { %v2227_v58 = vmul.f32 0.5, %v2099_v26  ;;  %v3434_v62 = vpop.eup %3433  ;;  %2671 = vst.msk [vmem:[%s4060_s20 + $0x1c0] sm:$0xff] %vm2614_vm1, %v2542_v35  ;;  %v2478_v42 = vmul.f32 0.5, %v3432_v22  ;;  %v1968_v52 = vpop.xlane.xlu0 %1967 }
 0x292   : > { %v1971_v15 = vpop.xlane.xlu1 %1970  ;;  %2672 = vst.msk [vmem:[%s4060_s20 + $0x1c8] sm:$0xff] %vm2614_vm1, %v2543_v37  ;;  %v2479_v10 = vmul.f32 0.5, %v3434_v62  ;;  %3443 = vtanh.f32 %v2226_v47  ;;  %v2100_v27 = vadd.f32 %v4014_v61, %v1968_v52 }
 0x293   : > { %v2101_v3 = vadd.f32 %v4014_v61, %v1971_v15  ;;  %v2606_v45 = vadd.f32 0.5, %v2478_v42  ;;  %3445 = vtanh.f32 %v2227_v58 }
 0x294   : > { %v3436_v40 = vpop.eup %3435  ;;  %v2607_v60 = vadd.f32 0.5, %v2479_v10  ;;  %v2228_v57 = vmul.f32 0.5, %v2100_v27 }
 0x295   : > { %v2229_v4 = vmul.f32 0.5, %v2101_v3  ;;  %v3438_v28 = vpop.eup %3437  ;;  %2735 = vst.msk [vmem:[%s4060_s20 + $0x3c0] sm:$0xff] %vm2614_vm1, %v2606_v45  ;;  %v2420_v12 = vmul.f32 0.5, %v3436_v40 }
 0x296   : > { %2736 = vst.msk [vmem:[%s4060_s20 + $0x3c8] sm:$0xff] %vm2614_vm1, %v2607_v60  ;;  %v2421_v48 = vmul.f32 0.5, %v3438_v28  ;;  %3447 = vtanh.f32 %v2228_v57 }
 0x297   : > { %v2548_v55 = vadd.f32 0.5, %v2420_v12  ;;  %3449 = vtanh.f32 %v2229_v4 }
 0x298   : > { %v3440_v61 = vpop.eup %3439  ;;  %v2549_v1 = vadd.f32 0.5, %v2421_v48 }
 0x299   : > { %v3442_v51 = vpop.eup %3441  ;;  %2677 = vst.msk [vmem:[%s4060_s20 + $0x1f0] sm:$0xff] %vm2614_vm1, %v2548_v55  ;;  %v2418_v38 = vmul.f32 0.5, %v3440_v61 }
 0x29a   : > { %2678 = vst.msk [vmem:[%s4060_s20 + $0x1f8] sm:$0xff] %vm2614_vm1, %v2549_v1  ;;  %v2419_v11 = vmul.f32 0.5, %v3442_v51 }
 0x29b   : > { %v2546_v6 = vadd.f32 0.5, %v2418_v38 }
 0x29c   : > { %v3444_v59 = vpop.eup %3443  ;;  %v2547_v13 = vadd.f32 0.5, %v2419_v11 }
 0x29d   : > { %v3446_v43 = vpop.eup %3445  ;;  %2675 = vst.msk [vmem:[%s4060_s20 + $0x1e0] sm:$0xff] %vm2614_vm1, %v2546_v6  ;;  %v2482_v18 = vmul.f32 0.5, %v3444_v59 }
 0x29e   : > { %2676 = vst.msk [vmem:[%s4060_s20 + $0x1e8] sm:$0xff] %vm2614_vm1, %v2547_v13  ;;  %v2483_v23 = vmul.f32 0.5, %v3446_v43 }
 0x29f   : > { %v2610_v54 = vadd.f32 0.5, %v2482_v18 }
 0x2a0   : > { %v3448_v50 = vpop.eup %3447  ;;  %v2611_v49 = vadd.f32 0.5, %v2483_v23 }
 0x2a1   : > { %v3450_v24 = vpop.eup %3449  ;;  %2739 = vst.msk [vmem:[%s4060_s20 + $0x3e0] sm:$0xff] %vm2614_vm1, %v2610_v54  ;;  %v2484_v56 = vmul.f32 0.5, %v3448_v50 }
 0x2a2   : > { %2740 = vst.msk [vmem:[%s4060_s20 + $0x3e8] sm:$0xff] %vm2614_vm1, %v2611_v49  ;;  %v2485_v20 = vmul.f32 0.5, %v3450_v24 }
 0x2a3   : > { %v2612_v16 = vadd.f32 0.5, %v2484_v56 }
 0x2a4   : > { %v2613_v44 = vadd.f32 0.5, %v2485_v20 }
 0x2a5   : > { %2741 = vst.msk [vmem:[%s4060_s20 + $0x3f0] sm:$0xff] %vm2614_vm1, %v2612_v16 }
 0x2a6   : > { %2742 = vst.msk [vmem:[%s4060_s20 + $0x3f8] sm:$0xff] %vm2614_vm1, %v2613_v44 }
 0x2a7 PF: > { %s15_s17 = sadd.s32 1, %s3458_s17  }
 0x2a8   : > { %p12_p4 = scmp.ge.s32.totalorder %s15_s17, 4  }
 0x2aa   :  { %14 = sbr.rel (!%p12_p4) target bundleno = 2 (0x2), region = 66 }

</bundles_post_ra>
